<compile_context>
chip_gen: v6e
topology: v6e:2x2x1
jax: 0.10.0
libtpu: 0.0.40
codegen_flags: <defaults>
</compile_context>

<pallas_src>
import jax
import jax.numpy as jnp
from jax.experimental import pallas as pl
from jax.experimental.pallas import tpu as pltpu


# ------------------ fused conv3x3 + bias + ReLU + maxpool2x2 ----------------

def _conv_relu_pool_kernel(p_ref, w_ref, b_ref, o_ref):
    # p_ref: (4, 1, Hp*Wp, K) -- the four 2x2 pooling phases of the im2col
    #        matrix for one sample.  w_ref: (K, Cout).  b_ref: (1, Cout).
    # o_ref: (1, Hp*Wp, Cout) -- pooled, ReLU'd conv output.
    w = w_ref[...]
    acc = jnp.dot(p_ref[0, 0, :, :], w, preferred_element_type=jnp.float32)
    for ph in range(1, 4):
        acc = jnp.maximum(
            acc, jnp.dot(p_ref[ph, 0, :, :], w, preferred_element_type=jnp.float32))
    # max / (+bias) / ReLU commute, so pooling before bias+ReLU is exact.
    o_ref[0] = jnp.maximum(acc + b_ref[...], 0.0)


def conv3x3_relu_pool2x2(x, w_packed, b_packed):
    """x: (N,H,W,Cin) NHWC; w_packed: (Cin*9, Cout); b_packed: (1, Cout).
    Returns maxpool2x2(relu(conv3x3(x)+b)) as (N, Hp, Wp, Cout), floor mode."""
    N, H, W, Cin = x.shape
    K, Cout = w_packed.shape
    OH, OW = H - 2, W - 2
    Hp, Wp = OH // 2, OW // 2

    # im2col with the 2x2 pooling phases pulled to the front (cheap XLA glue;
    # column index = ci*9 + kh*3 + kw to match the PyTorch OIHW flatten).
    # TODO(synk): move patch extraction fully in-kernel (9 shifted accumulations)
    # once strided/sublane-splitting value ops are worth the lowering risk.
    cols = [x[:, kh:kh + OH, kw:kw + OW, :] for kh in range(3) for kw in range(3)]
    p = jnp.stack(cols, axis=-1)                      # (N, OH, OW, Cin, 9)
    p = p[:, :2 * Hp, :2 * Wp]                        # floor-mode crop (13 -> 12)
    p = p.reshape(N, Hp, 2, Wp, 2, Cin, 9)
    p = jnp.transpose(p, (2, 4, 0, 1, 3, 5, 6))       # (2, 2, N, Hp, Wp, Cin, 9)
    p = p.reshape(4, N, Hp * Wp, Cin * 9)

    out = pl.pallas_call(
        _conv_relu_pool_kernel,
        out_shape=jax.ShapeDtypeStruct((N, Hp * Wp, Cout), jnp.float32),
        grid=(N,),
        in_specs=[
            pl.BlockSpec((4, 1, Hp * Wp, K), lambda n: (0, n, 0, 0)),
            pl.BlockSpec((K, Cout), lambda n: (0, 0)),
            pl.BlockSpec((1, Cout), lambda n: (0, 0)),
        ],
        out_specs=pl.BlockSpec((1, Hp * Wp, Cout), lambda n: (n, 0, 0)),
        compiler_params=pltpu.CompilerParams(dimension_semantics=("parallel",)),
    )(p, w_packed, b_packed)
    return out.reshape(N, Hp, Wp, Cout)


# ---------------- fused fc1 -> ReLU -> fc2 -> ReLU (weight streaming) -------

def _fc_fused_kernel(a_ref, w1_ref, b1_ref, w2_ref, b2_ref, o_ref, acc_ref):
    k = pl.program_id(0)

    @pl.when(k == 0)
    def _():
        acc_ref[...] = jnp.zeros_like(acc_ref)

    acc_ref[...] += jnp.dot(a_ref[...], w1_ref[...],
                            preferred_element_type=jnp.float32)

    @pl.when(k == pl.num_programs(0) - 1)
    def _():
        h = jnp.maximum(acc_ref[...] + b1_ref[...], 0.0)          # (M, 512) in VMEM
        y = jnp.dot(h, w2_ref[...], preferred_element_type=jnp.float32)
        o_ref[...] = jnp.maximum(y + b2_ref[...], 0.0)


def fc1_relu_fc2_relu(a, w1, b1, w2, b2, *, tk=768):
    """relu(relu(a @ w1 + b1) @ w2 + b2), fused in one pallas_call.
    a: (M, K1); w1: (K1, N1); w2: (N1, N2). w1 streamed over K1 in tk chunks."""
    M, K1 = a.shape
    _, N1 = w1.shape
    _, N2 = w2.shape
    assert K1 % tk == 0 and tk % 128 == 0
    return pl.pallas_call(
        _fc_fused_kernel,
        out_shape=jax.ShapeDtypeStruct((M, N2), jnp.float32),
        grid=(K1 // tk,),
        in_specs=[
            pl.BlockSpec((M, tk), lambda k: (0, k)),
            pl.BlockSpec((tk, N1), lambda k: (k, 0)),
            pl.BlockSpec((1, N1), lambda k: (0, 0)),
            pl.BlockSpec((N1, N2), lambda k: (0, 0)),
            pl.BlockSpec((1, N2), lambda k: (0, 0)),
        ],
        out_specs=pl.BlockSpec((M, N2), lambda k: (0, 0)),
        scratch_shapes=[pltpu.VMEM((M, N1), jnp.float32)],
        compiler_params=pltpu.CompilerParams(dimension_semantics=("arbitrary",)),
    )(a, w1, b1, w2, b2)


# ------------------------------- parameters --------------------------------

def init_params(key):
    ks = jax.random.split(key, 8)

    def u(k, shape, bound):
        return jax.random.uniform(k, shape, jnp.float32, -bound, bound)

    # conv / bias: PyTorch default init bound = 1/sqrt(fan_in)
    w1 = u(ks[0], (32, 3, 3, 3), 1.0 / (27 ** 0.5))        # (Cout, Cin, KH, KW)
    b1 = u(ks[1], (32,), 1.0 / (27 ** 0.5))
    w2 = u(ks[2], (64, 32, 3, 3), 1.0 / (288 ** 0.5))
    b2 = u(ks[3], (64,), 1.0 / (288 ** 0.5))
    # fc weights: kaiming_uniform_ (a=0) bound = sqrt(6/fan_in)
    wf1 = u(ks[4], (512, 2304), (6.0 / 2304) ** 0.5)       # (out, in) PyTorch layout
    bf1 = u(ks[5], (512,), 1.0 / (2304 ** 0.5))
    wf2 = u(ks[6], (784, 512), (6.0 / 512) ** 0.5)
    bf2 = u(ks[7], (784,), 1.0 / (512 ** 0.5))
    return dict(w1=w1, b1=b1, w2=w2, b2=b2, wf1=wf1, bf1=bf1, wf2=wf2, bf2=bf2)


def pack_params(p):
    """One-time repack of PyTorch-layout params into kernel-friendly layouts."""
    # fc1 input features in PyTorch are flattened (c, h, w); permute the weight
    # once so the kernel can consume the NHWC activation with no runtime transpose.
    wf1 = p["wf1"].reshape(512, 64, 6, 6)                  # (out, c, h, w)
    wf1 = jnp.transpose(wf1, (0, 2, 3, 1)).reshape(512, 2304)  # in-index h*384+w*64+c
    return dict(
        w1=p["w1"].reshape(32, 27).T,                      # (27, 32): col = ci*9+kh*3+kw
        b1=p["b1"].reshape(1, 32),
        w2=p["w2"].reshape(64, 288).T,                     # (288, 64)
        b2=p["b2"].reshape(1, 64),
        wf1=wf1.T,                                         # (2304, 512)
        bf1=p["bf1"].reshape(1, 512),
        wf2=p["wf2"].T,                                    # (512, 784)
        bf2=p["bf2"].reshape(1, 784),
    )


# -------------------------------- forward ----------------------------------

def forward(x, pp):
    """x: (N, 3, 32, 32) NCHW float32 -> (N, 1, 28, 28). pp = pack_params(...)."""
    N = x.shape[0]
    xn = jnp.transpose(x, (0, 2, 3, 1))                    # NCHW -> NHWC
    h = conv3x3_relu_pool2x2(xn, pp["w1"], pp["b1"])       # (N, 15, 15, 32)
    h = conv3x3_relu_pool2x2(h, pp["w2"], pp["b2"])        # (N, 6, 6, 64)
    flat = h.reshape(N, 6 * 6 * 64)                        # NHWC flatten (wf1 pre-permuted)
    out = fc1_relu_fc2_relu(flat, pp["wf1"], pp["bf1"], pp["wf2"], pp["bf2"])
    return out.reshape(N, 1, 28, 28)


def reference_forward(x, params):
    """Pure-JAX reference matching the PyTorch module's forward (raw params)."""
    N = x.shape[0]
    xn = jnp.transpose(x, (0, 2, 3, 1))
    hi = jax.lax.Precision.HIGHEST

    def conv_relu(a, w_pt, b):
        w = jnp.transpose(w_pt, (2, 3, 1, 0))              # OIHW -> HWIO
        y = jax.lax.conv_general_dilated(
            a, w, (1, 1), "VALID",
            dimension_numbers=("NHWC", "HWIO", "NHWC"), precision=hi)
        return jnp.maximum(y + b, 0.0)

    def pool(y):
        n, hh, ww, c = y.shape
        ho, wo = hh // 2, ww // 2
        yc = y[:, : 2 * ho, : 2 * wo, :].reshape(n, ho, 2, wo, 2, c)
        return jnp.max(yc, axis=(2, 4))

    h = pool(conv_relu(xn, params["w1"], params["b1"]))
    h = pool(conv_relu(h, params["w2"], params["b2"]))
    flat = jnp.transpose(h, (0, 3, 1, 2)).reshape(N, -1)   # PyTorch (c,h,w) flatten
    f1 = jnp.maximum(jnp.dot(flat, params["wf1"].T, precision=hi) + params["bf1"], 0.0)
    f2 = jnp.maximum(jnp.dot(f1, params["wf2"].T, precision=hi) + params["bf2"], 0.0)
    return f2.reshape(N, 1, 28, 28)


if __name__ == "__main__":
    key = jax.random.PRNGKey(0)
    kx, kp = jax.random.split(key)
    # fc1 expects 64*36 features => input spatial must be 32x32 with 3 channels
    x = jax.random.normal(kx, (2, 3, 32, 32), jnp.float32)  # NCHW like PyTorch
    params = init_params(kp)
    packed = pack_params(params)                            # pre-pack once, outside forward

    fwd = jax.jit(forward)
    out = jax.block_until_ready(fwd(x, packed))
    assert out.shape == (2, 1, 28, 28), out.shape

    ref = jax.block_until_ready(reference_forward(x, params))
    max_diff = float(jnp.max(jnp.abs(out - ref)))
    assert max_diff < 1e-1, f"max_diff={max_diff}"
    print("KERNEL_OK")
</pallas_src>

<mosaic_0001>
module attributes {stable_mosaic.version = 11 : i64} {
  func.func @_conv_relu_pool_kernel(%arg0: i32, %arg1: memref<4x1x225x27xf32, #tpu.memory_space<vmem>>, %arg2: memref<27x32xf32, #tpu.memory_space<vmem>>, %arg3: memref<1x32xf32, #tpu.memory_space<vmem>>, %arg4: memref<1x225x32xf32, #tpu.memory_space<vmem>>) attributes {dimension_semantics = [#tpu.dimension_semantics<parallel>], iteration_bounds = array<i64: 2>, scalar_prefetch = 0 : i64, scratch_operands = 0 : i64, tpu.core_type = #tpu.core_type<tc>, window_params = [{transform_indices = @transform_0, window_bounds = array<i64: 4, 1, 225, 27>}, {pipeline_mode = #tpu.pipeline_mode<synchronous>, transform_indices = @transform_1, window_bounds = array<i64: 27, 32>}, {pipeline_mode = #tpu.pipeline_mode<synchronous>, transform_indices = @transform_2, window_bounds = array<i64: 1, 32>}, {transform_indices = @transform_3, window_bounds = array<i64: 1, 225, 32>}]} {
    %c0 = arith.constant 0 : index
    %c0_0 = arith.constant 0 : index
    %0 = vector.load %arg2[%c0, %c0_0] : memref<27x32xf32, #tpu.memory_space<vmem>>, vector<27x32xf32>
    %c0_1 = arith.constant 0 : index
    %c0_2 = arith.constant 0 : index
    %c0_3 = arith.constant 0 : index
    %c0_4 = arith.constant 0 : index
    %1 = vector.load %arg1[%c0_1, %c0_2, %c0_3, %c0_4] : memref<4x1x225x27xf32, #tpu.memory_space<vmem>>, vector<1x1x225x27xf32>
    %2 = vector.shape_cast %1 : vector<1x1x225x27xf32> to vector<225x27xf32>
    %cst = arith.constant dense<0.000000e+00> : vector<225x32xf32>
    %3 = tpu.matmul %2, %0, %cst {dimension_numbers = #tpu.dot_dimension_numbers<[1], [0], [0], [1], [0, 0, 1, 1], [], []>} : vector<225x27xf32>, vector<27x32xf32>, vector<225x32xf32> -> vector<225x32xf32>
    %c1 = arith.constant 1 : index
    %c0_5 = arith.constant 0 : index
    %c0_6 = arith.constant 0 : index
    %c0_7 = arith.constant 0 : index
    %4 = vector.load %arg1[%c1, %c0_5, %c0_6, %c0_7] : memref<4x1x225x27xf32, #tpu.memory_space<vmem>>, vector<1x1x225x27xf32>
    %5 = vector.shape_cast %4 : vector<1x1x225x27xf32> to vector<225x27xf32>
    %cst_8 = arith.constant dense<0.000000e+00> : vector<225x32xf32>
    %6 = tpu.matmul %5, %0, %cst_8 {dimension_numbers = #tpu.dot_dimension_numbers<[1], [0], [0], [1], [0, 0, 1, 1], [], []>} : vector<225x27xf32>, vector<27x32xf32>, vector<225x32xf32> -> vector<225x32xf32>
    %7 = arith.maximumf %3, %6 : vector<225x32xf32>
    %c2 = arith.constant 2 : index
    %c0_9 = arith.constant 0 : index
    %c0_10 = arith.constant 0 : index
    %c0_11 = arith.constant 0 : index
    %8 = vector.load %arg1[%c2, %c0_9, %c0_10, %c0_11] : memref<4x1x225x27xf32, #tpu.memory_space<vmem>>, vector<1x1x225x27xf32>
    %9 = vector.shape_cast %8 : vector<1x1x225x27xf32> to vector<225x27xf32>
    %cst_12 = arith.constant dense<0.000000e+00> : vector<225x32xf32>
    %10 = tpu.matmul %9, %0, %cst_12 {dimension_numbers = #tpu.dot_dimension_numbers<[1], [0], [0], [1], [0, 0, 1, 1], [], []>} : vector<225x27xf32>, vector<27x32xf32>, vector<225x32xf32> -> vector<225x32xf32>
    %11 = arith.maximumf %7, %10 : vector<225x32xf32>
    %c3 = arith.constant 3 : index
    %c0_13 = arith.constant 0 : index
    %c0_14 = arith.constant 0 : index
    %c0_15 = arith.constant 0 : index
    %12 = vector.load %arg1[%c3, %c0_13, %c0_14, %c0_15] : memref<4x1x225x27xf32, #tpu.memory_space<vmem>>, vector<1x1x225x27xf32>
    %13 = vector.shape_cast %12 : vector<1x1x225x27xf32> to vector<225x27xf32>
    %cst_16 = arith.constant dense<0.000000e+00> : vector<225x32xf32>
    %14 = tpu.matmul %13, %0, %cst_16 {dimension_numbers = #tpu.dot_dimension_numbers<[1], [0], [0], [1], [0, 0, 1, 1], [], []>} : vector<225x27xf32>, vector<27x32xf32>, vector<225x32xf32> -> vector<225x32xf32>
    %15 = arith.maximumf %11, %14 : vector<225x32xf32>
    %c0_17 = arith.constant 0 : index
    %c0_18 = arith.constant 0 : index
    %16 = vector.load %arg3[%c0_17, %c0_18] : memref<1x32xf32, #tpu.memory_space<vmem>>, vector<1x32xf32>
    %17 = vector.broadcast %16 : vector<1x32xf32> to vector<225x32xf32>
    %18 = arith.addf %15, %17 : vector<225x32xf32>
    %cst_19 = arith.constant 0.000000e+00 : f32
    %19 = vector.broadcast %cst_19 : f32 to vector<225x32xf32>
    %20 = arith.maximumf %18, %19 : vector<225x32xf32>
    %c0_20 = arith.constant 0 : index
    %c0_21 = arith.constant 0 : index
    %c0_22 = arith.constant 0 : index
    %21 = vector.load %arg4[%c0_20, %c0_21, %c0_22] : memref<1x225x32xf32, #tpu.memory_space<vmem>>, vector<1x225x32xf32>
    %22 = vector.shape_cast %21 : vector<1x225x32xf32> to vector<225x32xf32>
    %23 = vector.shape_cast %20 : vector<225x32xf32> to vector<1x225x32xf32>
    tpu.vector_store %arg4[%c0_20, %c0_21, %c0_22], %23 {strides = array<i32>} : memref<1x225x32xf32, #tpu.memory_space<vmem>>, vector<1x225x32xf32>,
    return
  }
  func.func @transform_0(%arg0: i32) -> (i32, i32, i32, i32) {
    %c0_i32 = arith.constant 0 : i32
    %c0_i32_0 = arith.constant 0 : i32
    %c0_i32_1 = arith.constant 0 : i32
    %c0_i32_2 = arith.constant 0 : i32
    return %c0_i32, %arg0, %c0_i32_0, %c0_i32_1 : i32, i32, i32, i32
  }
  func.func @transform_1(%arg0: i32) -> (i32, i32) {
    %c0_i32 = arith.constant 0 : i32
    %c0_i32_0 = arith.constant 0 : i32
    %c0_i32_1 = arith.constant 0 : i32
    return %c0_i32, %c0_i32_0 : i32, i32
  }
  func.func @transform_2(%arg0: i32) -> (i32, i32) {
    %c0_i32 = arith.constant 0 : i32
    %c0_i32_0 = arith.constant 0 : i32
    %c0_i32_1 = arith.constant 0 : i32
    return %c0_i32, %c0_i32_0 : i32, i32
  }
  func.func @transform_3(%arg0: i32) -> (i32, i32, i32) {
    %c0_i32 = arith.constant 0 : i32
    %c0_i32_0 = arith.constant 0 : i32
    %c0_i32_1 = arith.constant 0 : i32
    return %arg0, %c0_i32, %c0_i32_0 : i32, i32, i32
  }
}

module attributes {stable_mosaic.version = 11 : i64} {
  func.func @_conv_relu_pool_kernel(%arg0: i32, %arg1: memref<4x1x36x288xf32, #tpu.memory_space<vmem>>, %arg2: memref<288x64xf32, #tpu.memory_space<vmem>>, %arg3: memref<1x64xf32, #tpu.memory_space<vmem>>, %arg4: memref<1x36x64xf32, #tpu.memory_space<vmem>>) attributes {dimension_semantics = [#tpu.dimension_semantics<parallel>], iteration_bounds = array<i64: 2>, scalar_prefetch = 0 : i64, scratch_operands = 0 : i64, tpu.core_type = #tpu.core_type<tc>, window_params = [{transform_indices = @transform_0, window_bounds = array<i64: 4, 1, 36, 288>}, {pipeline_mode = #tpu.pipeline_mode<synchronous>, transform_indices = @transform_1, window_bounds = array<i64: 288, 64>}, {pipeline_mode = #tpu.pipeline_mode<synchronous>, transform_indices = @transform_2, window_bounds = array<i64: 1, 64>}, {transform_indices = @transform_3, window_bounds = array<i64: 1, 36, 64>}]} {
    %c0 = arith.constant 0 : index
    %c0_0 = arith.constant 0 : index
    %0 = vector.load %arg2[%c0, %c0_0] : memref<288x64xf32, #tpu.memory_space<vmem>>, vector<288x64xf32>
    %c0_1 = arith.constant 0 : index
    %c0_2 = arith.constant 0 : index
    %c0_3 = arith.constant 0 : index
    %c0_4 = arith.constant 0 : index
    %1 = vector.load %arg1[%c0_1, %c0_2, %c0_3, %c0_4] : memref<4x1x36x288xf32, #tpu.memory_space<vmem>>, vector<1x1x36x288xf32>
    %2 = vector.shape_cast %1 : vector<1x1x36x288xf32> to vector<36x288xf32>
    %cst = arith.constant dense<0.000000e+00> : vector<36x64xf32>
    %3 = tpu.matmul %2, %0, %cst {dimension_numbers = #tpu.dot_dimension_numbers<[1], [0], [0], [1], [0, 0, 1, 1], [], []>} : vector<36x288xf32>, vector<288x64xf32>, vector<36x64xf32> -> vector<36x64xf32>
    %c1 = arith.constant 1 : index
    %c0_5 = arith.constant 0 : index
    %c0_6 = arith.constant 0 : index
    %c0_7 = arith.constant 0 : index
    %4 = vector.load %arg1[%c1, %c0_5, %c0_6, %c0_7] : memref<4x1x36x288xf32, #tpu.memory_space<vmem>>, vector<1x1x36x288xf32>
    %5 = vector.shape_cast %4 : vector<1x1x36x288xf32> to vector<36x288xf32>
    %cst_8 = arith.constant dense<0.000000e+00> : vector<36x64xf32>
    %6 = tpu.matmul %5, %0, %cst_8 {dimension_numbers = #tpu.dot_dimension_numbers<[1], [0], [0], [1], [0, 0, 1, 1], [], []>} : vector<36x288xf32>, vector<288x64xf32>, vector<36x64xf32> -> vector<36x64xf32>
    %7 = arith.maximumf %3, %6 : vector<36x64xf32>
    %c2 = arith.constant 2 : index
    %c0_9 = arith.constant 0 : index
    %c0_10 = arith.constant 0 : index
    %c0_11 = arith.constant 0 : index
    %8 = vector.load %arg1[%c2, %c0_9, %c0_10, %c0_11] : memref<4x1x36x288xf32, #tpu.memory_space<vmem>>, vector<1x1x36x288xf32>
    %9 = vector.shape_cast %8 : vector<1x1x36x288xf32> to vector<36x288xf32>
    %cst_12 = arith.constant dense<0.000000e+00> : vector<36x64xf32>
    %10 = tpu.matmul %9, %0, %cst_12 {dimension_numbers = #tpu.dot_dimension_numbers<[1], [0], [0], [1], [0, 0, 1, 1], [], []>} : vector<36x288xf32>, vector<288x64xf32>, vector<36x64xf32> -> vector<36x64xf32>
    %11 = arith.maximumf %7, %10 : vector<36x64xf32>
    %c3 = arith.constant 3 : index
    %c0_13 = arith.constant 0 : index
    %c0_14 = arith.constant 0 : index
    %c0_15 = arith.constant 0 : index
    %12 = vector.load %arg1[%c3, %c0_13, %c0_14, %c0_15] : memref<4x1x36x288xf32, #tpu.memory_space<vmem>>, vector<1x1x36x288xf32>
    %13 = vector.shape_cast %12 : vector<1x1x36x288xf32> to vector<36x288xf32>
    %cst_16 = arith.constant dense<0.000000e+00> : vector<36x64xf32>
    %14 = tpu.matmul %13, %0, %cst_16 {dimension_numbers = #tpu.dot_dimension_numbers<[1], [0], [0], [1], [0, 0, 1, 1], [], []>} : vector<36x288xf32>, vector<288x64xf32>, vector<36x64xf32> -> vector<36x64xf32>
    %15 = arith.maximumf %11, %14 : vector<36x64xf32>
    %c0_17 = arith.constant 0 : index
    %c0_18 = arith.constant 0 : index
    %16 = vector.load %arg3[%c0_17, %c0_18] : memref<1x64xf32, #tpu.memory_space<vmem>>, vector<1x64xf32>
    %17 = vector.broadcast %16 : vector<1x64xf32> to vector<36x64xf32>
    %18 = arith.addf %15, %17 : vector<36x64xf32>
    %cst_19 = arith.constant 0.000000e+00 : f32
    %19 = vector.broadcast %cst_19 : f32 to vector<36x64xf32>
    %20 = arith.maximumf %18, %19 : vector<36x64xf32>
    %c0_20 = arith.constant 0 : index
    %c0_21 = arith.constant 0 : index
    %c0_22 = arith.constant 0 : index
    %21 = vector.load %arg4[%c0_20, %c0_21, %c0_22] : memref<1x36x64xf32, #tpu.memory_space<vmem>>, vector<1x36x64xf32>
    %22 = vector.shape_cast %21 : vector<1x36x64xf32> to vector<36x64xf32>
    %23 = vector.shape_cast %20 : vector<36x64xf32> to vector<1x36x64xf32>
    tpu.vector_store %arg4[%c0_20, %c0_21, %c0_22], %23 {strides = array<i32>} : memref<1x36x64xf32, #tpu.memory_space<vmem>>, vector<1x36x64xf32>,
    return
  }
  func.func @transform_0(%arg0: i32) -> (i32, i32, i32, i32) {
    %c0_i32 = arith.constant 0 : i32
    %c0_i32_0 = arith.constant 0 : i32
    %c0_i32_1 = arith.constant 0 : i32
    %c0_i32_2 = arith.constant 0 : i32
    return %c0_i32, %arg0, %c0_i32_0, %c0_i32_1 : i32, i32, i32, i32
  }
  func.func @transform_1(%arg0: i32) -> (i32, i32) {
    %c0_i32 = arith.constant 0 : i32
    %c0_i32_0 = arith.constant 0 : i32
    %c0_i32_1 = arith.constant 0 : i32
    return %c0_i32, %c0_i32_0 : i32, i32
  }
  func.func @transform_2(%arg0: i32) -> (i32, i32) {
    %c0_i32 = arith.constant 0 : i32
    %c0_i32_0 = arith.constant 0 : i32
    %c0_i32_1 = arith.constant 0 : i32
    return %c0_i32, %c0_i32_0 : i32, i32
  }
  func.func @transform_3(%arg0: i32) -> (i32, i32, i32) {
    %c0_i32 = arith.constant 0 : i32
    %c0_i32_0 = arith.constant 0 : i32
    %c0_i32_1 = arith.constant 0 : i32
    return %arg0, %c0_i32, %c0_i32_0 : i32, i32, i32
  }
}

module attributes {stable_mosaic.version = 11 : i64} {
  func.func @_fc_fused_kernel(%arg0: i32, %arg1: memref<2x768xf32, #tpu.memory_space<vmem>>, %arg2: memref<768x512xf32, #tpu.memory_space<vmem>>, %arg3: memref<1x512xf32, #tpu.memory_space<vmem>>, %arg4: memref<512x784xf32, #tpu.memory_space<vmem>>, %arg5: memref<1x784xf32, #tpu.memory_space<vmem>>, %arg6: memref<2x784xf32, #tpu.memory_space<vmem>>, %arg7: memref<2x512xf32, #tpu.memory_space<vmem>>) attributes {dimension_semantics = [#tpu.dimension_semantics<arbitrary>], iteration_bounds = array<i64: 3>, scalar_prefetch = 0 : i64, scratch_operands = 1 : i64, tpu.core_type = #tpu.core_type<tc>, window_params = [{transform_indices = @transform_0, window_bounds = array<i64: 2, 768>}, {transform_indices = @transform_1, window_bounds = array<i64: 768, 512>}, {pipeline_mode = #tpu.pipeline_mode<synchronous>, transform_indices = @transform_2, window_bounds = array<i64: 1, 512>}, {pipeline_mode = #tpu.pipeline_mode<synchronous>, transform_indices = @transform_3, window_bounds = array<i64: 512, 784>}, {pipeline_mode = #tpu.pipeline_mode<synchronous>, transform_indices = @transform_4, window_bounds = array<i64: 1, 784>}, {pipeline_mode = #tpu.pipeline_mode<synchronous>, transform_indices = @transform_5, window_bounds = array<i64: 2, 784>}]} {
    %c0_i32 = arith.constant 0 : i32
    %0 = arith.cmpi eq, %arg0, %c0_i32 : i32
    %1 = arith.extui %0 : i1 to i32
    %c0_i32_0 = arith.constant 0 : i32
    %2 = arith.cmpi ne, %1, %c0_i32_0 : i32
    scf.if %2 {
      %cst_9 = arith.constant 0.000000e+00 : f32
      %12 = vector.broadcast %cst_9 : f32 to vector<2x512xf32>
      %c0_10 = arith.constant 0 : index
      %c0_11 = arith.constant 0 : index
      %13 = vector.load %arg7[%c0_10, %c0_11] : memref<2x512xf32, #tpu.memory_space<vmem>>, vector<2x512xf32>
      tpu.vector_store %arg7[%c0_10, %c0_11], %12 {strides = array<i32>} : memref<2x512xf32, #tpu.memory_space<vmem>>, vector<2x512xf32>,
    } else {
    }
    %c0 = arith.constant 0 : index
    %c0_1 = arith.constant 0 : index
    %3 = vector.load %arg7[%c0, %c0_1] : memref<2x512xf32, #tpu.memory_space<vmem>>, vector<2x512xf32>
    %c0_2 = arith.constant 0 : index
    %c0_3 = arith.constant 0 : index
    %4 = vector.load %arg1[%c0_2, %c0_3] : memref<2x768xf32, #tpu.memory_space<vmem>>, vector<2x768xf32>
    %c0_4 = arith.constant 0 : index
    %c0_5 = arith.constant 0 : index
    %5 = vector.load %arg2[%c0_4, %c0_5] : memref<768x512xf32, #tpu.memory_space<vmem>>, vector<768x512xf32>
    %cst = arith.constant dense<0.000000e+00> : vector<2x512xf32>
    %6 = tpu.matmul %4, %5, %cst {dimension_numbers = #tpu.dot_dimension_numbers<[1], [0], [0], [1], [0, 0, 1, 1], [], []>} : vector<2x768xf32>, vector<768x512xf32>, vector<2x512xf32> -> vector<2x512xf32>
    %7 = arith.addf %3, %6 : vector<2x512xf32>
    %c0_6 = arith.constant 0 : index
    %c0_7 = arith.constant 0 : index
    %8 = vector.load %arg7[%c0_6, %c0_7] : memref<2x512xf32, #tpu.memory_space<vmem>>, vector<2x512xf32>
    tpu.vector_store %arg7[%c0_6, %c0_7], %7 {strides = array<i32>} : memref<2x512xf32, #tpu.memory_space<vmem>>, vector<2x512xf32>,
    %c2_i32 = arith.constant 2 : i32
    %9 = arith.cmpi eq, %arg0, %c2_i32 : i32
    %10 = arith.extui %9 : i1 to i32
    %c0_i32_8 = arith.constant 0 : i32
    %11 = arith.cmpi ne, %10, %c0_i32_8 : i32
    scf.if %11 {
      %c0_9 = arith.constant 0 : index
      %c0_10 = arith.constant 0 : index
      %12 = vector.load %arg7[%c0_9, %c0_10] : memref<2x512xf32, #tpu.memory_space<vmem>>, vector<2x512xf32>
      %c0_11 = arith.constant 0 : index
      %c0_12 = arith.constant 0 : index
      %13 = vector.load %arg3[%c0_11, %c0_12] : memref<1x512xf32, #tpu.memory_space<vmem>>, vector<1x512xf32>
      %14 = vector.broadcast %13 : vector<1x512xf32> to vector<2x512xf32>
      %15 = arith.addf %12, %14 : vector<2x512xf32>
      %cst_13 = arith.constant 0.000000e+00 : f32
      %16 = vector.broadcast %cst_13 : f32 to vector<2x512xf32>
      %17 = arith.maximumf %15, %16 : vector<2x512xf32>
      %c0_14 = arith.constant 0 : index
      %c0_15 = arith.constant 0 : index
      %18 = vector.load %arg4[%c0_14, %c0_15] : memref<512x784xf32, #tpu.memory_space<vmem>>, vector<512x784xf32>
      %cst_16 = arith.constant dense<0.000000e+00> : vector<2x784xf32>
      %19 = tpu.matmul %17, %18, %cst_16 {dimension_numbers = #tpu.dot_dimension_numbers<[1], [0], [0], [1], [0, 0, 1, 1], [], []>} : vector<2x512xf32>, vector<512x784xf32>, vector<2x784xf32> -> vector<2x784xf32>
      %c0_17 = arith.constant 0 : index
      %c0_18 = arith.constant 0 : index
      %20 = vector.load %arg5[%c0_17, %c0_18] : memref<1x784xf32, #tpu.memory_space<vmem>>, vector<1x784xf32>
      %21 = vector.broadcast %20 : vector<1x784xf32> to vector<2x784xf32>
      %22 = arith.addf %19, %21 : vector<2x784xf32>
      %cst_19 = arith.constant 0.000000e+00 : f32
      %23 = vector.broadcast %cst_19 : f32 to vector<2x784xf32>
      %24 = arith.maximumf %22, %23 : vector<2x784xf32>
      %c0_20 = arith.constant 0 : index
      %c0_21 = arith.constant 0 : index
      %25 = vector.load %arg6[%c0_20, %c0_21] : memref<2x784xf32, #tpu.memory_space<vmem>>, vector<2x784xf32>
      tpu.vector_store %arg6[%c0_20, %c0_21], %24 {strides = array<i32>} : memref<2x784xf32, #tpu.memory_space<vmem>>, vector<2x784xf32>,
    } else {
    }
    return
  }
  func.func @transform_0(%arg0: i32) -> (i32, i32) {
    %c0_i32 = arith.constant 0 : i32
    %c0_i32_0 = arith.constant 0 : i32
    return %c0_i32, %arg0 : i32, i32
  }
  func.func @transform_1(%arg0: i32) -> (i32, i32) {
    %c0_i32 = arith.constant 0 : i32
    %c0_i32_0 = arith.constant 0 : i32
    return %arg0, %c0_i32 : i32, i32
  }
  func.func @transform_2(%arg0: i32) -> (i32, i32) {
    %c0_i32 = arith.constant 0 : i32
    %c0_i32_0 = arith.constant 0 : i32
    %c0_i32_1 = arith.constant 0 : i32
    return %c0_i32, %c0_i32_0 : i32, i32
  }
  func.func @transform_3(%arg0: i32) -> (i32, i32) {
    %c0_i32 = arith.constant 0 : i32
    %c0_i32_0 = arith.constant 0 : i32
    %c0_i32_1 = arith.constant 0 : i32
    return %c0_i32, %c0_i32_0 : i32, i32
  }
  func.func @transform_4(%arg0: i32) -> (i32, i32) {
    %c0_i32 = arith.constant 0 : i32
    %c0_i32_0 = arith.constant 0 : i32
    %c0_i32_1 = arith.constant 0 : i32
    return %c0_i32, %c0_i32_0 : i32, i32
  }
  func.func @transform_5(%arg0: i32) -> (i32, i32) {
    %c0_i32 = arith.constant 0 : i32
    %c0_i32_0 = arith.constant 0 : i32
    %c0_i32_1 = arith.constant 0 : i32
    return %c0_i32, %c0_i32_0 : i32, i32
  }
}

</mosaic_0001>

<bundles_post_ra>
// kernel: forward.3
= control target key start
LH: loop header
LB: loop body
LE: loop exit
PB: predicated region body
PF: predicated region fallthrough
CT: control target
= control target key end

     0   :  { %s3032_s12 = smov 0   ;;  %s3034_s13 = smov 0   ;;  %s4174_s0 = inlined_call_operand.vmem [shape: f32[4,2,225,27], index: 0, kind: input, shape index: {}]   ;;  %s4175_s1 = inlined_call_operand.vmem [shape: f32[27,32], index: 1, kind: input, shape index: {}]   ;;  %s4176_s2 = inlined_call_operand.vmem [shape: f32[1,32], index: 2, kind: input, shape index: {}]   ;;  %s4177_s3 = inlined_call_operand.vmem [shape: f32[2,225,32], index: 3, kind: output, shape index: {}]  }
   0x1   :  { %s3036_s14 = smov 0  }
   0x2 LB: > { %s2227_s15 = sadd.s32 4294967295, %s3008_s14   ;;  %s3049_s16 = sadd.s32 1, %s3008_s14   ;;  %s3008_s14 = sphi %s3036_s14, %s4233_s14   ;;  %s3004_s13 = sphi %s3034_s13, %s4232_s13   ;;  %s3000_s12 = sphi %s3032_s12, %s4231_s12  }
   0x3   : > { %s17_s17 = ssub.s32 %s3008_s14, %s3049_s16  ;;  %s20_s18 = sadd.s32 1, %s3004_s13 }
   0x4   : > { %p18_p0 = scmp.eq.s32.totalorder %s17_s17, 0  ;;  %p27_p1 = scmp.ne.s32.totalorder %s3004_s13, %s3000_s12 }
   0x5   : > { %p28_p2 = scmp.eq.s32.totalorder %s3008_s14, 0  ;;  %p2230_p4 = scmp.ge.s32.totalorder %s3008_s14, 2 }
   0x6   : > { %s3058_s19 = scalar_select %p18_p0, %s3004_s13, %s20_s18  }
   0x7   : > { %p29_p3 = por %p28_p2, %p27_p1  ;;  %127 = sbr.rel (%p2230_p4) target bundleno = 75 (0x4b), region = 24 }
   0xc   : > { %130 = sbr.rel (!%p29_p3) target bundleno = 75 (0x4b), region = 28  ;;  %s132_s20 = sand.u32 (%p29_p3), 1, %s3004_s13  }
   0xd   : > { %s2957_s21 = smul.u32 (%p29_p3), 232, %s3008_s14 }
   0xe   : > { %s2956_s22 = smul.u32 (%p29_p3), 928, %s132_s20 }
   0xf   : > { %s3066_s25 = scalar_lea.vmem (%p29_p3), %s4174_s0, %s2957_s21 }
  0x10   : > { %v396_v0 = vld [vmem:[%s3066_s25] sm:$0xff] (%p29_p3)  ;;  %v398_v1 = vld [vmem:[%s3066_s25 + $0x8] sm:$0xff] (%p29_p3)  ;;  %v400_v2 = vld [vmem:[%s3066_s25 + $0x10] sm:$0xff] (%p29_p3)  ;;  %s3071_s26 = scalar_lea.vmem (%p29_p3), [#allocation2], %s2956_s22 }
  0x11   : > { %397 = vst [vmem:[%s3071_s26] sm:$0xff] %v396_v0  ;;  %399 = vst [vmem:[%s3071_s26 + $0x8] sm:$0xff] %v398_v1  ;;  %v402_v3 = vld [vmem:[%s3066_s25 + $0x18] sm:$0xff]  ;;  %v404_v4 = vld [vmem:[%s3066_s25 + $0x20] sm:$0xff] }
  0x12   : > { %401 = vst [vmem:[%s3071_s26 + $0x10] sm:$0xff] %v400_v2  ;;  %v406_v5 = vld [vmem:[%s3066_s25 + $0x28] sm:$0xff]  ;;  %403 = vst [vmem:[%s3071_s26 + $0x18] sm:$0xff] %v402_v3  ;;  %v408_v6 = vld [vmem:[%s3066_s25 + $0x30] sm:$0xff] }
  0x13   : > { %405 = vst [vmem:[%s3071_s26 + $0x20] sm:$0xff] %v404_v4  ;;  %407 = vst [vmem:[%s3071_s26 + $0x28] sm:$0xff] %v406_v5  ;;  %v410_v7 = vld [vmem:[%s3066_s25 + $0x38] sm:$0xff]  ;;  %v412_v8 = vld [vmem:[%s3066_s25 + $0x40] sm:$0xff] }
  0x14   : > { %409 = vst [vmem:[%s3071_s26 + $0x30] sm:$0xff] %v408_v6  ;;  %411 = vst [vmem:[%s3071_s26 + $0x38] sm:$0xff] %v410_v7  ;;  %v414_v9 = vld [vmem:[%s3066_s25 + $0x48] sm:$0xff]  ;;  %v416_v10 = vld [vmem:[%s3066_s25 + $0x50] sm:$0xff] }
  0x15   : > { %413 = vst [vmem:[%s3071_s26 + $0x40] sm:$0xff] %v412_v8  ;;  %v418_v11 = vld [vmem:[%s3066_s25 + $0x58] sm:$0xff]  ;;  %415 = vst [vmem:[%s3071_s26 + $0x48] sm:$0xff] %v414_v9  ;;  %v420_v12 = vld [vmem:[%s3066_s25 + $0x60] sm:$0xff] }
  0x16   : > { %417 = vst [vmem:[%s3071_s26 + $0x50] sm:$0xff] %v416_v10  ;;  %419 = vst [vmem:[%s3071_s26 + $0x58] sm:$0xff] %v418_v11  ;;  %v422_v13 = vld [vmem:[%s3066_s25 + $0x68] sm:$0xff]  ;;  %v424_v14 = vld [vmem:[%s3066_s25 + $0x70] sm:$0xff] }
  0x17   : > { %421 = vst [vmem:[%s3071_s26 + $0x60] sm:$0xff] %v420_v12  ;;  %423 = vst [vmem:[%s3071_s26 + $0x68] sm:$0xff] %v422_v13  ;;  %v426_v15 = vld [vmem:[%s3066_s25 + $0x78] sm:$0xff]  ;;  %v428_v16 = vld [vmem:[%s3066_s25 + $0x80] sm:$0xff] }
  0x18   : > { %425 = vst [vmem:[%s3071_s26 + $0x70] sm:$0xff] %v424_v14  ;;  %v430_v17 = vld [vmem:[%s3066_s25 + $0x88] sm:$0xff]  ;;  %427 = vst [vmem:[%s3071_s26 + $0x78] sm:$0xff] %v426_v15  ;;  %v432_v18 = vld [vmem:[%s3066_s25 + $0x90] sm:$0xff] }
  0x19   : > { %429 = vst [vmem:[%s3071_s26 + $0x80] sm:$0xff] %v428_v16  ;;  %431 = vst [vmem:[%s3071_s26 + $0x88] sm:$0xff] %v430_v17  ;;  %v434_v19 = vld [vmem:[%s3066_s25 + $0x98] sm:$0xff]  ;;  %v436_v20 = vld [vmem:[%s3066_s25 + $0xa0] sm:$0xff] }
  0x1a   : > { %433 = vst [vmem:[%s3071_s26 + $0x90] sm:$0xff] %v432_v18  ;;  %435 = vst [vmem:[%s3071_s26 + $0x98] sm:$0xff] %v434_v19  ;;  %v438_v21 = vld [vmem:[%s3066_s25 + $0xa8] sm:$0xff]  ;;  %v440_v22 = vld [vmem:[%s3066_s25 + $0xb0] sm:$0xff] }
  0x1b   : > { %437 = vst [vmem:[%s3071_s26 + $0xa0] sm:$0xff] %v436_v20  ;;  %v442_v23 = vld [vmem:[%s3066_s25 + $0xb8] sm:$0xff]  ;;  %439 = vst [vmem:[%s3071_s26 + $0xa8] sm:$0xff] %v438_v21  ;;  %v444_v24 = vld [vmem:[%s3066_s25 + $0xc0] sm:$0xff] }
  0x1c   : > { %441 = vst [vmem:[%s3071_s26 + $0xb0] sm:$0xff] %v440_v22  ;;  %443 = vst [vmem:[%s3071_s26 + $0xb8] sm:$0xff] %v442_v23  ;;  %v446_v25 = vld [vmem:[%s3066_s25 + $0xc8] sm:$0xff]  ;;  %v448_v26 = vld [vmem:[%s3066_s25 + $0xd0] sm:$0xff] }
  0x1d   : > { %445 = vst [vmem:[%s3071_s26 + $0xc0] sm:$0xff] %v444_v24  ;;  %447 = vst [vmem:[%s3071_s26 + $0xc8] sm:$0xff] %v446_v25  ;;  %v450_v27 = vld [vmem:[%s3066_s25 + $0xd8] sm:$0xff]  ;;  %v452_v28 = vld [vmem:[%s3066_s25 + $0xe0] sm:$0xff] }
  0x1e   : > { %449 = vst [vmem:[%s3071_s26 + $0xd0] sm:$0xff] %v448_v26  ;;  %v454_v29 = vld [vmem:[%s3066_s25 + $0x1d0] sm:$0xff]  ;;  %451 = vst [vmem:[%s3071_s26 + $0xd8] sm:$0xff] %v450_v27  ;;  %v456_v30 = vld [vmem:[%s3066_s25 + $0x1d8] sm:$0xff] }
  0x1f   : > { %453 = vst [vmem:[%s3071_s26 + $0xe0] sm:$0xff] %v452_v28  ;;  %455 = vst [vmem:[%s3071_s26 + $0xe8] sm:$0xff] %v454_v29  ;;  %v458_v31 = vld [vmem:[%s3066_s25 + $0x1e0] sm:$0xff]  ;;  %v460_v32 = vld [vmem:[%s3066_s25 + $0x1e8] sm:$0xff] }
  0x20   : > { %457 = vst [vmem:[%s3071_s26 + $0xf0] sm:$0xff] %v456_v30  ;;  %459 = vst [vmem:[%s3071_s26 + $0xf8] sm:$0xff] %v458_v31  ;;  %v462_v33 = vld [vmem:[%s3066_s25 + $0x1f0] sm:$0xff]  ;;  %v464_v34 = vld [vmem:[%s3066_s25 + $0x1f8] sm:$0xff] }
  0x21   : > { %461 = vst [vmem:[%s3071_s26 + $0x100] sm:$0xff] %v460_v32  ;;  %v466_v35 = vld [vmem:[%s3066_s25 + $0x200] sm:$0xff]  ;;  %463 = vst [vmem:[%s3071_s26 + $0x108] sm:$0xff] %v462_v33  ;;  %v468_v36 = vld [vmem:[%s3066_s25 + $0x208] sm:$0xff] }
  0x22   : > { %465 = vst [vmem:[%s3071_s26 + $0x110] sm:$0xff] %v464_v34  ;;  %467 = vst [vmem:[%s3071_s26 + $0x118] sm:$0xff] %v466_v35  ;;  %v470_v37 = vld [vmem:[%s3066_s25 + $0x210] sm:$0xff]  ;;  %v472_v38 = vld [vmem:[%s3066_s25 + $0x218] sm:$0xff] }
  0x23   : > { %469 = vst [vmem:[%s3071_s26 + $0x120] sm:$0xff] %v468_v36  ;;  %471 = vst [vmem:[%s3071_s26 + $0x128] sm:$0xff] %v470_v37  ;;  %v474_v39 = vld [vmem:[%s3066_s25 + $0x220] sm:$0xff]  ;;  %v476_v40 = vld [vmem:[%s3066_s25 + $0x228] sm:$0xff] }
  0x24   : > { %473 = vst [vmem:[%s3071_s26 + $0x130] sm:$0xff] %v472_v38  ;;  %v478_v41 = vld [vmem:[%s3066_s25 + $0x230] sm:$0xff]  ;;  %475 = vst [vmem:[%s3071_s26 + $0x138] sm:$0xff] %v474_v39  ;;  %v480_v42 = vld [vmem:[%s3066_s25 + $0x238] sm:$0xff] }
  0x25   : > { %477 = vst [vmem:[%s3071_s26 + $0x140] sm:$0xff] %v476_v40  ;;  %479 = vst [vmem:[%s3071_s26 + $0x148] sm:$0xff] %v478_v41  ;;  %v482_v43 = vld [vmem:[%s3066_s25 + $0x240] sm:$0xff]  ;;  %v484_v44 = vld [vmem:[%s3066_s25 + $0x248] sm:$0xff] }
  0x26   : > { %481 = vst [vmem:[%s3071_s26 + $0x150] sm:$0xff] %v480_v42  ;;  %483 = vst [vmem:[%s3071_s26 + $0x158] sm:$0xff] %v482_v43  ;;  %v486_v45 = vld [vmem:[%s3066_s25 + $0x250] sm:$0xff]  ;;  %v488_v46 = vld [vmem:[%s3066_s25 + $0x258] sm:$0xff] }
  0x27   : > { %485 = vst [vmem:[%s3071_s26 + $0x160] sm:$0xff] %v484_v44  ;;  %v490_v47 = vld [vmem:[%s3066_s25 + $0x260] sm:$0xff]  ;;  %487 = vst [vmem:[%s3071_s26 + $0x168] sm:$0xff] %v486_v45  ;;  %v492_v48 = vld [vmem:[%s3066_s25 + $0x268] sm:$0xff] }
  0x28   : > { %489 = vst [vmem:[%s3071_s26 + $0x170] sm:$0xff] %v488_v46  ;;  %491 = vst [vmem:[%s3071_s26 + $0x178] sm:$0xff] %v490_v47  ;;  %v494_v49 = vld [vmem:[%s3066_s25 + $0x270] sm:$0xff]  ;;  %v496_v50 = vld [vmem:[%s3066_s25 + $0x278] sm:$0xff] }
  0x29   : > { %493 = vst [vmem:[%s3071_s26 + $0x180] sm:$0xff] %v492_v48  ;;  %495 = vst [vmem:[%s3071_s26 + $0x188] sm:$0xff] %v494_v49  ;;  %v498_v51 = vld [vmem:[%s3066_s25 + $0x280] sm:$0xff]  ;;  %v500_v52 = vld [vmem:[%s3066_s25 + $0x288] sm:$0xff] }
  0x2a   : > { %497 = vst [vmem:[%s3071_s26 + $0x190] sm:$0xff] %v496_v50  ;;  %v502_v53 = vld [vmem:[%s3066_s25 + $0x290] sm:$0xff]  ;;  %499 = vst [vmem:[%s3071_s26 + $0x198] sm:$0xff] %v498_v51  ;;  %v504_v54 = vld [vmem:[%s3066_s25 + $0x298] sm:$0xff] }
  0x2b   : > { %501 = vst [vmem:[%s3071_s26 + $0x1a0] sm:$0xff] %v500_v52  ;;  %503 = vst [vmem:[%s3071_s26 + $0x1a8] sm:$0xff] %v502_v53  ;;  %v506_v55 = vld [vmem:[%s3066_s25 + $0x2a0] sm:$0xff]  ;;  %v508_v56 = vld [vmem:[%s3066_s25 + $0x2a8] sm:$0xff] }
  0x2c   : > { %505 = vst [vmem:[%s3071_s26 + $0x1b0] sm:$0xff] %v504_v54  ;;  %507 = vst [vmem:[%s3071_s26 + $0x1b8] sm:$0xff] %v506_v55  ;;  %v510_v57 = vld [vmem:[%s3066_s25 + $0x2b0] sm:$0xff]  ;;  %v512_v58 = vld [vmem:[%s3066_s25 + $0x3a0] sm:$0xff] }
  0x2d   : > { %509 = vst [vmem:[%s3071_s26 + $0x1c0] sm:$0xff] %v508_v56  ;;  %v514_v59 = vld [vmem:[%s3066_s25 + $0x3a8] sm:$0xff]  ;;  %511 = vst [vmem:[%s3071_s26 + $0x1c8] sm:$0xff] %v510_v57  ;;  %v516_v60 = vld [vmem:[%s3066_s25 + $0x3b0] sm:$0xff] }
  0x2e   : > { %513 = vst [vmem:[%s3071_s26 + $0x1d0] sm:$0xff] %v512_v58  ;;  %515 = vst [vmem:[%s3071_s26 + $0x1d8] sm:$0xff] %v514_v59  ;;  %v518_v61 = vld [vmem:[%s3066_s25 + $0x3b8] sm:$0xff]  ;;  %v520_v62 = vld [vmem:[%s3066_s25 + $0x3c0] sm:$0xff] }
  0x2f   : > { %517 = vst [vmem:[%s3071_s26 + $0x1e0] sm:$0xff] %v516_v60  ;;  %519 = vst [vmem:[%s3071_s26 + $0x1e8] sm:$0xff] %v518_v61  ;;  %v522_v63 = vld [vmem:[%s3066_s25 + $0x3c8] sm:$0xff]  ;;  %v524_v0 = vld [vmem:[%s3066_s25 + $0x3d0] sm:$0xff] }
  0x30   : > { %521 = vst [vmem:[%s3071_s26 + $0x1f0] sm:$0xff] %v520_v62  ;;  %v526_v1 = vld [vmem:[%s3066_s25 + $0x3d8] sm:$0xff]  ;;  %523 = vst [vmem:[%s3071_s26 + $0x1f8] sm:$0xff] %v522_v63  ;;  %v528_v2 = vld [vmem:[%s3066_s25 + $0x3e0] sm:$0xff] }
  0x31   : > { %525 = vst [vmem:[%s3071_s26 + $0x200] sm:$0xff] %v524_v0  ;;  %527 = vst [vmem:[%s3071_s26 + $0x208] sm:$0xff] %v526_v1  ;;  %v530_v3 = vld [vmem:[%s3066_s25 + $0x3e8] sm:$0xff]  ;;  %v532_v4 = vld [vmem:[%s3066_s25 + $0x3f0] sm:$0xff] }
  0x32   : > { %529 = vst [vmem:[%s3071_s26 + $0x210] sm:$0xff] %v528_v2  ;;  %531 = vst [vmem:[%s3071_s26 + $0x218] sm:$0xff] %v530_v3  ;;  %v534_v5 = vld [vmem:[%s3066_s25 + $0x3f8] sm:$0xff]  ;;  %v536_v6 = vld [vmem:[%s3066_s25 + $0x400] sm:$0xff] }
  0x33   : > { %533 = vst [vmem:[%s3071_s26 + $0x220] sm:$0xff] %v532_v4  ;;  %v538_v7 = vld [vmem:[%s3066_s25 + $0x408] sm:$0xff]  ;;  %535 = vst [vmem:[%s3071_s26 + $0x228] sm:$0xff] %v534_v5  ;;  %v540_v8 = vld [vmem:[%s3066_s25 + $0x410] sm:$0xff] }
  0x34   : > { %537 = vst [vmem:[%s3071_s26 + $0x230] sm:$0xff] %v536_v6  ;;  %539 = vst [vmem:[%s3071_s26 + $0x238] sm:$0xff] %v538_v7  ;;  %v542_v9 = vld [vmem:[%s3066_s25 + $0x418] sm:$0xff]  ;;  %v544_v10 = vld [vmem:[%s3066_s25 + $0x420] sm:$0xff] }
  0x35   : > { %541 = vst [vmem:[%s3071_s26 + $0x240] sm:$0xff] %v540_v8  ;;  %543 = vst [vmem:[%s3071_s26 + $0x248] sm:$0xff] %v542_v9  ;;  %v546_v11 = vld [vmem:[%s3066_s25 + $0x428] sm:$0xff]  ;;  %v548_v12 = vld [vmem:[%s3066_s25 + $0x430] sm:$0xff] }
  0x36   : > { %545 = vst [vmem:[%s3071_s26 + $0x250] sm:$0xff] %v544_v10  ;;  %v550_v13 = vld [vmem:[%s3066_s25 + $0x438] sm:$0xff]  ;;  %547 = vst [vmem:[%s3071_s26 + $0x258] sm:$0xff] %v546_v11  ;;  %v552_v14 = vld [vmem:[%s3066_s25 + $0x440] sm:$0xff] }
  0x37   : > { %549 = vst [vmem:[%s3071_s26 + $0x260] sm:$0xff] %v548_v12  ;;  %551 = vst [vmem:[%s3071_s26 + $0x268] sm:$0xff] %v550_v13  ;;  %v554_v15 = vld [vmem:[%s3066_s25 + $0x448] sm:$0xff]  ;;  %v556_v16 = vld [vmem:[%s3066_s25 + $0x450] sm:$0xff] }
  0x38   : > { %553 = vst [vmem:[%s3071_s26 + $0x270] sm:$0xff] %v552_v14  ;;  %555 = vst [vmem:[%s3071_s26 + $0x278] sm:$0xff] %v554_v15  ;;  %v558_v17 = vld [vmem:[%s3066_s25 + $0x458] sm:$0xff]  ;;  %v560_v18 = vld [vmem:[%s3066_s25 + $0x460] sm:$0xff] }
  0x39   : > { %557 = vst [vmem:[%s3071_s26 + $0x280] sm:$0xff] %v556_v16  ;;  %v562_v19 = vld [vmem:[%s3066_s25 + $0x468] sm:$0xff]  ;;  %559 = vst [vmem:[%s3071_s26 + $0x288] sm:$0xff] %v558_v17  ;;  %v564_v20 = vld [vmem:[%s3066_s25 + $0x470] sm:$0xff] }
  0x3a   : > { %561 = vst [vmem:[%s3071_s26 + $0x290] sm:$0xff] %v560_v18  ;;  %563 = vst [vmem:[%s3071_s26 + $0x298] sm:$0xff] %v562_v19  ;;  %v566_v21 = vld [vmem:[%s3066_s25 + $0x478] sm:$0xff]  ;;  %v568_v22 = vld [vmem:[%s3066_s25 + $0x480] sm:$0xff] }
  0x3b   : > { %565 = vst [vmem:[%s3071_s26 + $0x2a0] sm:$0xff] %v564_v20  ;;  %567 = vst [vmem:[%s3071_s26 + $0x2a8] sm:$0xff] %v566_v21  ;;  %v570_v23 = vld [vmem:[%s3066_s25 + $0x570] sm:$0xff]  ;;  %v572_v24 = vld [vmem:[%s3066_s25 + $0x578] sm:$0xff] }
  0x3c   : > { %569 = vst [vmem:[%s3071_s26 + $0x2b0] sm:$0xff] %v568_v22  ;;  %v574_v25 = vld [vmem:[%s3066_s25 + $0x580] sm:$0xff]  ;;  %571 = vst [vmem:[%s3071_s26 + $0x2b8] sm:$0xff] %v570_v23  ;;  %v576_v26 = vld [vmem:[%s3066_s25 + $0x588] sm:$0xff] }
  0x3d   : > { %573 = vst [vmem:[%s3071_s26 + $0x2c0] sm:$0xff] %v572_v24  ;;  %575 = vst [vmem:[%s3071_s26 + $0x2c8] sm:$0xff] %v574_v25  ;;  %v578_v27 = vld [vmem:[%s3066_s25 + $0x590] sm:$0xff]  ;;  %v580_v28 = vld [vmem:[%s3066_s25 + $0x598] sm:$0xff] }
  0x3e   : > { %577 = vst [vmem:[%s3071_s26 + $0x2d0] sm:$0xff] %v576_v26  ;;  %579 = vst [vmem:[%s3071_s26 + $0x2d8] sm:$0xff] %v578_v27  ;;  %v582_v29 = vld [vmem:[%s3066_s25 + $0x5a0] sm:$0xff]  ;;  %v584_v30 = vld [vmem:[%s3066_s25 + $0x5a8] sm:$0xff] }
  0x3f   : > { %581 = vst [vmem:[%s3071_s26 + $0x2e0] sm:$0xff] %v580_v28  ;;  %v586_v31 = vld [vmem:[%s3066_s25 + $0x5b0] sm:$0xff]  ;;  %583 = vst [vmem:[%s3071_s26 + $0x2e8] sm:$0xff] %v582_v29  ;;  %v588_v32 = vld [vmem:[%s3066_s25 + $0x5b8] sm:$0xff] }
  0x40   : > { %585 = vst [vmem:[%s3071_s26 + $0x2f0] sm:$0xff] %v584_v30  ;;  %587 = vst [vmem:[%s3071_s26 + $0x2f8] sm:$0xff] %v586_v31  ;;  %v590_v33 = vld [vmem:[%s3066_s25 + $0x5c0] sm:$0xff]  ;;  %v592_v34 = vld [vmem:[%s3066_s25 + $0x5c8] sm:$0xff] }
  0x41   : > { %589 = vst [vmem:[%s3071_s26 + $0x300] sm:$0xff] %v588_v32  ;;  %591 = vst [vmem:[%s3071_s26 + $0x308] sm:$0xff] %v590_v33  ;;  %v594_v35 = vld [vmem:[%s3066_s25 + $0x5d0] sm:$0xff]  ;;  %v596_v36 = vld [vmem:[%s3066_s25 + $0x5d8] sm:$0xff] }
  0x42   : > { %593 = vst [vmem:[%s3071_s26 + $0x310] sm:$0xff] %v592_v34  ;;  %v598_v37 = vld [vmem:[%s3066_s25 + $0x5e0] sm:$0xff]  ;;  %595 = vst [vmem:[%s3071_s26 + $0x318] sm:$0xff] %v594_v35  ;;  %v600_v38 = vld [vmem:[%s3066_s25 + $0x5e8] sm:$0xff] }
  0x43   : > { %597 = vst [vmem:[%s3071_s26 + $0x320] sm:$0xff] %v596_v36  ;;  %599 = vst [vmem:[%s3071_s26 + $0x328] sm:$0xff] %v598_v37  ;;  %v602_v39 = vld [vmem:[%s3066_s25 + $0x5f0] sm:$0xff]  ;;  %v604_v40 = vld [vmem:[%s3066_s25 + $0x5f8] sm:$0xff] }
  0x44   : > { %601 = vst [vmem:[%s3071_s26 + $0x330] sm:$0xff] %v600_v38  ;;  %603 = vst [vmem:[%s3071_s26 + $0x338] sm:$0xff] %v602_v39  ;;  %v606_v41 = vld [vmem:[%s3066_s25 + $0x600] sm:$0xff]  ;;  %v608_v42 = vld [vmem:[%s3066_s25 + $0x608] sm:$0xff] }
  0x45   : > { %605 = vst [vmem:[%s3071_s26 + $0x340] sm:$0xff] %v604_v40  ;;  %v610_v43 = vld [vmem:[%s3066_s25 + $0x610] sm:$0xff]  ;;  %607 = vst [vmem:[%s3071_s26 + $0x348] sm:$0xff] %v606_v41  ;;  %v612_v44 = vld [vmem:[%s3066_s25 + $0x618] sm:$0xff] }
  0x46   : > { %609 = vst [vmem:[%s3071_s26 + $0x350] sm:$0xff] %v608_v42  ;;  %611 = vst [vmem:[%s3071_s26 + $0x358] sm:$0xff] %v610_v43  ;;  %v614_v45 = vld [vmem:[%s3066_s25 + $0x620] sm:$0xff]  ;;  %v616_v46 = vld [vmem:[%s3066_s25 + $0x628] sm:$0xff] }
  0x47   : > { %613 = vst [vmem:[%s3071_s26 + $0x360] sm:$0xff] %v612_v44  ;;  %615 = vst [vmem:[%s3071_s26 + $0x368] sm:$0xff] %v614_v45  ;;  %v618_v47 = vld [vmem:[%s3066_s25 + $0x630] sm:$0xff]  ;;  %v620_v48 = vld [vmem:[%s3066_s25 + $0x638] sm:$0xff] }
  0x48   : > { %617 = vst [vmem:[%s3071_s26 + $0x370] sm:$0xff] %v616_v46  ;;  %v622_v49 = vld [vmem:[%s3066_s25 + $0x640] sm:$0xff]  ;;  %619 = vst [vmem:[%s3071_s26 + $0x378] sm:$0xff] %v618_v47  ;;  %v624_v50 = vld [vmem:[%s3066_s25 + $0x648] sm:$0xff] }
  0x49   : > { %621 = vst [vmem:[%s3071_s26 + $0x380] sm:$0xff] %v620_v48  ;;  %623 = vst [vmem:[%s3071_s26 + $0x388] sm:$0xff] %v622_v49  ;;  %v626_v51 = vld [vmem:[%s3066_s25 + $0x650] sm:$0xff] }
  0x4a   : > { %625 = vst [vmem:[%s3071_s26 + $0x390] sm:$0xff] %v624_v50  ;;  %627 = vst [vmem:[%s3071_s26 + $0x398] sm:$0xff] %v626_v51 }
  0x4b PF: > { %p2232_p5 = scmp.ge.s32.totalorder %s3008_s14, 1  ;;  %p632_p6 = scmp.lt.s32.totalorder %s3008_s14, 3 }
  0x4d   : > { %p633_p7 = pnand %p2232_p5, %p632_p6 }
  0x4f   : > { %636 = sbr.rel (%p633_p7) target bundleno = 523 (0x20b), region = 66 }
  0x54   : > { %v670_v52 = vld [vmem:[%s4175_s1 + $0x18] sm:$0x7]  ;;  %vm788_vm0 = vcmask 1042432   ;;  %v3010_v53 = vmov 0.0   ;;  %v669_v54 = vld [vmem:[%s4175_s1 + $0x10] sm:$0xff]  ;;  %s639_s4 = sand.u32 1, %s3000_s12  }
  0x55   : > { %2576 = vmatprep.subr.mxu0 %v3010_v53  ;;  %2671 = vmatprep.subr.mxu1 %v3010_v53  ;;  %s2958_s5 = smul.u32 928, %s639_s4  ;;  %v668_v55 = vld [vmem:[%s4175_s1 + $0x8] sm:$0xff]  ;;  %v667_v56 = vld [vmem:[%s4175_s1] sm:$0xff]  ;;  %vm700_vm1 = vcmask 220160   ;;  %vm3011_vm2 = vmmov 0   ;;  %p662_p8 = scmp.lt.s32.totalorder %s2227_s15, 1 }
  0x56   : > { %2577 = vmatpush3.msk.msra.mxu0 %vm788_vm0, %v670_v52  ;;  %2672 = vmatpush3.msk.msra.mxu1 %vm788_vm0, %v670_v52  ;;  %vm2135_vm3 = vcmask 261120   ;;  %vm2164_vm4 = vcmask 253952  }
  0x57   : > { %2578 = vmatprep.subr.mxu0 %v3010_v53  ;;  %2673 = vmatprep.subr.mxu1 %v3010_v53  ;;  %s3325_s10 = scalar_lea.vmem [#allocation2], %s2958_s5  ;;  %s4235_s15 = smov (!%p662_p8, %s2227_s15), 1 }
  0x58   : > { %2579 = vmatpush3.msra.mxu0 %v669_v54  ;;  %2674 = vmatpush3.msra.mxu1 %v669_v54  ;;  %v671_v57 = vld [vmem:[%s3325_s10] sm:$0xff]  ;;  %v2264_v58 = vld [vmem:[%s3325_s10 + $0xe8] sm:$0xff]  ;;  %v2265_v60 = vld [vmem:[%s3325_s10 + $0xf0] sm:$0xff]  ;;  %s2959_s11 = smul.u32 232, %s4235_s15 }
  0x59   : > { %2580 = vmatprep.subr.mxu0 %v3010_v53  ;;  %2675 = vmatprep.subr.mxu1 %v3010_v53  ;;  %v672_v59 = vld [vmem:[%s3325_s10 + $0x8] sm:$0xff]  ;;  %v673_v61 = vld [vmem:[%s3325_s10 + $0x10] sm:$0xff]  ;;  %v2266_v62 = vld [vmem:[%s3325_s10 + $0xf8] sm:$0xff] }
  0x5a   : > { %2581 = vmatpush3.msra.mxu0 %v668_v55  ;;  %2676 = vmatpush3.msra.mxu1 %v668_v55  ;;  %v674_v63 = vld [vmem:[%s3325_s10 + $0x18] sm:$0xff]  ;;  %v2267_v0 = vld [vmem:[%s3325_s10 + $0x100] sm:$0xff]  ;;  %v2268_v2 = vld [vmem:[%s3325_s10 + $0x108] sm:$0xff]  ;;  %s3996_s15 = scalar_lea.vmem %s4177_s3, %s2959_s11 }
  0x5b   : > { %2582 = vmatprep.subr.mxu0 %v3010_v53  ;;  %2584 = vmatprep.mubr.msk.f32.mxu0 %vm3011_vm2, %v3010_v53  ;;  %v675_v1 = vld [vmem:[%s3325_s10 + $0x20] sm:$0xff]  ;;  %v676_v3 = vld [vmem:[%s3325_s10 + $0x28] sm:$0xff]  ;;  %v2269_v4 = vld [vmem:[%s3325_s10 + $0x110] sm:$0xff] }
  0x5c   : > { %2583 = vmatpush3.msra.mxu0 %v667_v56  ;;  %2677 = vmatprep.subr.mxu1 %v3010_v53  ;;  %v677_v5 = vld [vmem:[%s3325_s10 + $0x30] sm:$0xff]  ;;  %v2270_v6 = vld [vmem:[%s3325_s10 + $0x118] sm:$0xff]  ;;  %v2271_v8 = vld [vmem:[%s3325_s10 + $0x120] sm:$0xff] }
  0x5d   : > { %2585 = vmatmul.mubr.msk.f32.vlgmr.msra.gmra.mxu0 %vm700_vm1, %v671_v57  ;;  %2678 = vmatpush3.msra.mxu1 %v667_v56  ;;  %v678_v7 = vld [vmem:[%s3325_s10 + $0x38] sm:$0xff]  ;;  %v679_v9 = vld [vmem:[%s3325_s10 + $0x40] sm:$0xff]  ;;  %v2272_v10 = vld [vmem:[%s3325_s10 + $0x128] sm:$0xff] }
  0x5e   : > { %2679 = vmatprep.mubr.msk.f32.mxu1 %vm3011_vm2, %v3010_v53  ;;  %2766 = vmatprep.subr.mxu0 %v3010_v53  ;;  %v680_v11 = vld [vmem:[%s3325_s10 + $0x48] sm:$0xff]  ;;  %v2273_v12 = vld [vmem:[%s3325_s10 + $0x130] sm:$0xff]  ;;  %v2274_v14 = vld [vmem:[%s3325_s10 + $0x138] sm:$0xff] }
  0x5f   : > { %2680 = vmatmul.mubr.msk.f32.vlgmr.msra.gmra.mxu1 %vm700_vm1, %v2264_v58  ;;  %2767 = vmatpush3.msk.msra.mxu0 %vm788_vm0, %v670_v52  ;;  %v681_v13 = vld [vmem:[%s3325_s10 + $0x50] sm:$0xff]  ;;  %v682_v15 = vld [vmem:[%s3325_s10 + $0x58] sm:$0xff]  ;;  %v2275_v16 = vld [vmem:[%s3325_s10 + $0x140] sm:$0xff] }
  0x60   : > { %2861 = vmatprep.subr.mxu1 %v3010_v53  ;;  %2587 = vmatprep.mubr.msk.f32.mxu0 %vm3011_vm2, %v3010_v53  ;;  %v683_v17 = vld [vmem:[%s3325_s10 + $0x60] sm:$0xff]  ;;  %v2276_v18 = vld [vmem:[%s3325_s10 + $0x148] sm:$0xff]  ;;  %v2277_v20 = vld [vmem:[%s3325_s10 + $0x150] sm:$0xff] }
  0x61   : > { %2862 = vmatpush3.msk.msra.mxu1 %vm788_vm0, %v670_v52  ;;  %2588 = vmatmul.mubr.msk.f32.gmra.mxu0 %vm700_vm1, %v672_v59  ;;  %v684_v19 = vld [vmem:[%s3325_s10 + $0x68] sm:$0xff]  ;;  %v685_v21 = vld [vmem:[%s3325_s10 + $0x70] sm:$0xff]  ;;  %v2278_v22 = vld [vmem:[%s3325_s10 + $0x158] sm:$0xff] }
  0x62   : > { %2682 = vmatprep.mubr.msk.f32.mxu1 %vm3011_vm2, %v3010_v53  ;;  %2590 = vmatprep.mubr.msk.f32.mxu0 %vm3011_vm2, %v3010_v53  ;;  %v686_v23 = vld [vmem:[%s3325_s10 + $0x78] sm:$0xff]  ;;  %v2279_v24 = vld [vmem:[%s3325_s10 + $0x160] sm:$0xff]  ;;  %v2280_v26 = vld [vmem:[%s3325_s10 + $0x168] sm:$0xff] }
  0x63   : > { %2683 = vmatmul.mubr.msk.f32.gmra.mxu1 %vm700_vm1, %v2265_v60  ;;  %2768 = vmatprep.subr.mxu0 %v3010_v53  ;;  %v687_v25 = vld [vmem:[%s3325_s10 + $0x80] sm:$0xff]  ;;  %v688_v27 = vld [vmem:[%s3325_s10 + $0x88] sm:$0xff]  ;;  %v2281_v28 = vld [vmem:[%s3325_s10 + $0x170] sm:$0xff] }
  0x64   : > { %2685 = vmatprep.mubr.msk.f32.mxu1 %vm3011_vm2, %v3010_v53  ;;  %2769 = vmatpush3.msra.mxu0 %v669_v54  ;;  %v689_v29 = vld [vmem:[%s3325_s10 + $0x90] sm:$0xff]  ;;  %v2282_v30 = vld [vmem:[%s3325_s10 + $0x178] sm:$0xff]  ;;  %v2283_v32 = vld [vmem:[%s3325_s10 + $0x180] sm:$0xff] }
  0x65   : > { %2591 = vmatmul.mubr.msk.f32.gmra.mxu0 %vm700_vm1, %v673_v61  ;;  %2863 = vmatprep.subr.mxu1 %v3010_v53  ;;  %v690_v31 = vld [vmem:[%s3325_s10 + $0x98] sm:$0xff]  ;;  %v691_v33 = vld [vmem:[%s3325_s10 + $0xa0] sm:$0xff]  ;;  %v2284_v34 = vld [vmem:[%s3325_s10 + $0x188] sm:$0xff] }
  0x66   : > { %2593 = vmatprep.mubr.msk.f32.mxu0 %vm3011_vm2, %v3010_v53  ;;  %2864 = vmatpush3.msra.mxu1 %v669_v54  ;;  %v692_v35 = vld [vmem:[%s3325_s10 + $0xa8] sm:$0xff]  ;;  %v2285_v36 = vld [vmem:[%s3325_s10 + $0x190] sm:$0xff]  ;;  %v2286_v38 = vld [vmem:[%s3325_s10 + $0x198] sm:$0xff] }
  0x67   : > { %2686 = vmatmul.mubr.msk.f32.gmra.mxu1 %vm700_vm1, %v2266_v62  ;;  %2770 = vmatprep.subr.mxu0 %v3010_v53  ;;  %v693_v37 = vld [vmem:[%s3325_s10 + $0xb0] sm:$0xff]  ;;  %v694_v39 = vld [vmem:[%s3325_s10 + $0xb8] sm:$0xff]  ;;  %v2287_v40 = vld [vmem:[%s3325_s10 + $0x1a0] sm:$0xff] }
  0x68   : > { %2688 = vmatprep.mubr.msk.f32.mxu1 %vm3011_vm2, %v3010_v53  ;;  %2771 = vmatpush3.msra.mxu0 %v668_v55  ;;  %v695_v41 = vld [vmem:[%s3325_s10 + $0xc0] sm:$0xff]  ;;  %v2288_v42 = vld [vmem:[%s3325_s10 + $0x1a8] sm:$0xff]  ;;  %v2289_v44 = vld [vmem:[%s3325_s10 + $0x1b0] sm:$0xff] }
  0x69   : > { %2594 = vmatmul.mubr.msk.f32.gmra.mxu0 %vm700_vm1, %v674_v63  ;;  %2865 = vmatprep.subr.mxu1 %v3010_v53  ;;  %v696_v43 = vld [vmem:[%s3325_s10 + $0xc8] sm:$0xff]  ;;  %v697_v45 = vld [vmem:[%s3325_s10 + $0xd0] sm:$0xff]  ;;  %v2290_v46 = vld [vmem:[%s3325_s10 + $0x1b8] sm:$0xff] }
  0x6a   : > { %2596 = vmatprep.mubr.msk.f32.mxu0 %vm3011_vm2, %v3010_v53  ;;  %2866 = vmatpush3.msra.mxu1 %v668_v55  ;;  %v698_v47 = vld [vmem:[%s3325_s10 + $0xd8] sm:$0xff]  ;;  %v2291_v48 = vld [vmem:[%s3325_s10 + $0x1c0] sm:$0xff]  ;;  %v2292_v50 = vld [vmem:[%s3325_s10 + $0x1c8] sm:$0x1] }
  0x6b   : > { %2689 = vmatmul.mubr.msk.f32.gmra.mxu1 %vm700_vm1, %v2267_v0  ;;  %2772 = vmatprep.subr.mxu0 %v3010_v53  ;;  %v699_v49 = vld [vmem:[%s3325_s10 + $0xe0] sm:$0x1]  ;;  %v2323_v51 = vld [vmem:[%s3325_s10 + $0x1d0] sm:$0xff]  ;;  %v2382_v52 = vld [vmem:[%s3325_s10 + $0x2b8] sm:$0xff] }
  0x6c   : > { %2691 = vmatprep.mubr.msk.f32.mxu1 %vm3011_vm2, %v3010_v53  ;;  %2773 = vmatpush3.msra.mxu0 %v667_v56  ;;  %v2324_v54 = vld [vmem:[%s3325_s10 + $0x1d8] sm:$0xff]  ;;  %v2383_v55 = vld [vmem:[%s3325_s10 + $0x2c0] sm:$0xff]  ;;  %v2384_v57 = vld [vmem:[%s3325_s10 + $0x2c8] sm:$0xff] }
  0x6d   : > { %2597 = vmatmul.mubr.msk.f32.gmra.mxu0 %vm700_vm1, %v675_v1  ;;  %2867 = vmatprep.subr.mxu1 %v3010_v53  ;;  %v2326_v58 = vld [vmem:[%s3325_s10 + $0x1e8] sm:$0xff]  ;;  %v2385_v59 = vld [vmem:[%s3325_s10 + $0x2d0] sm:$0xff]  ;;  %v2386_v61 = vld [vmem:[%s3325_s10 + $0x2d8] sm:$0xff] }
  0x6e   : > { %2599 = vmatprep.mubr.msk.f32.mxu0 %vm3011_vm2, %v3010_v53  ;;  %2868 = vmatpush3.msra.mxu1 %v667_v56  ;;  %v2325_v56 = vld [vmem:[%s3325_s10 + $0x1e0] sm:$0xff]  ;;  %v2327_v60 = vld [vmem:[%s3325_s10 + $0x1f0] sm:$0xff]  ;;  %v2328_v62 = vld [vmem:[%s3325_s10 + $0x1f8] sm:$0xff] }
  0x6f   : > { %2692 = vmatmul.mubr.msk.f32.gmra.mxu1 %vm700_vm1, %v2268_v2  ;;  %v2387_v63 = vld [vmem:[%s3325_s10 + $0x2e0] sm:$0xff]  ;;  %v2388_v1 = vld [vmem:[%s3325_s10 + $0x2e8] sm:$0xff] }
  0x70   : > { %2694 = vmatprep.mubr.msk.f32.mxu1 %vm3011_vm2, %v3010_v53  ;;  %v2329_v0 = vld [vmem:[%s3325_s10 + $0x200] sm:$0xff]  ;;  %v2330_v2 = vld [vmem:[%s3325_s10 + $0x208] sm:$0xff] }
  0x71   : > { %2600 = vmatmul.mubr.msk.f32.gmra.mxu0 %vm700_vm1, %v676_v3  ;;  %v2389_v3 = vld [vmem:[%s3325_s10 + $0x2f0] sm:$0xff] }
  0x72   : > { %2602 = vmatprep.mubr.msk.f32.mxu0 %vm3011_vm2, %v3010_v53 }
  0x73   : > { %2695 = vmatmul.mubr.msk.f32.gmra.mxu1 %vm700_vm1, %v2269_v4  ;;  %v2331_v4 = vld [vmem:[%s3325_s10 + $0x210] sm:$0xff] }
  0x74   : > { %2697 = vmatprep.mubr.msk.f32.mxu1 %vm3011_vm2, %v3010_v53 }
  0x75   : > { %2603 = vmatmul.mubr.msk.f32.gmra.mxu0 %vm700_vm1, %v677_v5  ;;  %v2390_v5 = vld [vmem:[%s3325_s10 + $0x2f8] sm:$0xff] }
  0x76   : > { %2605 = vmatprep.mubr.msk.f32.mxu0 %vm3011_vm2, %v3010_v53 }
  0x77   : > { %2698 = vmatmul.mubr.msk.f32.gmra.mxu1 %vm700_vm1, %v2270_v6  ;;  %v2332_v6 = vld [vmem:[%s3325_s10 + $0x218] sm:$0xff] }
  0x78   : > { %2700 = vmatprep.mubr.msk.f32.mxu1 %vm3011_vm2, %v3010_v53 }
  0x79   : > { %2606 = vmatmul.mubr.msk.f32.gmra.mxu0 %vm700_vm1, %v678_v7  ;;  %v2391_v7 = vld [vmem:[%s3325_s10 + $0x300] sm:$0xff] }
  0x7a   : > { %2608 = vmatprep.mubr.msk.f32.mxu0 %vm3011_vm2, %v3010_v53 }
  0x7b   : > { %2701 = vmatmul.mubr.msk.f32.gmra.mxu1 %vm700_vm1, %v2271_v8  ;;  %v2333_v8 = vld [vmem:[%s3325_s10 + $0x220] sm:$0xff] }
  0x7c   : > { %2703 = vmatprep.mubr.msk.f32.mxu1 %vm3011_vm2, %v3010_v53 }
  0x7d   : > { %2609 = vmatmul.mubr.msk.f32.gmra.mxu0 %vm700_vm1, %v679_v9  ;;  %v2392_v9 = vld [vmem:[%s3325_s10 + $0x308] sm:$0xff] }
  0x7e   : > { %2611 = vmatprep.mubr.msk.f32.mxu0 %vm3011_vm2, %v3010_v53 }
  0x7f   : > { %2704 = vmatmul.mubr.msk.f32.gmra.mxu1 %vm700_vm1, %v2272_v10  ;;  %v2334_v10 = vld [vmem:[%s3325_s10 + $0x228] sm:$0xff] }
  0x80   : > { %2706 = vmatprep.mubr.msk.f32.mxu1 %vm3011_vm2, %v3010_v53 }
  0x81   : > { %2612 = vmatmul.mubr.msk.f32.gmra.mxu0 %vm700_vm1, %v680_v11  ;;  %v2393_v11 = vld [vmem:[%s3325_s10 + $0x310] sm:$0xff] }
  0x82   : > { %2614 = vmatprep.mubr.msk.f32.mxu0 %vm3011_vm2, %v3010_v53 }
  0x83   : > { %2707 = vmatmul.mubr.msk.f32.gmra.mxu1 %vm700_vm1, %v2273_v12  ;;  %v2335_v12 = vld [vmem:[%s3325_s10 + $0x230] sm:$0xff] }
  0x84   : > { %2709 = vmatprep.mubr.msk.f32.mxu1 %vm3011_vm2, %v3010_v53 }
  0x85   : > { %2615 = vmatmul.mubr.msk.f32.gmra.mxu0 %vm700_vm1, %v681_v13  ;;  %v2394_v13 = vld [vmem:[%s3325_s10 + $0x318] sm:$0xff] }
  0x86   : > { %2617 = vmatprep.mubr.msk.f32.mxu0 %vm3011_vm2, %v3010_v53 }
  0x87   : > { %2710 = vmatmul.mubr.msk.f32.gmra.mxu1 %vm700_vm1, %v2274_v14  ;;  %v2336_v14 = vld [vmem:[%s3325_s10 + $0x238] sm:$0xff] }
  0x88   : > { %2712 = vmatprep.mubr.msk.f32.mxu1 %vm3011_vm2, %v3010_v53 }
  0x89   : > { %2618 = vmatmul.mubr.msk.f32.gmra.mxu0 %vm700_vm1, %v682_v15  ;;  %v2395_v15 = vld [vmem:[%s3325_s10 + $0x320] sm:$0xff] }
  0x8a   : > { %2620 = vmatprep.mubr.msk.f32.mxu0 %vm3011_vm2, %v3010_v53 }
  0x8b   : > { %2713 = vmatmul.mubr.msk.f32.gmra.mxu1 %vm700_vm1, %v2275_v16  ;;  %v2337_v16 = vld [vmem:[%s3325_s10 + $0x240] sm:$0xff] }
  0x8c   : > { %2715 = vmatprep.mubr.msk.f32.mxu1 %vm3011_vm2, %v3010_v53 }
  0x8d   : > { %2621 = vmatmul.mubr.msk.f32.gmra.mxu0 %vm700_vm1, %v683_v17  ;;  %v2396_v17 = vld [vmem:[%s3325_s10 + $0x328] sm:$0xff] }
  0x8e   : > { %2623 = vmatprep.mubr.msk.f32.mxu0 %vm3011_vm2, %v3010_v53 }
  0x8f   : > { %2716 = vmatmul.mubr.msk.f32.gmra.mxu1 %vm700_vm1, %v2276_v18  ;;  %v2338_v18 = vld [vmem:[%s3325_s10 + $0x248] sm:$0xff] }
  0x90   : > { %2718 = vmatprep.mubr.msk.f32.mxu1 %vm3011_vm2, %v3010_v53 }
  0x91   : > { %2624 = vmatmul.mubr.msk.f32.gmra.mxu0 %vm700_vm1, %v684_v19  ;;  %v2397_v19 = vld [vmem:[%s3325_s10 + $0x330] sm:$0xff] }
  0x92   : > { %2626 = vmatprep.mubr.msk.f32.mxu0 %vm3011_vm2, %v3010_v53 }
  0x93   : > { %2719 = vmatmul.mubr.msk.f32.gmra.mxu1 %vm700_vm1, %v2277_v20  ;;  %v2339_v20 = vld [vmem:[%s3325_s10 + $0x250] sm:$0xff] }
  0x94   : > { %2721 = vmatprep.mubr.msk.f32.mxu1 %vm3011_vm2, %v3010_v53 }
  0x95   : > { %2627 = vmatmul.mubr.msk.f32.gmra.mxu0 %vm700_vm1, %v685_v21  ;;  %v2398_v21 = vld [vmem:[%s3325_s10 + $0x338] sm:$0xff] }
  0x96   : > { %2629 = vmatprep.mubr.msk.f32.mxu0 %vm3011_vm2, %v3010_v53 }
  0x97   : > { %2722 = vmatmul.mubr.msk.f32.gmra.mxu1 %vm700_vm1, %v2278_v22  ;;  %v2340_v22 = vld [vmem:[%s3325_s10 + $0x258] sm:$0xff] }
  0x98   : > { %2724 = vmatprep.mubr.msk.f32.mxu1 %vm3011_vm2, %v3010_v53 }
  0x99   : > { %2630 = vmatmul.mubr.msk.f32.gmra.mxu0 %vm700_vm1, %v686_v23  ;;  %v2399_v23 = vld [vmem:[%s3325_s10 + $0x340] sm:$0xff] }
  0x9a   : > { %2632 = vmatprep.mubr.msk.f32.mxu0 %vm3011_vm2, %v3010_v53 }
  0x9b   : > { %2725 = vmatmul.mubr.msk.f32.gmra.mxu1 %vm700_vm1, %v2279_v24  ;;  %v2341_v24 = vld [vmem:[%s3325_s10 + $0x260] sm:$0xff] }
  0x9c   : > { %2727 = vmatprep.mubr.msk.f32.mxu1 %vm3011_vm2, %v3010_v53 }
  0x9d   : > { %2633 = vmatmul.mubr.msk.f32.gmra.mxu0 %vm700_vm1, %v687_v25  ;;  %v2400_v25 = vld [vmem:[%s3325_s10 + $0x348] sm:$0xff] }
  0x9e   : > { %2635 = vmatprep.mubr.msk.f32.mxu0 %vm3011_vm2, %v3010_v53 }
  0x9f   : > { %2728 = vmatmul.mubr.msk.f32.gmra.mxu1 %vm700_vm1, %v2280_v26  ;;  %v2342_v26 = vld [vmem:[%s3325_s10 + $0x268] sm:$0xff] }
  0xa0   : > { %2730 = vmatprep.mubr.msk.f32.mxu1 %vm3011_vm2, %v3010_v53 }
  0xa1   : > { %2636 = vmatmul.mubr.msk.f32.gmra.mxu0 %vm700_vm1, %v688_v27  ;;  %v2401_v27 = vld [vmem:[%s3325_s10 + $0x350] sm:$0xff] }
  0xa2   : > { %2638 = vmatprep.mubr.msk.f32.mxu0 %vm3011_vm2, %v3010_v53 }
  0xa3   : > { %2731 = vmatmul.mubr.msk.f32.gmra.mxu1 %vm700_vm1, %v2281_v28 }
  0xa4   : > { %2733 = vmatprep.mubr.msk.f32.mxu1 %vm3011_vm2, %v3010_v53 }
  0xa5   : > { %2639 = vmatmul.mubr.msk.f32.gmra.mxu0 %vm700_vm1, %v689_v29  ;;  %v2343_v29 = vld [vmem:[%s3325_s10 + $0x270] sm:$0xff] }
  0xa6   : > { %2641 = vmatprep.mubr.msk.f32.mxu0 %vm3011_vm2, %v3010_v53 }
  0xa7   : > { %2734 = vmatmul.mubr.msk.f32.gmra.mxu1 %vm700_vm1, %v2282_v30 }
  0xa8   : > { %2736 = vmatprep.mubr.msk.f32.mxu1 %vm3011_vm2, %v3010_v53 }
  0xa9   : > { %2642 = vmatmul.mubr.msk.f32.gmra.mxu0 %vm700_vm1, %v690_v31 }
  0xaa   : > { %2644 = vmatprep.mubr.msk.f32.mxu0 %vm3011_vm2, %v3010_v53 }
  0xab   : > { %2737 = vmatmul.mubr.msk.f32.gmra.mxu1 %vm700_vm1, %v2283_v32 }
  0xac   : > { %2739 = vmatprep.mubr.msk.f32.mxu1 %vm3011_vm2, %v3010_v53 }
  0xad   : > { %2645 = vmatmul.mubr.msk.f32.gmra.mxu0 %vm700_vm1, %v691_v33  ;;  %v2402_v33 = vld [vmem:[%s3325_s10 + $0x358] sm:$0xff] }
  0xae   : > { %2647 = vmatprep.mubr.msk.f32.mxu0 %vm3011_vm2, %v3010_v53 }
  0xaf   : > { %2740 = vmatmul.mubr.msk.f32.gmra.mxu1 %vm700_vm1, %v2284_v34 }
  0xb0   : > { %2742 = vmatprep.mubr.msk.f32.mxu1 %vm3011_vm2, %v3010_v53 }
  0xb1   : > { %2648 = vmatmul.mubr.msk.f32.gmra.mxu0 %vm700_vm1, %v692_v35 }
  0xb2   : > { %2650 = vmatprep.mubr.msk.f32.mxu0 %vm3011_vm2, %v3010_v53 }
  0xb3   : > { %2743 = vmatmul.mubr.msk.f32.gmra.mxu1 %vm700_vm1, %v2285_v36  ;;  %v2344_v36 = vld [vmem:[%s3325_s10 + $0x278] sm:$0xff] }
  0xb4   : > { %2745 = vmatprep.mubr.msk.f32.mxu1 %vm3011_vm2, %v3010_v53 }
  0xb5   : > { %2651 = vmatmul.mubr.msk.f32.gmra.mxu0 %vm700_vm1, %v693_v37 }
  0xb6   : > { %2653 = vmatprep.mubr.msk.f32.mxu0 %vm3011_vm2, %v3010_v53 }
  0xb7   : > { %2746 = vmatmul.mubr.msk.f32.gmra.mxu1 %vm700_vm1, %v2286_v38 }
  0xb8   : > { %2748 = vmatprep.mubr.msk.f32.mxu1 %vm3011_vm2, %v3010_v53 }
  0xb9   : > { %2654 = vmatmul.mubr.msk.f32.gmra.mxu0 %vm700_vm1, %v694_v39 }
  0xba   : > { %2656 = vmatprep.mubr.msk.f32.mxu0 %vm3011_vm2, %v3010_v53 }
  0xbb   : > { %2749 = vmatmul.mubr.msk.f32.gmra.mxu1 %vm700_vm1, %v2287_v40  ;;  %v2403_v40 = vld [vmem:[%s3325_s10 + $0x360] sm:$0xff] }
  0xbc   : > { %2751 = vmatprep.mubr.msk.f32.mxu1 %vm3011_vm2, %v3010_v53 }
  0xbd   : > { %2657 = vmatmul.mubr.msk.f32.gmra.mxu0 %vm700_vm1, %v695_v41 }
  0xbe   : > { %2659 = vmatprep.mubr.msk.f32.mxu0 %vm3011_vm2, %v3010_v53 }
  0xbf   : > { %2752 = vmatmul.mubr.msk.f32.gmra.mxu1 %vm700_vm1, %v2288_v42 }
  0xc0   : > { %2754 = vmatprep.mubr.msk.f32.mxu1 %vm3011_vm2, %v3010_v53 }
  0xc1   : > { %2660 = vmatmul.mubr.msk.f32.gmra.mxu0 %vm700_vm1, %v696_v43  ;;  %v2345_v43 = vld [vmem:[%s3325_s10 + $0x280] sm:$0xff] }
  0xc2   : > { %2662 = vmatprep.mubr.msk.f32.mxu0 %vm3011_vm2, %v3010_v53 }
  0xc3   : > { %2755 = vmatmul.mubr.msk.f32.gmra.mxu1 %vm700_vm1, %v2289_v44 }
  0xc4   : > { %2757 = vmatprep.mubr.msk.f32.mxu1 %vm3011_vm2, %v3010_v53 }
  0xc5   : > { %2663 = vmatmul.mubr.msk.f32.gmra.mxu0 %vm700_vm1, %v697_v45 }
  0xc6   : > { %2665 = vmatprep.mubr.msk.f32.mxu0 %vm3011_vm2, %v3010_v53 }
  0xc7   : > { %2758 = vmatmul.mubr.msk.f32.gmra.mxu1 %vm700_vm1, %v2290_v46 }
  0xc8   : > { %2760 = vmatprep.mubr.msk.f32.mxu1 %vm3011_vm2, %v3010_v53 }
  0xc9   : > { %2666 = vmatmul.mubr.msk.f32.gmra.mxu0 %vm700_vm1, %v698_v47  ;;  %v2404_v47 = vld [vmem:[%s3325_s10 + $0x368] sm:$0xff] }
  0xca   : > { %2668 = vmatprep.mubr.msk.f32.mxu0 %vm3011_vm2, %v3010_v53 }
  0xcb   : > { %2761 = vmatmul.mubr.msk.f32.gmra.mxu1 %vm700_vm1, %v2291_v48 }
  0xcc   : > { %2763 = vmatprep.mubr.msk.f32.mxu1 %vm3011_vm2, %v3010_v53 }
  0xcd   : > { %2669 = vmatmul.mubr.msk.f32.gmra.mxu0 %vm700_vm1, %v699_v49 }
  0xce   : > { %2774 = vmatprep.mubr.msk.f32.mxu0 %vm3011_vm2, %v3010_v53 }
  0xcf   : > { %2764 = vmatmul.mubr.msk.f32.gmra.mxu1 %vm700_vm1, %v2292_v50  ;;  %v2346_v50 = vld [vmem:[%s3325_s10 + $0x288] sm:$0xff] }
  0xd0   : > { %2869 = vmatprep.mubr.msk.f32.mxu1 %vm3011_vm2, %v3010_v53 }
  0xd1   : > { %2775 = vmatmul.mubr.msk.f32.vlgmr.msra.gmra.mxu0 %vm700_vm1, %v2323_v51 }
  0xd2   : > { %2777 = vmatprep.mubr.msk.f32.mxu0 %vm3011_vm2, %v3010_v53 }
  0xd3   : > { %2870 = vmatmul.mubr.msk.f32.vlgmr.msra.gmra.mxu1 %vm700_vm1, %v2382_v52 }
  0xd4   : > { %2872 = vmatprep.mubr.msk.f32.mxu1 %vm3011_vm2, %v3010_v53 }
  0xd5   : > { %2778 = vmatmul.mubr.msk.f32.gmra.mxu0 %vm700_vm1, %v2324_v54 }
  0xd6   : > { %2780 = vmatprep.mubr.msk.f32.mxu0 %vm3011_vm2, %v3010_v53 }
  0xd7   : > { %2873 = vmatmul.mubr.msk.f32.gmra.mxu1 %vm700_vm1, %v2383_v55  ;;  %v2405_v55 = vld [vmem:[%s3325_s10 + $0x370] sm:$0xff] }
  0xd8   : > { %2875 = vmatprep.mubr.msk.f32.mxu1 %vm3011_vm2, %v3010_v53 }
  0xd9   : > { %2781 = vmatmul.mubr.msk.f32.gmra.mxu0 %vm700_vm1, %v2325_v56 }
  0xda   : > { %2783 = vmatprep.mubr.msk.f32.mxu0 %vm3011_vm2, %v3010_v53 }
  0xdb   : > { %2876 = vmatmul.mubr.msk.f32.gmra.mxu1 %vm700_vm1, %v2384_v57 }
  0xdc   : > { %2878 = vmatprep.mubr.msk.f32.mxu1 %vm3011_vm2, %v3010_v53 }
  0xdd   : > { %2784 = vmatmul.mubr.msk.f32.gmra.mxu0 %vm700_vm1, %v2326_v58  ;;  %v2347_v58 = vld [vmem:[%s3325_s10 + $0x290] sm:$0xff] }
  0xde   : > { %2786 = vmatprep.mubr.msk.f32.mxu0 %vm3011_vm2, %v3010_v53 }
  0xdf   : > { %2879 = vmatmul.mubr.msk.f32.gmra.mxu1 %vm700_vm1, %v2385_v59 }
  0xe0   : > { %2881 = vmatprep.mubr.msk.f32.mxu1 %vm3011_vm2, %v3010_v53 }
  0xe1   : > { %2787 = vmatmul.mubr.msk.f32.gmra.mxu0 %vm700_vm1, %v2327_v60 }
  0xe2   : > { %2789 = vmatprep.mubr.msk.f32.mxu0 %vm3011_vm2, %v3010_v53 }
  0xe3   : > { %2882 = vmatmul.mubr.msk.f32.gmra.mxu1 %vm700_vm1, %v2386_v61 }
  0xe4   : > { %2884 = vmatprep.mubr.msk.f32.mxu1 %vm3011_vm2, %v3010_v53 }
  0xe5   : > { %2790 = vmatmul.mubr.msk.f32.gmra.mxu0 %vm700_vm1, %v2328_v62  ;;  %v2406_v62 = vld [vmem:[%s3325_s10 + $0x378] sm:$0xff] }
  0xe6   : > { %2792 = vmatprep.mubr.msk.f32.mxu0 %vm3011_vm2, %v3010_v53 }
  0xe7   : > { %2885 = vmatmul.mubr.msk.f32.gmra.mxu1 %vm700_vm1, %v2387_v63 }
  0xe8   : > { %2887 = vmatprep.mubr.msk.f32.mxu1 %vm3011_vm2, %v3010_v53 }
  0xe9   : > { %2793 = vmatmul.mubr.msk.f32.gmra.mxu0 %vm700_vm1, %v2329_v0 }
  0xea   : > { %2795 = vmatprep.mubr.msk.f32.mxu0 %vm3011_vm2, %v3010_v53 }
  0xeb   : > { %2888 = vmatmul.mubr.msk.f32.gmra.mxu1 %vm700_vm1, %v2388_v1  ;;  %v2348_v1 = vld [vmem:[%s3325_s10 + $0x298] sm:$0xff] }
  0xec   : > { %2890 = vmatprep.mubr.msk.f32.mxu1 %vm3011_vm2, %v3010_v53 }
  0xed   : > { %2796 = vmatmul.mubr.msk.f32.gmra.mxu0 %vm700_vm1, %v2330_v2 }
  0xee   : > { %2798 = vmatprep.mubr.msk.f32.mxu0 %vm3011_vm2, %v3010_v53 }
  0xef   : > { %2891 = vmatmul.mubr.msk.f32.gmra.mxu1 %vm700_vm1, %v2389_v3 }
  0xf0   : > { %2893 = vmatprep.mubr.msk.f32.mxu1 %vm3011_vm2, %v3010_v53 }
  0xf1   : > { %2799 = vmatmul.mubr.msk.f32.gmra.mxu0 %vm700_vm1, %v2331_v4 }
  0xf2   : > { %2801 = vmatprep.mubr.msk.f32.mxu0 %vm3011_vm2, %v3010_v53 }
  0xf3   : > { %2894 = vmatmul.mubr.msk.f32.gmra.mxu1 %vm700_vm1, %v2390_v5  ;;  %v2407_v5 = vld [vmem:[%s3325_s10 + $0x380] sm:$0xff] }
  0xf4   : > { %2896 = vmatprep.mubr.msk.f32.mxu1 %vm3011_vm2, %v3010_v53 }
  0xf5   : > { %2802 = vmatmul.mubr.msk.f32.gmra.mxu0 %vm700_vm1, %v2332_v6 }
  0xf6   : > { %2804 = vmatprep.mubr.msk.f32.mxu0 %vm3011_vm2, %v3010_v53 }
  0xf7   : > { %2897 = vmatmul.mubr.msk.f32.gmra.mxu1 %vm700_vm1, %v2391_v7 }
  0xf8   : > { %2899 = vmatprep.mubr.msk.f32.mxu1 %vm3011_vm2, %v3010_v53 }
  0xf9   : > { %2805 = vmatmul.mubr.msk.f32.gmra.mxu0 %vm700_vm1, %v2333_v8  ;;  %v2349_v8 = vld [vmem:[%s3325_s10 + $0x2a0] sm:$0xff] }
  0xfa   : > { %2807 = vmatprep.mubr.msk.f32.mxu0 %vm3011_vm2, %v3010_v53 }
  0xfb   : > { %2900 = vmatmul.mubr.msk.f32.gmra.mxu1 %vm700_vm1, %v2392_v9 }
  0xfc   : > { %2902 = vmatprep.mubr.msk.f32.mxu1 %vm3011_vm2, %v3010_v53 }
  0xfd   : > { %2808 = vmatmul.mubr.msk.f32.gmra.mxu0 %vm700_vm1, %v2334_v10 }
  0xfe   : > { %2810 = vmatprep.mubr.msk.f32.mxu0 %vm3011_vm2, %v3010_v53 }
  0xff   : > { %2903 = vmatmul.mubr.msk.f32.gmra.mxu1 %vm700_vm1, %v2393_v11 }
 0x100   : > { %2905 = vmatprep.mubr.msk.f32.mxu1 %vm3011_vm2, %v3010_v53 }
 0x101   : > { %2811 = vmatmul.mubr.msk.f32.gmra.mxu0 %vm700_vm1, %v2335_v12  ;;  %v2408_v12 = vld [vmem:[%s3325_s10 + $0x388] sm:$0xff] }
 0x102   : > { %2813 = vmatprep.mubr.msk.f32.mxu0 %vm3011_vm2, %v3010_v53 }
 0x103   : > { %2906 = vmatmul.mubr.msk.f32.gmra.mxu1 %vm700_vm1, %v2394_v13 }
 0x104   : > { %2908 = vmatprep.mubr.msk.f32.mxu1 %vm3011_vm2, %v3010_v53 }
 0x105   : > { %2814 = vmatmul.mubr.msk.f32.gmra.mxu0 %vm700_vm1, %v2336_v14 }
 0x106   : > { %2816 = vmatprep.mubr.msk.f32.mxu0 %vm3011_vm2, %v3010_v53 }
 0x107   : > { %2909 = vmatmul.mubr.msk.f32.gmra.mxu1 %vm700_vm1, %v2395_v15  ;;  %v2350_v15 = vld [vmem:[%s3325_s10 + $0x2a8] sm:$0xff] }
 0x108   : > { %2911 = vmatprep.mubr.msk.f32.mxu1 %vm3011_vm2, %v3010_v53 }
 0x109   : > { %2817 = vmatmul.mubr.msk.f32.gmra.mxu0 %vm700_vm1, %v2337_v16 }
 0x10a   : > { %2819 = vmatprep.mubr.msk.f32.mxu0 %vm3011_vm2, %v3010_v53 }
 0x10b   : > { %2912 = vmatmul.mubr.msk.f32.gmra.mxu1 %vm700_vm1, %v2396_v17 }
 0x10c   : > { %2914 = vmatprep.mubr.msk.f32.mxu1 %vm3011_vm2, %v3010_v53 }
 0x10d   : > { %2820 = vmatmul.mubr.msk.f32.gmra.mxu0 %vm700_vm1, %v2338_v18 }
 0x10e   : > { %2822 = vmatprep.mubr.msk.f32.mxu0 %vm3011_vm2, %v3010_v53 }
 0x10f   : > { %2915 = vmatmul.mubr.msk.f32.gmra.mxu1 %vm700_vm1, %v2397_v19  ;;  %v2409_v19 = vld [vmem:[%s3325_s10 + $0x390] sm:$0xff] }
 0x110   : > { %2917 = vmatprep.mubr.msk.f32.mxu1 %vm3011_vm2, %v3010_v53 }
 0x111   : > { %2823 = vmatmul.mubr.msk.f32.gmra.mxu0 %vm700_vm1, %v2339_v20 }
 0x112   : > { %2825 = vmatprep.mubr.msk.f32.mxu0 %vm3011_vm2, %v3010_v53 }
 0x113   : > { %2918 = vmatmul.mubr.msk.f32.gmra.mxu1 %vm700_vm1, %v2398_v21 }
 0x114   : > { %2920 = vmatprep.mubr.msk.f32.mxu1 %vm3011_vm2, %v3010_v53 }
 0x115   : > { %2826 = vmatmul.mubr.msk.f32.gmra.mxu0 %vm700_vm1, %v2340_v22  ;;  %v2351_v22 = vld [vmem:[%s3325_s10 + $0x2b0] sm:$0x1] }
 0x116   : > { %2828 = vmatprep.mubr.msk.f32.mxu0 %vm3011_vm2, %v3010_v53 }
 0x117   : > { %2921 = vmatmul.mubr.msk.f32.gmra.mxu1 %vm700_vm1, %v2399_v23 }
 0x118   : > { %2923 = vmatprep.mubr.msk.f32.mxu1 %vm3011_vm2, %v3010_v53 }
 0x119   : > { %2829 = vmatmul.mubr.msk.f32.gmra.mxu0 %vm700_vm1, %v2341_v24 }
 0x11a   : > { %2831 = vmatprep.mubr.msk.f32.mxu0 %vm3011_vm2, %v3010_v53 }
 0x11b   : > { %2924 = vmatmul.mubr.msk.f32.gmra.mxu1 %vm700_vm1, %v2400_v25 }
 0x11c   : > { %2926 = vmatprep.mubr.msk.f32.mxu1 %vm3011_vm2, %v3010_v53 }
 0x11d   : > { %v3729_v28 = vpop.f32.mrf.mxu0  ;;  %2832 = vmatmul.mubr.msk.f32.gmra.mxu0 %vm700_vm1, %v2342_v26  ;;  %v2410_v26 = vld [vmem:[%s3325_s10 + $0x398] sm:$0x1] }
 0x11e   : > { %2834 = vmatprep.mubr.msk.f32.mxu0 %vm3011_vm2, %v3010_v53 }
 0x11f   : > { %v3735_v30 = vpop.f32.mrf.mxu1  ;;  %2927 = vmatmul.mubr.msk.f32.gmra.mxu1 %vm700_vm1, %v2401_v27  ;;  %v2586_v31 = vpop.f32.mrf.mxu0 }
 0x120   : > { %2929 = vmatprep.mubr.msk.f32.mxu1 %vm3011_vm2, %v3010_v53 }
 0x121   : > { %v2681_v34 = vpop.f32.mrf.mxu1  ;;  %v3743_v35 = vpop.f32.mrf.mxu0  ;;  %2835 = vmatmul.mubr.msk.f32.gmra.mxu0 %vm700_vm1, %v2343_v29 }
 0x122   : > { %2837 = vmatprep.mubr.msk.f32.mxu0 %vm3011_vm2, %v3010_v53 }
 0x123   : > { %v3749_v37 = vpop.f32.mrf.mxu1  ;;  %2930 = vmatmul.mubr.msk.f32.gmra.mxu1 %vm700_vm1, %v2402_v33  ;;  %v2589_v38 = vpop.f32.mrf.mxu0 }
 0x124   : > { %2932 = vmatprep.mubr.msk.f32.mxu1 %vm3011_vm2, %v3010_v53 }
 0x125   : > { %v2684_v41 = vpop.f32.mrf.mxu1  ;;  %v3757_v42 = vpop.f32.mrf.mxu0  ;;  %2838 = vmatmul.mubr.msk.f32.gmra.mxu0 %vm700_vm1, %v2344_v36 }
 0x126   : > { %2840 = vmatprep.mubr.msk.f32.mxu0 %vm3011_vm2, %v3010_v53 }
 0x127   : > { %v3763_v44 = vpop.f32.mrf.mxu1  ;;  %2933 = vmatmul.mubr.msk.f32.gmra.mxu1 %vm700_vm1, %v2403_v40  ;;  %v2592_v45 = vpop.f32.mrf.mxu0 }
 0x128   : > { %2935 = vmatprep.mubr.msk.f32.mxu1 %vm3011_vm2, %v3010_v53 }
 0x129   : > { %v2687_v48 = vpop.f32.mrf.mxu1  ;;  %v3771_v49 = vpop.f32.mrf.mxu0  ;;  %2841 = vmatmul.mubr.msk.f32.gmra.mxu0 %vm700_vm1, %v2345_v43 }
 0x12a   : > { %2843 = vmatprep.mubr.msk.f32.mxu0 %vm3011_vm2, %v3010_v53 }
 0x12b   : > { %v3777_v51 = vpop.f32.mrf.mxu1  ;;  %2936 = vmatmul.mubr.msk.f32.gmra.mxu1 %vm700_vm1, %v2404_v47  ;;  %v2595_v52 = vpop.f32.mrf.mxu0 }
 0x12c   : > { %2938 = vmatprep.mubr.msk.f32.mxu1 %vm3011_vm2, %v3010_v53 }
 0x12d   : > { %v2690_v56 = vpop.f32.mrf.mxu1  ;;  %v3785_v57 = vpop.f32.mrf.mxu0  ;;  %2844 = vmatmul.mubr.msk.f32.gmra.mxu0 %vm700_vm1, %v2346_v50 }
 0x12e   : > { %2846 = vmatprep.mubr.msk.f32.mxu0 %vm3011_vm2, %v3010_v53 }
 0x12f   : > { %v3791_v59 = vpop.f32.mrf.mxu1  ;;  %2939 = vmatmul.mubr.msk.f32.gmra.mxu1 %vm700_vm1, %v2405_v55  ;;  %v2598_v60 = vpop.f32.mrf.mxu0 }
 0x130   : > { %2941 = vmatprep.mubr.msk.f32.mxu1 %vm3011_vm2, %v3010_v53 }
 0x131   : > { %v2693_v63 = vpop.f32.mrf.mxu1  ;;  %v3799_v0 = vpop.f32.mrf.mxu0  ;;  %2847 = vmatmul.mubr.msk.f32.gmra.mxu0 %vm700_vm1, %v2347_v58 }
 0x132   : > { %2849 = vmatprep.mubr.msk.f32.mxu0 %vm3011_vm2, %v3010_v53 }
 0x133   : > { %v3805_v2 = vpop.f32.mrf.mxu1  ;;  %2942 = vmatmul.mubr.msk.f32.gmra.mxu1 %vm700_vm1, %v2406_v62  ;;  %v2601_v3 = vpop.f32.mrf.mxu0 }
 0x134   : > { %2944 = vmatprep.mubr.msk.f32.mxu1 %vm3011_vm2, %v3010_v53 }
 0x135   : > { %v2696_v6 = vpop.f32.mrf.mxu1  ;;  %v3813_v7 = vpop.f32.mrf.mxu0  ;;  %2850 = vmatmul.mubr.msk.f32.gmra.mxu0 %vm700_vm1, %v2348_v1 }
 0x136   : > { %2852 = vmatprep.mubr.msk.f32.mxu0 %vm3011_vm2, %v3010_v53 }
 0x137   : > { %v3819_v9 = vpop.f32.mrf.mxu1  ;;  %2945 = vmatmul.mubr.msk.f32.gmra.mxu1 %vm700_vm1, %v2407_v5  ;;  %v2604_v10 = vpop.f32.mrf.mxu0 }
 0x138   : > { %2947 = vmatprep.mubr.msk.f32.mxu1 %vm3011_vm2, %v3010_v53 }
 0x139   : > { %v2699_v13 = vpop.f32.mrf.mxu1  ;;  %v3827_v14 = vpop.f32.mrf.mxu0  ;;  %2853 = vmatmul.mubr.msk.f32.gmra.mxu0 %vm700_vm1, %v2349_v8 }
 0x13a   : > { %2855 = vmatprep.mubr.msk.f32.mxu0 %vm3011_vm2, %v3010_v53 }
 0x13b   : > { %v3833_v16 = vpop.f32.mrf.mxu1  ;;  %2948 = vmatmul.mubr.msk.f32.gmra.mxu1 %vm700_vm1, %v2408_v12  ;;  %v2607_v17 = vpop.f32.mrf.mxu0 }
 0x13c   : > { %2950 = vmatprep.mubr.msk.f32.mxu1 %vm3011_vm2, %v3010_v53 }
 0x13d   : > { %v2702_v20 = vpop.f32.mrf.mxu1  ;;  %v3841_v21 = vpop.f32.mrf.mxu0  ;;  %2856 = vmatmul.mubr.msk.f32.gmra.mxu0 %vm700_vm1, %v2350_v15 }
 0x13e   : > { %2858 = vmatprep.mubr.msk.f32.mxu0 %vm3011_vm2, %v3010_v53 }
 0x13f   : > { %v3847_v23 = vpop.f32.mrf.mxu1  ;;  %2951 = vmatmul.mubr.msk.f32.gmra.mxu1 %vm700_vm1, %v2409_v19  ;;  %v2610_v24 = vpop.f32.mrf.mxu0 }
 0x140   : > { %2953 = vmatprep.mubr.msk.f32.mxu1 %vm3011_vm2, %v3010_v53 }
 0x141   : > { %v2705_v27 = vpop.f32.mrf.mxu1  ;;  %v3855_v29 = vpop.f32.mrf.mxu0  ;;  %2859 = vmatmul.mubr.msk.f32.gmra.mxu0 %vm700_vm1, %v2351_v22 }
 0x143   : > { %v3858_v31 = vpop.f32.mrf.mxu1  ;;  %2954 = vmatmul.mubr.msk.f32.gmra.mxu1 %vm700_vm1, %v2410_v26  ;;  %v2613_v33 = vpop.f32.mrf.mxu0 }
 0x145   : > { %v2708_v36 = vpop.f32.mrf.mxu1  ;;  %v3863_v38 = vpop.f32.mrf.mxu0 }
 0x147   : > { %v3865_v40 = vpop.f32.mrf.mxu1  ;;  %v2616_v53 = vpop.f32.mrf.mxu0 }
 0x149   : > { %v2711_v43 = vpop.f32.mrf.mxu1  ;;  %v3869_v45 = vpop.f32.mrf.mxu0 }
 0x14b   : > { %v3871_v47 = vpop.f32.mrf.mxu1  ;;  %v2619_v48 = vpop.f32.mrf.mxu0 }
 0x14d   : > { %v2714_v52 = vpop.f32.mrf.mxu1  ;;  %v3875_v55 = vpop.f32.mrf.mxu0 }
 0x14f   : > { %v3877_v56 = vpop.f32.mrf.mxu1  ;;  %v2622_v58 = vpop.f32.mrf.mxu0 }
 0x151   : > { %v2717_v62 = vpop.f32.mrf.mxu1  ;;  %v3881_v63 = vpop.f32.mrf.mxu0 }
 0x153   : > { %v3883_v1 = vpop.f32.mrf.mxu1  ;;  %v2625_v3 = vpop.f32.mrf.mxu0 }
 0x155   : > { %v2720_v6 = vpop.f32.mrf.mxu1  ;;  %v3887_v8 = vpop.f32.mrf.mxu0 }
 0x157   : > { %v3889_v10 = vpop.f32.mrf.mxu1  ;;  %v2628_v12 = vpop.f32.mrf.mxu0 }
 0x159   : > { %v2723_v15 = vpop.f32.mrf.mxu1  ;;  %v3893_v17 = vpop.f32.mrf.mxu0 }
 0x15b   : > { %v3895_v19 = vpop.f32.mrf.mxu1  ;;  %v2631_v20 = vpop.f32.mrf.mxu0 }
 0x15d   : > { %v2726_v24 = vpop.f32.mrf.mxu1  ;;  %v3899_v26 = vpop.f32.mrf.mxu0 }
 0x15f   : > { %v3901_v27 = vpop.f32.mrf.mxu1  ;;  %v2634_v33 = vpop.f32.mrf.mxu0 }
 0x161   : > { %v2729_v53 = vpop.f32.mrf.mxu1  ;;  %v3905_v43 = vpop.f32.mrf.mxu0 }
 0x163   : > { %v3907_v48 = vpop.f32.mrf.mxu1  ;;  %v2637_v52 = vpop.f32.mrf.mxu0 }
 0x165   : > { %v2732_v62 = vpop.f32.mrf.mxu1  ;;  %v3911_v3 = vpop.f32.mrf.mxu0 }
 0x167   : > { %v3913_v6 = vpop.f32.mrf.mxu1  ;;  %v2640_v12 = vpop.f32.mrf.mxu0 }
 0x169   : > { %v2735_v20 = vpop.f32.mrf.mxu1  ;;  %v3917_v24 = vpop.f32.mrf.mxu0 }
 0x16b   : > { %v3919_v33 = vpop.f32.mrf.mxu1  ;;  %v2643_v53 = vpop.f32.mrf.mxu0 }
 0x16d   : > { %v2738_v36 = vpop.f32.mrf.mxu1  ;;  %v3923_v58 = vpop.f32.mrf.mxu0 }
 0x16f   : > { %v3925_v62 = vpop.f32.mrf.mxu1  ;;  %v2646_v22 = vpop.f32.mrf.mxu0 }
 0x171   : > { %v2741_v13 = vpop.f32.mrf.mxu1  ;;  %v3929_v15 = vpop.f32.mrf.mxu0 }
 0x173   : > { %v3931_v20 = vpop.f32.mrf.mxu1  ;;  %v2649_v5 = vpop.f32.mrf.mxu0 }
 0x175   : > { %v2744_v60 = vpop.f32.mrf.mxu1  ;;  %v3935_v52 = vpop.f32.mrf.mxu0 }
 0x177   : > { %v3937_v36 = vpop.f32.mrf.mxu1  ;;  %v2652_v50 = vpop.f32.mrf.mxu0 }
 0x179   : > { %v2747_v41 = vpop.f32.mrf.mxu1  ;;  %v3941_v12 = vpop.f32.mrf.mxu0 }
 0x17b   : > { %v3943_v13 = vpop.f32.mrf.mxu1  ;;  %v2655_v34 = vpop.f32.mrf.mxu0 }
 0x17d   : > { %v2750_v25 = vpop.f32.mrf.mxu1  ;;  %v3947_v53 = vpop.f32.mrf.mxu0 }
 0x17f   : > { %v3949_v60 = vpop.f32.mrf.mxu1  ;;  %v2658_v18 = vpop.f32.mrf.mxu0 }
 0x181   : > { %v2753_v22 = vpop.f32.mrf.mxu1  ;;  %v3953_v41 = vpop.f32.mrf.mxu0 }
 0x182   : > { %4186 = vst [vmem:[#allocation3_spill] sm:$0xff] %v3953_v41 }
 0x183   : > { %v3955_v11 = vpop.f32.mrf.mxu1  ;;  %v2661_v4 = vpop.f32.mrf.mxu0 }
 0x184   : > { %4187 = vst [vmem:[#allocation4_spill] sm:$0xff] %v3955_v11 }
 0x185   : > { %v2756_v25 = vpop.f32.mrf.mxu1  ;;  %v3959_v5 = vpop.f32.mrf.mxu0 }
 0x186   : > { %4188 = vst [vmem:[#allocation5_spill] sm:$0xff] %v3959_v5 }
 0x187   : > { %v3961_v61 = vpop.f32.mrf.mxu1  ;;  %v2664_v18 = vpop.f32.mrf.mxu0 }
 0x188   : > { %4189 = vst [vmem:[#allocation6_spill] sm:$0xff] %v3961_v61 }
 0x189   : > { %v2759_v50 = vpop.f32.mrf.mxu1  ;;  %v3965_v22 = vpop.f32.mrf.mxu0 }
 0x18a   : > { %4190 = vst [vmem:[#allocation7_spill] sm:$0xff] %v3965_v22 }
 0x18b   : > { %v3967_v46 = vpop.f32.mrf.mxu1  ;;  %v2667_v39 = vpop.f32.mrf.mxu0 }
 0x18c   : > { %4191 = vst [vmem:[#allocation8_spill] sm:$0xff] %v3967_v46  ;;  %v4194_v39 = vmax.f32 %v3729_v28, %v3735_v30 }
 0x18d   : > { %v2762_v25 = vpop.f32.mrf.mxu1  ;;  %v3973_v34 = vpop.f32.mrf.mxu0 }
 0x18e   : > { %4192 = vst [vmem:[#allocation9_spill] sm:$0xff] %v3973_v34  ;;  %v3987_v25 = vld [vmem:[%s4176_s2] ss:$0 sm:$0xff] }
 0x18f   : > { %v3975_v32 = vpop.f32.mrf.mxu1  ;;  %v2670_v18 = vpop.f32.mrf.mxu0 }
 0x190   : > { %4193 = vst [vmem:[#allocation10_spill] sm:$0xff] %v3975_v32 }
 0x191   : > { %v2765_v54 = vpop.f32.mrf.mxu1  ;;  %v1541_v61 = vpop.f32.mrf.mxu0 }
 0x192   : > { %v1685_v5 = vmax.f32 %v4194_v39, %v1541_v61  ;;  %v4195_v54 = vmax.f32 %v3743_v35, %v3749_v37  ;;  %v4196_v35 = vmax.f32 %v3757_v42, %v3763_v44 }
 0x193   : > { %v1897_v11 = vpop.f32.mrf.mxu1  ;;  %v2776_v4 = vpop.f32.mrf.mxu0 }
 0x194   : > { %v2041_v18 = vmax.f32 %v1685_v5, %v1897_v11 }
 0x195   : > { %v2871_v46 = vpop.f32.mrf.mxu1  ;;  %v1546_v22 = vpop.f32.mrf.mxu0 }
 0x196   : > { %v2077_v41 = vadd.f32 %v3987_v25, %v2041_v18  ;;  %v1686_v50 = vmax.f32 %v4195_v54, %v1546_v22 }
 0x197   : > { %v1902_v28 = vpop.f32.mrf.mxu1  ;;  %v2779_v30 = vpop.f32.mrf.mxu0 }
 0x198   : > { %v2106_v61 = vmax.f32 %v2077_v41, 0.0  ;;  %v2042_v11 = vmax.f32 %v1686_v50, %v1902_v28  ;;  %v4197_v50 = vmax.f32 %v3771_v49, %v3777_v51 }
 0x199   : > { %v2874_v46 = vpop.f32.mrf.mxu1  ;;  %v1551_v5 = vpop.f32.mrf.mxu0 }
 0x19a   : > { %2136 = vst.msk [vmem:[%s3996_s15] sm:$0xff] %vm2135_vm3, %v2106_v61  ;;  %v2078_v4 = vadd.f32 %v3987_v25, %v2042_v11  ;;  %v1687_v37 = vmax.f32 %v4196_v35, %v1551_v5  ;;  %v4198_v5 = vmax.f32 %v3785_v57, %v3791_v59 }
 0x19b   : > { %v1907_v22 = vpop.f32.mrf.mxu1  ;;  %v2782_v39 = vpop.f32.mrf.mxu0 }
 0x19c   : > { %v2107_v18 = vmax.f32 %v2078_v4, 0.0  ;;  %v2043_v54 = vmax.f32 %v1687_v37, %v1907_v22 }
 0x19d   : > { %v2877_v32 = vpop.f32.mrf.mxu1  ;;  %v1556_v34 = vpop.f32.mrf.mxu0 }
 0x19e   : > { %2137 = vst.msk [vmem:[%s3996_s15 + $0x8] sm:$0xff] %vm2135_vm3, %v2107_v18  ;;  %v2079_v41 = vadd.f32 %v3987_v25, %v2043_v54  ;;  %v1688_v28 = vmax.f32 %v4197_v50, %v1556_v34  ;;  %v4199_v18 = vmax.f32 %v3799_v0, %v3805_v2 }
 0x19f   : > { %v1912_v30 = vpop.f32.mrf.mxu1  ;;  %v2785_v61 = vpop.f32.mrf.mxu0 }
 0x1a0   : > { %v2108_v42 = vmax.f32 %v2079_v41, 0.0  ;;  %v2044_v44 = vmax.f32 %v1688_v28, %v1912_v30 }
 0x1a1   : > { %v2880_v11 = vpop.f32.mrf.mxu1  ;;  %v1561_v46 = vpop.f32.mrf.mxu0 }
 0x1a2   : > { %2138 = vst.msk [vmem:[%s3996_s15 + $0x10] sm:$0xff] %vm2135_vm3, %v2108_v42  ;;  %v2080_v32 = vadd.f32 %v3987_v25, %v2044_v44  ;;  %v1689_v4 = vmax.f32 %v4198_v5, %v1561_v46  ;;  %v4200_v42 = vmax.f32 %v3813_v7, %v3819_v9 }
 0x1a3   : > { %v1917_v35 = vpop.f32.mrf.mxu1  ;;  %v2788_v37 = vpop.f32.mrf.mxu0 }
 0x1a4   : > { %v2109_v49 = vmax.f32 %v2080_v32, 0.0  ;;  %v2045_v51 = vmax.f32 %v1689_v4, %v1917_v35  ;;  %v4201_v35 = vmax.f32 %v3827_v14, %v3833_v16 }
 0x1a5   : > { %v2883_v34 = vpop.f32.mrf.mxu1  ;;  %v1566_v22 = vpop.f32.mrf.mxu0 }
 0x1a6   : > { %2139 = vst.msk [vmem:[%s3996_s15 + $0x18] sm:$0xff] %vm2135_vm3, %v2109_v49  ;;  %v2081_v39 = vadd.f32 %v3987_v25, %v2045_v51  ;;  %v1690_v54 = vmax.f32 %v4199_v18, %v1566_v22  ;;  %v4202_v18 = vmax.f32 %v3841_v21, %v3847_v23 }
 0x1a7   : > { %v1922_v41 = vpop.f32.mrf.mxu1  ;;  %v2791_v50 = vpop.f32.mrf.mxu0 }
 0x1a8   : > { %v2110_v57 = vmax.f32 %v2081_v39, 0.0  ;;  %v2046_v59 = vmax.f32 %v1690_v54, %v1922_v41 }
 0x1a9   : > { %v2886_v28 = vpop.f32.mrf.mxu1  ;;  %v1571_v30 = vpop.f32.mrf.mxu0 }
 0x1aa   : > { %2140 = vst.msk [vmem:[%s3996_s15 + $0x20] sm:$0xff] %vm2135_vm3, %v2110_v57  ;;  %v2082_v61 = vadd.f32 %v3987_v25, %v2046_v59  ;;  %v1691_v44 = vmax.f32 %v4200_v42, %v1571_v30  ;;  %v4203_v30 = vmax.f32 %v3855_v29, %v3858_v31 }
 0x1ab   : > { %v1927_v11 = vpop.f32.mrf.mxu1  ;;  %v2794_v46 = vpop.f32.mrf.mxu0 }
 0x1ac   : > { %v2111_v0 = vmax.f32 %v2082_v61, 0.0  ;;  %v2047_v2 = vmax.f32 %v1691_v44, %v1927_v11 }
 0x1ad   : > { %v2889_v32 = vpop.f32.mrf.mxu1  ;;  %v1576_v5 = vpop.f32.mrf.mxu0 }
 0x1ae   : > { %2141 = vst.msk [vmem:[%s3996_s15 + $0x28] sm:$0xff] %vm2135_vm3, %v2111_v0  ;;  %v2083_v4 = vadd.f32 %v3987_v25, %v2047_v2  ;;  %v1692_v37 = vmax.f32 %v4201_v35, %v1576_v5  ;;  %v4204_v2 = vmax.f32 %v3863_v38, %v3865_v40 }
 0x1af   : > { %v1932_v49 = vpop.f32.mrf.mxu1  ;;  %v2797_v51 = vpop.f32.mrf.mxu0 }
 0x1b0   : > { %v2112_v7 = vmax.f32 %v2083_v4, 0.0  ;;  %v2048_v9 = vmax.f32 %v1692_v37, %v1932_v49  ;;  %v4205_v51 = vmax.f32 %v3869_v45, %v3871_v47 }
 0x1b1   : > { %v2892_v34 = vpop.f32.mrf.mxu1  ;;  %v1581_v22 = vpop.f32.mrf.mxu0 }
 0x1b2   : > { %2142 = vst.msk [vmem:[%s3996_s15 + $0x30] sm:$0xff] %vm2135_vm3, %v2112_v7  ;;  %v2084_v39 = vadd.f32 %v3987_v25, %v2048_v9  ;;  %v1693_v54 = vmax.f32 %v4202_v18, %v1581_v22 }
 0x1b3   : > { %v1937_v41 = vpop.f32.mrf.mxu1  ;;  %v2800_v50 = vpop.f32.mrf.mxu0 }
 0x1b4   : > { %v2113_v14 = vmax.f32 %v2084_v39, 0.0  ;;  %v2049_v16 = vmax.f32 %v1693_v54, %v1937_v41  ;;  %v4206_v54 = vmax.f32 %v3875_v55, %v3877_v56 }
 0x1b5   : > { %v2895_v57 = vpop.f32.mrf.mxu1  ;;  %v1586_v59 = vpop.f32.mrf.mxu0 }
 0x1b6   : > { %2143 = vst.msk [vmem:[%s3996_s15 + $0x38] sm:$0xff] %vm2135_vm3, %v2113_v14  ;;  %v2085_v28 = vadd.f32 %v3987_v25, %v2049_v16  ;;  %v1694_v61 = vmax.f32 %v4203_v30, %v1586_v59 }
 0x1b7   : > { %v1942_v42 = vpop.f32.mrf.mxu1  ;;  %v2803_v44 = vpop.f32.mrf.mxu0 }
 0x1b8   : > { %v2114_v21 = vmax.f32 %v2085_v28, 0.0  ;;  %v2050_v23 = vmax.f32 %v1694_v61, %v1942_v42  ;;  %v4207_v28 = vmax.f32 %v3881_v63, %v3883_v1 }
 0x1b9   : > { %v2898_v11 = vpop.f32.mrf.mxu1  ;;  %v1591_v46 = vpop.f32.mrf.mxu0 }
 0x1ba   : > { %2144 = vst.msk [vmem:[%s3996_s15 + $0x40] sm:$0xff] %vm2135_vm3, %v2114_v21  ;;  %v2086_v0 = vadd.f32 %v3987_v25, %v2050_v23  ;;  %v1695_v32 = vmax.f32 %v4204_v2, %v1591_v46  ;;  %v4208_v11 = vmax.f32 %v3887_v8, %v3889_v10 }
 0x1bb   : > { %v1947_v5 = vpop.f32.mrf.mxu1  ;;  %v2806_v4 = vpop.f32.mrf.mxu0 }
 0x1bc   : > { %v2115_v29 = vmax.f32 %v2086_v0, 0.0  ;;  %v2051_v31 = vmax.f32 %v1695_v32, %v1947_v5 }
 0x1bd   : > { %v2901_v35 = vpop.f32.mrf.mxu1  ;;  %v1596_v37 = vpop.f32.mrf.mxu0 }
 0x1be   : > { %2145 = vst.msk [vmem:[%s3996_s15 + $0x48] sm:$0xff] %vm2135_vm3, %v2115_v29  ;;  %v2087_v49 = vadd.f32 %v3987_v25, %v2051_v31  ;;  %v1696_v7 = vmax.f32 %v4205_v51, %v1596_v37  ;;  %v4209_v29 = vmax.f32 %v3893_v17, %v3895_v19 }
 0x1bf   : > { %v1952_v9 = vpop.f32.mrf.mxu1  ;;  %v2809_v34 = vpop.f32.mrf.mxu0 }
 0x1c0   : > { %v2116_v38 = vmax.f32 %v2087_v49, 0.0  ;;  %v2052_v40 = vmax.f32 %v1696_v7, %v1952_v9  ;;  %v4210_v9 = vmax.f32 %v3899_v26, %v3901_v27 }
 0x1c1   : > { %v2904_v22 = vpop.f32.mrf.mxu1  ;;  %v1601_v39 = vpop.f32.mrf.mxu0 }
 0x1c2   : > { %2146 = vst.msk [vmem:[%s3996_s15 + $0x50] sm:$0xff] %vm2135_vm3, %v2116_v38  ;;  %v2088_v18 = vadd.f32 %v3987_v25, %v2052_v40  ;;  %v1697_v41 = vmax.f32 %v4206_v54, %v1601_v39  ;;  %v4211_v54 = vmax.f32 %v3905_v43, %v3907_v48 }
 0x1c3   : > { %v1957_v50 = vpop.f32.mrf.mxu1  ;;  %v2812_v14 = vpop.f32.mrf.mxu0 }
 0x1c4   : > { %v2117_v45 = vmax.f32 %v2088_v18, 0.0  ;;  %v2053_v47 = vmax.f32 %v1697_v41, %v1957_v50 }
 0x1c5   : > { %v2907_v16 = vpop.f32.mrf.mxu1  ;;  %v1606_v57 = vpop.f32.mrf.mxu0 }
 0x1c6   : > { %2147 = vst.msk [vmem:[%s3996_s15 + $0x58] sm:$0xff] %vm2135_vm3, %v2117_v45  ;;  %v2089_v59 = vadd.f32 %v3987_v25, %v2053_v47  ;;  %v1698_v30 = vmax.f32 %v4207_v28, %v1606_v57  ;;  %v4212_v57 = vmax.f32 %v3911_v3, %v3913_v6 }
 0x1c7   : > { %v1962_v61 = vpop.f32.mrf.mxu1  ;;  %v2815_v42 = vpop.f32.mrf.mxu0 }
 0x1c8   : > { %v2118_v55 = vmax.f32 %v2089_v59, 0.0  ;;  %v2054_v56 = vmax.f32 %v1698_v30, %v1962_v61 }
 0x1c9   : > { %v2910_v44 = vpop.f32.mrf.mxu1  ;;  %v1611_v21 = vpop.f32.mrf.mxu0 }
 0x1ca   : > { %2148 = vst.msk [vmem:[%s3996_s15 + $0x60] sm:$0xff] %vm2135_vm3, %v2118_v55  ;;  %v2090_v23 = vadd.f32 %v3987_v25, %v2054_v56  ;;  %v1699_v46 = vmax.f32 %v4208_v11, %v1611_v21  ;;  %v4213_v56 = vmax.f32 %v3917_v24, %v3919_v33 }
 0x1cb   : > { %v1967_v0 = vpop.f32.mrf.mxu1  ;;  %v2818_v2 = vpop.f32.mrf.mxu0 }
 0x1cc   : > { %v2119_v63 = vmax.f32 %v2090_v23, 0.0  ;;  %v2055_v1 = vmax.f32 %v1699_v46, %v1967_v0  ;;  %v4214_v2 = vmax.f32 %v3923_v58, %v3925_v62 }
 0x1cd   : > { %v2913_v32 = vpop.f32.mrf.mxu1  ;;  %v1616_v5 = vpop.f32.mrf.mxu0 }
 0x1ce   : > { %2149 = vst.msk [vmem:[%s3996_s15 + $0x68] sm:$0xff] %vm2135_vm3, %v2119_v63  ;;  %v2091_v4 = vadd.f32 %v3987_v25, %v2055_v1  ;;  %v1700_v31 = vmax.f32 %v4209_v29, %v1616_v5 }
 0x1cf   : > { %v1972_v35 = vpop.f32.mrf.mxu1  ;;  %v2821_v37 = vpop.f32.mrf.mxu0 }
 0x1d0   : > { %v2120_v8 = vmax.f32 %v2091_v4, 0.0  ;;  %v2056_v10 = vmax.f32 %v1700_v31, %v1972_v35  ;;  %v4215_v31 = vmax.f32 %v3929_v15, %v3931_v20 }
 0x1d1   : > { %v2916_v49 = vpop.f32.mrf.mxu1  ;;  %v1621_v51 = vpop.f32.mrf.mxu0 }
 0x1d2   : > { %2150 = vst.msk [vmem:[%s3996_s15 + $0x70] sm:$0xff] %vm2135_vm3, %v2120_v8  ;;  %v2092_v7 = vadd.f32 %v3987_v25, %v2056_v10  ;;  %v1701_v34 = vmax.f32 %v4210_v9, %v1621_v51 }
 0x1d3   : > { %v1977_v38 = vpop.f32.mrf.mxu1  ;;  %v2824_v40 = vpop.f32.mrf.mxu0 }
 0x1d4   : > { %v2121_v17 = vmax.f32 %v2092_v7, 0.0  ;;  %v2057_v19 = vmax.f32 %v1701_v34, %v1977_v38  ;;  %v4216_v7 = vmax.f32 %v3935_v52, %v3937_v36 }
 0x1d5   : > { %v2919_v22 = vpop.f32.mrf.mxu1  ;;  %v1626_v39 = vpop.f32.mrf.mxu0 }
 0x1d6   : > { %2151 = vst.msk [vmem:[%s3996_s15 + $0x78] sm:$0xff] %vm2135_vm3, %v2121_v17  ;;  %v2093_v18 = vadd.f32 %v3987_v25, %v2057_v19  ;;  %v1702_v41 = vmax.f32 %v4211_v54, %v1626_v39  ;;  %v4217_v22 = vmax.f32 %v3941_v12, %v3943_v13 }
 0x1d7   : > { %v1982_v50 = vpop.f32.mrf.mxu1  ;;  %v2827_v14 = vpop.f32.mrf.mxu0 }
 0x1d8   : > { %v2122_v26 = vmax.f32 %v2093_v18, 0.0  ;;  %v2058_v27 = vmax.f32 %v1702_v41, %v1982_v50 }
 0x1d9   : > { %v2922_v45 = vpop.f32.mrf.mxu1  ;;  %v1631_v47 = vpop.f32.mrf.mxu0 }
 0x1da   : > { %2152 = vst.msk [vmem:[%s3996_s15 + $0x80] sm:$0xff] %vm2135_vm3, %v2122_v26  ;;  %v2094_v16 = vadd.f32 %v3987_v25, %v2058_v27  ;;  %v1703_v59 = vmax.f32 %v4212_v57, %v1631_v47  ;;  %v4218_v26 = vmax.f32 %v3947_v53, %v3949_v60 }
 0x1db   : > { %v1987_v28 = vpop.f32.mrf.mxu1  ;;  %v2830_v30 = vpop.f32.mrf.mxu0 }
 0x1dc   : > { %v2123_v43 = vmax.f32 %v2094_v16, 0.0  ;;  %v2059_v48 = vmax.f32 %v1703_v59, %v1987_v28  ;;  %v4219_v28 = vld [vmem:[#allocation3_spill] sm:$0xff]  ;;  %v4220_v30 = vld [vmem:[#allocation4_spill] sm:$0xff] }
 0x1dd   : > { %v2925_v61 = vpop.f32.mrf.mxu1  ;;  %v1636_v42 = vpop.f32.mrf.mxu0 }
 0x1de   : > { %2153 = vst.msk [vmem:[%s3996_s15 + $0x88] sm:$0xff] %vm2135_vm3, %v2123_v43  ;;  %v2095_v55 = vadd.f32 %v3987_v25, %v2059_v48  ;;  %v1704_v44 = vmax.f32 %v4213_v56, %v1636_v42  ;;  %v4221_v43 = vmax.f32 %v4219_v28, %v4220_v30 }
 0x1df   : > { %v1992_v21 = vpop.f32.mrf.mxu1  ;;  %v2833_v23 = vpop.f32.mrf.mxu0 }
 0x1e0   : > { %v2124_v3 = vmax.f32 %v2095_v55, 0.0  ;;  %v2060_v6 = vmax.f32 %v1704_v44, %v1992_v21  ;;  %v4222_v21 = vld [vmem:[#allocation5_spill] sm:$0xff]  ;;  %v4223_v23 = vld [vmem:[#allocation6_spill] sm:$0xff] }
 0x1e1   : > { %v2928_v11 = vpop.f32.mrf.mxu1  ;;  %v1641_v46 = vpop.f32.mrf.mxu0 }
 0x1e2   : > { %2154 = vst.msk [vmem:[%s3996_s15 + $0x90] sm:$0xff] %vm2135_vm3, %v2124_v3  ;;  %v2096_v0 = vadd.f32 %v3987_v25, %v2060_v6  ;;  %v1705_v63 = vmax.f32 %v4214_v2, %v1641_v46  ;;  %v4224_v3 = vmax.f32 %v4222_v21, %v4223_v23 }
 0x1e3   : > { %v1997_v1 = vpop.f32.mrf.mxu1  ;;  %v2836_v32 = vpop.f32.mrf.mxu0 }
 0x1e4   : > { %v2125_v24 = vmax.f32 %v2096_v0, 0.0  ;;  %v2061_v33 = vmax.f32 %v1705_v63, %v1997_v1 }
 0x1e5   : > { %v2931_v5 = vpop.f32.mrf.mxu1  ;;  %v1646_v4 = vpop.f32.mrf.mxu0 }
 0x1e6   : > { %2155 = vst.msk [vmem:[%s3996_s15 + $0x98] sm:$0xff] %vm2135_vm3, %v2125_v24  ;;  %v2097_v29 = vadd.f32 %v3987_v25, %v2061_v33  ;;  %v1706_v35 = vmax.f32 %v4215_v31, %v1646_v4  ;;  %v4225_v24 = vld [vmem:[#allocation7_spill] sm:$0xff]  ;;  %v4226_v33 = vld [vmem:[#allocation8_spill] sm:$0xff] }
 0x1e7   : > { %v2002_v37 = vpop.f32.mrf.mxu1  ;;  %v2839_v8 = vpop.f32.mrf.mxu0  ;;  %v4227_v5 = vmax.f32 %v4225_v24, %v4226_v33 }
 0x1e8   : > { %v2126_v58 = vmax.f32 %v2097_v29, 0.0  ;;  %v2062_v62 = vmax.f32 %v1706_v35, %v2002_v37 }
 0x1e9   : > { %v2934_v10 = vpop.f32.mrf.mxu1  ;;  %v1651_v49 = vpop.f32.mrf.mxu0 }
 0x1ea   : > { %2156 = vst.msk [vmem:[%s3996_s15 + $0xa0] sm:$0xff] %vm2135_vm3, %v2126_v58  ;;  %v2098_v51 = vadd.f32 %v3987_v25, %v2062_v62  ;;  %v1707_v9 = vmax.f32 %v4216_v7, %v1651_v49  ;;  %v4228_v10 = vld [vmem:[#allocation9_spill] sm:$0xff]  ;;  %v4229_v49 = vld [vmem:[#allocation10_spill] sm:$0xff] }
 0x1eb   : > { %v2007_v34 = vpop.f32.mrf.mxu1  ;;  %v2842_v38 = vpop.f32.mrf.mxu0 }
 0x1ec   : > { %v2127_v15 = vmax.f32 %v2098_v51, 0.0  ;;  %v2063_v20 = vmax.f32 %v1707_v9, %v2007_v34  ;;  %v4230_v51 = vmax.f32 %v4228_v10, %v4229_v49 }
 0x1ed   : > { %v2937_v40 = vpop.f32.mrf.mxu1  ;;  %v1656_v17 = vpop.f32.mrf.mxu0 }
 0x1ee   : > { %2157 = vst.msk [vmem:[%s3996_s15 + $0xa8] sm:$0xff] %vm2135_vm3, %v2127_v15  ;;  %v2099_v19 = vadd.f32 %v3987_v25, %v2063_v20  ;;  %v1708_v39 = vmax.f32 %v4217_v22, %v1656_v17 }
 0x1ef   : > { %v2012_v18 = vpop.f32.mrf.mxu1  ;;  %v2845_v54 = vpop.f32.mrf.mxu0 }
 0x1f0   : > { %v2128_v52 = vmax.f32 %v2099_v19, 0.0  ;;  %v2064_v36 = vmax.f32 %v1708_v39, %v2012_v18 }
 0x1f1   : > { %v2940_v41 = vpop.f32.mrf.mxu1  ;;  %v1661_v50 = vpop.f32.mrf.mxu0 }
 0x1f2   : > { %2158 = vst.msk [vmem:[%s3996_s15 + $0xb0] sm:$0xff] %vm2135_vm3, %v2128_v52  ;;  %v2100_v14 = vadd.f32 %v3987_v25, %v2064_v36  ;;  %v1709_v27 = vmax.f32 %v4218_v26, %v1661_v50 }
 0x1f3   : > { %v2017_v45 = vpop.f32.mrf.mxu1  ;;  %v2848_v47 = vpop.f32.mrf.mxu0 }
 0x1f4   : > { %v2129_v12 = vmax.f32 %v2100_v14, 0.0  ;;  %v2065_v13 = vmax.f32 %v1709_v27, %v2017_v45 }
 0x1f5   : > { %v2943_v16 = vpop.f32.mrf.mxu1  ;;  %v1666_v57 = vpop.f32.mrf.mxu0 }
 0x1f6   : > { %2159 = vst.msk [vmem:[%s3996_s15 + $0xb8] sm:$0xff] %vm2135_vm3, %v2129_v12  ;;  %v2101_v59 = vadd.f32 %v3987_v25, %v2065_v13  ;;  %v1710_v48 = vmax.f32 %v4221_v43, %v1666_v57 }
 0x1f7   : > { %v2022_v61 = vpop.f32.mrf.mxu1  ;;  %v2851_v42 = vpop.f32.mrf.mxu0 }
 0x1f8   : > { %v2130_v53 = vmax.f32 %v2101_v59, 0.0  ;;  %v2066_v60 = vmax.f32 %v1710_v48, %v2022_v61 }
 0x1f9   : > { %v2946_v55 = vpop.f32.mrf.mxu1  ;;  %v1671_v56 = vpop.f32.mrf.mxu0 }
 0x1fa   : > { %2160 = vst.msk [vmem:[%s3996_s15 + $0xc0] sm:$0xff] %vm2135_vm3, %v2130_v53  ;;  %v2102_v44 = vadd.f32 %v3987_v25, %v2066_v60  ;;  %v1711_v6 = vmax.f32 %v4224_v3, %v1671_v56 }
 0x1fb   : > { %v2027_v11 = vpop.f32.mrf.mxu1  ;;  %v2854_v46 = vpop.f32.mrf.mxu0 }
 0x1fc   : > { %v2131_v0 = vmax.f32 %v2102_v44, 0.0  ;;  %v2067_v2 = vmax.f32 %v1711_v6, %v2027_v11 }
 0x1fd   : > { %v2949_v63 = vpop.f32.mrf.mxu1  ;;  %v1676_v1 = vpop.f32.mrf.mxu0 }
 0x1fe   : > { %2161 = vst.msk [vmem:[%s3996_s15 + $0xc8] sm:$0xff] %vm2135_vm3, %v2131_v0  ;;  %v2103_v32 = vadd.f32 %v3987_v25, %v2067_v2  ;;  %v1712_v4 = vmax.f32 %v4227_v5, %v1676_v1 }
 0x1ff   : > { %v2032_v29 = vpop.f32.mrf.mxu1  ;;  %v2857_v31 = vpop.f32.mrf.mxu0 }
 0x200   : > { %v2132_v35 = vmax.f32 %v2103_v32, 0.0  ;;  %v2068_v37 = vmax.f32 %v1712_v4, %v2032_v29 }
 0x201   : > { %v2952_v8 = vpop.f32.mrf.mxu1  ;;  %v1681_v58 = vpop.f32.mrf.mxu0 }
 0x202   : > { %2162 = vst.msk [vmem:[%s3996_s15 + $0xd0] sm:$0xff] %vm2135_vm3, %v2132_v35  ;;  %v2104_v62 = vadd.f32 %v3987_v25, %v2068_v37  ;;  %v1713_v7 = vmax.f32 %v4230_v51, %v1681_v58 }
 0x203   : > { %v2037_v9 = vpop.f32.mrf.mxu1  ;;  %v2860_v34 = vpop.f32.mrf.mxu0 }
 0x204   : > { %v2133_v38 = vmax.f32 %v2104_v62, 0.0  ;;  %v2069_v15 = vmax.f32 %v1713_v7, %v2037_v9 }
 0x205   : > { %v2955_v20 = vpop.f32.mrf.mxu1 }
 0x206   : > { %2163 = vst.msk [vmem:[%s3996_s15 + $0xd8] sm:$0xff] %vm2135_vm3, %v2133_v38  ;;  %v2105_v40 = vadd.f32 %v3987_v25, %v2069_v15 }
 0x208   : > { %v2134_v17 = vmax.f32 %v2105_v40, 0.0 }
 0x20a   : > { %2165 = vst.msk [vmem:[%s3996_s15 + $0xe0] sm:$0x1] %vm2164_vm4, %v2134_v17 }
 0x20b PF: > { %p10_p9 = scmp.ge.s32.totalorder %s3049_s16, 4   ;;  %s4231_s12 = smov %s3004_s13 }
 0x20c   : > { %s4232_s13 = smov %s3058_s19  ;;  %s4233_s14 = smov %s3049_s16 }
 0x20d   :  { %12 = sbr.rel (!%p10_p9) target bundleno = 2 (0x2), region = 108 }

// kernel: forward.4
= control target key start
LH: loop header
LB: loop body
LE: loop exit
PB: predicated region body
PF: predicated region fallthrough
CT: control target
= control target key end

     0   :  { %s1756_s12 = smov 0   ;;  %s1758_s13 = smov 0   ;;  %s2443_s0 = inlined_call_operand.vmem [shape: f32[4,2,36,288], index: 0, kind: input, shape index: {}]   ;;  %s2444_s1 = inlined_call_operand.vmem [shape: f32[288,64], index: 1, kind: input, shape index: {}]   ;;  %s2445_s2 = inlined_call_operand.vmem [shape: f32[1,64], index: 2, kind: input, shape index: {}]   ;;  %s2446_s3 = inlined_call_operand.vmem [shape: f32[2,36,64], index: 3, kind: output, shape index: {}]  }
   0x1   :  { %s1760_s14 = smov 0  }
   0x2 LB: > { %s1289_s15 = sadd.s32 4294967295, %s1732_s14   ;;  %s1773_s16 = sadd.s32 1, %s1732_s14   ;;  %s1732_s14 = sphi %s1760_s14, %s2449_s14   ;;  %s1728_s13 = sphi %s1758_s13, %s2448_s13   ;;  %s1724_s12 = sphi %s1756_s12, %s2447_s12  }
   0x3   : > { %s17_s17 = ssub.s32 %s1732_s14, %s1773_s16  ;;  %s20_s18 = sadd.s32 1, %s1728_s13 }
   0x4   : > { %p18_p0 = scmp.eq.s32.totalorder %s17_s17, 0  ;;  %p27_p1 = scmp.ne.s32.totalorder %s1728_s13, %s1724_s12 }
   0x5   : > { %p28_p2 = scmp.eq.s32.totalorder %s1732_s14, 0  ;;  %p1292_p4 = scmp.ge.s32.totalorder %s1732_s14, 2 }
   0x6   : > { %s1782_s19 = scalar_select %p18_p0, %s1728_s13, %s20_s18  }
   0x7   : > { %p29_p3 = por %p28_p2, %p27_p1  ;;  %127 = sbr.rel (%p1292_p4) target bundleno = 47 (0x2f), region = 24 }
   0xc   : > { %130 = sbr.rel (!%p29_p3) target bundleno = 47 (0x2f), region = 28  ;;  %s132_s20 = sand.u32 (%p29_p3), 1, %s1728_s13  }
   0xd   : > { %s1681_s21 = smul.u32 (%p29_p3), 120, %s1732_s14 }
   0xe   : > { %s1680_s22 = smul.u32 (%p29_p3), 480, %s132_s20 }
   0xf   : > { %s1790_s25 = scalar_lea.vmem (%p29_p3), %s2443_s0, %s1681_s21 }
  0x10   : > { %v150_v0 = vld [vmem:[%s1790_s25] sm:$0xff] (%p29_p3)  ;;  %v152_v1 = vld [vmem:[%s1790_s25 + $0x8] sm:$0xff] (%p29_p3)  ;;  %v154_v2 = vld [vmem:[%s1790_s25 + $0x10] sm:$0xff] (%p29_p3)  ;;  %s1795_s26 = scalar_lea.vmem (%p29_p3), [#allocation2], %s1680_s22 }
  0x11   : > { %151 = vst [vmem:[%s1795_s26] sm:$0xff] %v150_v0  ;;  %153 = vst [vmem:[%s1795_s26 + $0x8] sm:$0xff] %v152_v1  ;;  %v156_v3 = vld [vmem:[%s1790_s25 + $0x18] sm:$0xff]  ;;  %v158_v4 = vld [vmem:[%s1790_s25 + $0x20] sm:$0xff] }
  0x12   : > { %155 = vst [vmem:[%s1795_s26 + $0x10] sm:$0xff] %v154_v2  ;;  %v160_v5 = vld [vmem:[%s1790_s25 + $0x28] sm:$0xff]  ;;  %157 = vst [vmem:[%s1795_s26 + $0x18] sm:$0xff] %v156_v3  ;;  %v162_v6 = vld [vmem:[%s1790_s25 + $0x30] sm:$0xff] }
  0x13   : > { %159 = vst [vmem:[%s1795_s26 + $0x20] sm:$0xff] %v158_v4  ;;  %161 = vst [vmem:[%s1795_s26 + $0x28] sm:$0xff] %v160_v5  ;;  %v164_v7 = vld [vmem:[%s1790_s25 + $0x38] sm:$0xff]  ;;  %v166_v8 = vld [vmem:[%s1790_s25 + $0x40] sm:$0xff] }
  0x14   : > { %163 = vst [vmem:[%s1795_s26 + $0x30] sm:$0xff] %v162_v6  ;;  %165 = vst [vmem:[%s1795_s26 + $0x38] sm:$0xff] %v164_v7  ;;  %v168_v9 = vld [vmem:[%s1790_s25 + $0x48] sm:$0xff]  ;;  %v170_v10 = vld [vmem:[%s1790_s25 + $0x50] sm:$0xff] }
  0x15   : > { %167 = vst [vmem:[%s1795_s26 + $0x40] sm:$0xff] %v166_v8  ;;  %v172_v11 = vld [vmem:[%s1790_s25 + $0x58] sm:$0xff]  ;;  %169 = vst [vmem:[%s1795_s26 + $0x48] sm:$0xff] %v168_v9  ;;  %v174_v12 = vld [vmem:[%s1790_s25 + $0x60] sm:$0xff] }
  0x16   : > { %171 = vst [vmem:[%s1795_s26 + $0x50] sm:$0xff] %v170_v10  ;;  %173 = vst [vmem:[%s1795_s26 + $0x58] sm:$0xff] %v172_v11  ;;  %v176_v13 = vld [vmem:[%s1790_s25 + $0x68] sm:$0xff]  ;;  %v178_v14 = vld [vmem:[%s1790_s25 + $0x70] sm:$0xff] }
  0x17   : > { %175 = vst [vmem:[%s1795_s26 + $0x60] sm:$0xff] %v174_v12  ;;  %177 = vst [vmem:[%s1795_s26 + $0x68] sm:$0xff] %v176_v13  ;;  %v180_v15 = vld [vmem:[%s1790_s25 + $0xf0] sm:$0xff]  ;;  %v182_v16 = vld [vmem:[%s1790_s25 + $0xf8] sm:$0xff] }
  0x18   : > { %179 = vst [vmem:[%s1795_s26 + $0x70] sm:$0xff] %v178_v14  ;;  %v184_v17 = vld [vmem:[%s1790_s25 + $0x100] sm:$0xff]  ;;  %181 = vst [vmem:[%s1795_s26 + $0x78] sm:$0xff] %v180_v15  ;;  %v186_v18 = vld [vmem:[%s1790_s25 + $0x108] sm:$0xff] }
  0x19   : > { %183 = vst [vmem:[%s1795_s26 + $0x80] sm:$0xff] %v182_v16  ;;  %185 = vst [vmem:[%s1795_s26 + $0x88] sm:$0xff] %v184_v17  ;;  %v188_v19 = vld [vmem:[%s1790_s25 + $0x110] sm:$0xff]  ;;  %v190_v20 = vld [vmem:[%s1790_s25 + $0x118] sm:$0xff] }
  0x1a   : > { %187 = vst [vmem:[%s1795_s26 + $0x90] sm:$0xff] %v186_v18  ;;  %189 = vst [vmem:[%s1795_s26 + $0x98] sm:$0xff] %v188_v19  ;;  %v192_v21 = vld [vmem:[%s1790_s25 + $0x120] sm:$0xff]  ;;  %v194_v22 = vld [vmem:[%s1790_s25 + $0x128] sm:$0xff] }
  0x1b   : > { %191 = vst [vmem:[%s1795_s26 + $0xa0] sm:$0xff] %v190_v20  ;;  %v196_v23 = vld [vmem:[%s1790_s25 + $0x130] sm:$0xff]  ;;  %193 = vst [vmem:[%s1795_s26 + $0xa8] sm:$0xff] %v192_v21  ;;  %v198_v24 = vld [vmem:[%s1790_s25 + $0x138] sm:$0xff] }
  0x1c   : > { %195 = vst [vmem:[%s1795_s26 + $0xb0] sm:$0xff] %v194_v22  ;;  %197 = vst [vmem:[%s1795_s26 + $0xb8] sm:$0xff] %v196_v23  ;;  %v200_v25 = vld [vmem:[%s1790_s25 + $0x140] sm:$0xff]  ;;  %v202_v26 = vld [vmem:[%s1790_s25 + $0x148] sm:$0xff] }
  0x1d   : > { %199 = vst [vmem:[%s1795_s26 + $0xc0] sm:$0xff] %v198_v24  ;;  %201 = vst [vmem:[%s1795_s26 + $0xc8] sm:$0xff] %v200_v25  ;;  %v204_v27 = vld [vmem:[%s1790_s25 + $0x150] sm:$0xff]  ;;  %v206_v28 = vld [vmem:[%s1790_s25 + $0x158] sm:$0xff] }
  0x1e   : > { %203 = vst [vmem:[%s1795_s26 + $0xd0] sm:$0xff] %v202_v26  ;;  %v208_v29 = vld [vmem:[%s1790_s25 + $0x160] sm:$0xff]  ;;  %205 = vst [vmem:[%s1795_s26 + $0xd8] sm:$0xff] %v204_v27  ;;  %v212_v31 = vld [vmem:[%s1790_s25 + $0x1e8] sm:$0xff] }
  0x1f   : > { %207 = vst [vmem:[%s1795_s26 + $0xe0] sm:$0xff] %v206_v28  ;;  %209 = vst [vmem:[%s1795_s26 + $0xe8] sm:$0xff] %v208_v29  ;;  %v210_v30 = vld [vmem:[%s1790_s25 + $0x1e0] sm:$0xff]  ;;  %v214_v32 = vld [vmem:[%s1790_s25 + $0x1f0] sm:$0xff] }
  0x20   : > { %211 = vst [vmem:[%s1795_s26 + $0xf0] sm:$0xff] %v210_v30  ;;  %213 = vst [vmem:[%s1795_s26 + $0xf8] sm:$0xff] %v212_v31  ;;  %v216_v33 = vld [vmem:[%s1790_s25 + $0x1f8] sm:$0xff]  ;;  %v218_v34 = vld [vmem:[%s1790_s25 + $0x200] sm:$0xff] }
  0x21   : > { %215 = vst [vmem:[%s1795_s26 + $0x100] sm:$0xff] %v214_v32  ;;  %v220_v35 = vld [vmem:[%s1790_s25 + $0x208] sm:$0xff]  ;;  %217 = vst [vmem:[%s1795_s26 + $0x108] sm:$0xff] %v216_v33  ;;  %v222_v36 = vld [vmem:[%s1790_s25 + $0x210] sm:$0xff] }
  0x22   : > { %219 = vst [vmem:[%s1795_s26 + $0x110] sm:$0xff] %v218_v34  ;;  %221 = vst [vmem:[%s1795_s26 + $0x118] sm:$0xff] %v220_v35  ;;  %v224_v37 = vld [vmem:[%s1790_s25 + $0x218] sm:$0xff]  ;;  %v226_v38 = vld [vmem:[%s1790_s25 + $0x220] sm:$0xff] }
  0x23   : > { %223 = vst [vmem:[%s1795_s26 + $0x120] sm:$0xff] %v222_v36  ;;  %225 = vst [vmem:[%s1795_s26 + $0x128] sm:$0xff] %v224_v37  ;;  %v228_v39 = vld [vmem:[%s1790_s25 + $0x228] sm:$0xff]  ;;  %v230_v40 = vld [vmem:[%s1790_s25 + $0x230] sm:$0xff] }
  0x24   : > { %227 = vst [vmem:[%s1795_s26 + $0x130] sm:$0xff] %v226_v38  ;;  %v232_v41 = vld [vmem:[%s1790_s25 + $0x238] sm:$0xff]  ;;  %229 = vst [vmem:[%s1795_s26 + $0x138] sm:$0xff] %v228_v39  ;;  %v234_v42 = vld [vmem:[%s1790_s25 + $0x240] sm:$0xff] }
  0x25   : > { %231 = vst [vmem:[%s1795_s26 + $0x140] sm:$0xff] %v230_v40  ;;  %233 = vst [vmem:[%s1795_s26 + $0x148] sm:$0xff] %v232_v41  ;;  %v236_v43 = vld [vmem:[%s1790_s25 + $0x248] sm:$0xff]  ;;  %v238_v44 = vld [vmem:[%s1790_s25 + $0x250] sm:$0xff] }
  0x26   : > { %235 = vst [vmem:[%s1795_s26 + $0x150] sm:$0xff] %v234_v42  ;;  %237 = vst [vmem:[%s1795_s26 + $0x158] sm:$0xff] %v236_v43  ;;  %v240_v45 = vld [vmem:[%s1790_s25 + $0x2d0] sm:$0xff]  ;;  %v242_v46 = vld [vmem:[%s1790_s25 + $0x2d8] sm:$0xff] }
  0x27   : > { %239 = vst [vmem:[%s1795_s26 + $0x160] sm:$0xff] %v238_v44  ;;  %v244_v47 = vld [vmem:[%s1790_s25 + $0x2e0] sm:$0xff]  ;;  %241 = vst [vmem:[%s1795_s26 + $0x168] sm:$0xff] %v240_v45  ;;  %v246_v48 = vld [vmem:[%s1790_s25 + $0x2e8] sm:$0xff] }
  0x28   : > { %243 = vst [vmem:[%s1795_s26 + $0x170] sm:$0xff] %v242_v46  ;;  %245 = vst [vmem:[%s1795_s26 + $0x178] sm:$0xff] %v244_v47  ;;  %v248_v49 = vld [vmem:[%s1790_s25 + $0x2f0] sm:$0xff]  ;;  %v250_v50 = vld [vmem:[%s1790_s25 + $0x2f8] sm:$0xff] }
  0x29   : > { %247 = vst [vmem:[%s1795_s26 + $0x180] sm:$0xff] %v246_v48  ;;  %249 = vst [vmem:[%s1795_s26 + $0x188] sm:$0xff] %v248_v49  ;;  %v252_v51 = vld [vmem:[%s1790_s25 + $0x300] sm:$0xff]  ;;  %v254_v52 = vld [vmem:[%s1790_s25 + $0x308] sm:$0xff] }
  0x2a   : > { %251 = vst [vmem:[%s1795_s26 + $0x190] sm:$0xff] %v250_v50  ;;  %v256_v53 = vld [vmem:[%s1790_s25 + $0x310] sm:$0xff]  ;;  %253 = vst [vmem:[%s1795_s26 + $0x198] sm:$0xff] %v252_v51  ;;  %v258_v54 = vld [vmem:[%s1790_s25 + $0x318] sm:$0xff] }
  0x2b   : > { %255 = vst [vmem:[%s1795_s26 + $0x1a0] sm:$0xff] %v254_v52  ;;  %257 = vst [vmem:[%s1795_s26 + $0x1a8] sm:$0xff] %v256_v53  ;;  %v260_v55 = vld [vmem:[%s1790_s25 + $0x320] sm:$0xff]  ;;  %v262_v56 = vld [vmem:[%s1790_s25 + $0x328] sm:$0xff] }
  0x2c   : > { %259 = vst [vmem:[%s1795_s26 + $0x1b0] sm:$0xff] %v258_v54  ;;  %261 = vst [vmem:[%s1795_s26 + $0x1b8] sm:$0xff] %v260_v55  ;;  %v264_v57 = vld [vmem:[%s1790_s25 + $0x330] sm:$0xff]  ;;  %v266_v58 = vld [vmem:[%s1790_s25 + $0x338] sm:$0xff] }
  0x2d   : > { %263 = vst [vmem:[%s1795_s26 + $0x1c0] sm:$0xff] %v262_v56  ;;  %v268_v59 = vld [vmem:[%s1790_s25 + $0x340] sm:$0xff]  ;;  %265 = vst [vmem:[%s1795_s26 + $0x1c8] sm:$0xff] %v264_v57 }
  0x2e   : > { %267 = vst [vmem:[%s1795_s26 + $0x1d0] sm:$0xff] %v266_v58  ;;  %269 = vst [vmem:[%s1795_s26 + $0x1d8] sm:$0xff] %v268_v59 }
  0x2f PF: > { %p1294_p5 = scmp.ge.s32.totalorder %s1732_s14, 1  ;;  %p274_p6 = scmp.lt.s32.totalorder %s1732_s14, 3 }
  0x31   : > { %p275_p7 = pnand %p1294_p5, %p274_p6 }
  0x32   : > { %s281_s6 = sand.u32 (!%p275_p7), 1, %s1724_s12   ;;  %p304_p8 = scmp.lt.s32.totalorder (!%p275_p7), %s1289_s15, 1 }
  0x33   : > { %278 = sbr.rel (%p275_p7) target bundleno = 392 (0x188), region = 51 }
  0x34   : > { %s1682_s12 = smul.u32 (!%p275_p7), 480, %s281_s6 }
  0x36   : > { %s2003_s8 = scalar_lea.vmem (!%p275_p7), [#allocation2], %s1682_s12 }
  0x38   : > { %v1919_v60 = vld [vmem:[%s2444_s1 + $0xf8] sm:$0xff]  ;;  %v1734_v63 = vmov 0.0   ;;  %v1937_v0 = vld [vmem:[%s2444_s1 + $0xf0] sm:$0xff]  ;;  %v1954_v3 = vld [vmem:[%s2444_s1 + $0xe8] sm:$0xff]  ;;  %vm360_vm0 = vcmask 261120   ;;  %vm1735_vm1 = vmmov 0  }
  0x39   : > { %v1924_v61 = vld [vmem:[%s2444_s1 + $0x78] sm:$0xff]  ;;  %1364 = vmatprep.subr.mxu0 %v1919_v60  ;;  %1588 = vmatprep.subr.mxu1 %v1734_v63  ;;  %v1942_v1 = vld [vmem:[%s2444_s1 + $0x70] sm:$0xff]  ;;  %v1961_v4 = vld [vmem:[%s2444_s1 + $0x68] sm:$0xff]  ;;  %s2451_s15 = smov (!%p304_p8, %s1289_s15), 1  ;;  %vm1221_vm2 = vcmask 523264   ;;  %vm1226_vm3 = vcmask 519168  }
  0x3a   : > { %v1929_v62 = vld [vmem:[%s2444_s1 + $0x118] sm:$0xff]  ;;  %v1947_v2 = vld [vmem:[%s2444_s1 + $0x110] sm:$0xff]  ;;  %1365 = vmatpush3.msra.mxu0 %v1924_v61  ;;  %v1966_v5 = vld [vmem:[%s2444_s1 + $0x108] sm:$0xff]  ;;  %1596 = vmatprep.mubr.msk.f32.mxu1 %vm1735_vm1, %v1734_v63 }
  0x3b   : > { %1589 = vmatpush3.msra.mxu1 %v1929_v62  ;;  %1366 = vmatprep.subr.mxu0 %v1937_v0  ;;  %v1973_v6 = vld [vmem:[%s2444_s1 + $0xe0] sm:$0xff]  ;;  %v1992_v9 = vld [vmem:[%s2444_s1 + $0xd8] sm:$0xff]  ;;  %v347_v11 = vld [vmem:[%s2003_s8 + $0x10] sm:$0xff] }
  0x3c   : > { %1590 = vmatprep.subr.mxu1 %v1734_v63  ;;  %1367 = vmatpush3.msra.mxu0 %v1942_v1  ;;  %v1980_v7 = vld [vmem:[%s2444_s1 + $0x60] sm:$0xff]  ;;  %v1999_v10 = vld [vmem:[%s2444_s1 + $0x58] sm:$0xff]  ;;  %v2009_v12 = vld [vmem:[%s2444_s1 + $0xd0] sm:$0xff] }
  0x3d   : > { %1591 = vmatpush3.msra.mxu1 %v1947_v2  ;;  %1368 = vmatprep.subr.mxu0 %v1954_v3  ;;  %v1985_v8 = vld [vmem:[%s2444_s1 + $0x100] sm:$0xff]  ;;  %v2017_v13 = vld [vmem:[%s2444_s1 + $0x50] sm:$0xff]  ;;  %v2024_v14 = vld [vmem:[%s2444_s1 + $0xc8] sm:$0xff] }
  0x3e   : > { %1592 = vmatprep.subr.mxu1 %v1734_v63  ;;  %1369 = vmatpush3.msra.mxu0 %v1961_v4  ;;  %v2031_v15 = vld [vmem:[%s2444_s1 + $0x48] sm:$0xff]  ;;  %v2038_v16 = vld [vmem:[%s2444_s1 + $0xc0] sm:$0xff]  ;;  %v2052_v18 = vld [vmem:[%s2444_s1 + $0xb8] sm:$0xff] }
  0x3f   : > { %1593 = vmatpush3.msra.mxu1 %v1966_v5  ;;  %1370 = vmatprep.subr.mxu0 %v1973_v6  ;;  %v2045_v17 = vld [vmem:[%s2444_s1 + $0x40] sm:$0xff]  ;;  %v2059_v19 = vld [vmem:[%s2444_s1 + $0x38] sm:$0xff]  ;;  %v2066_v20 = vld [vmem:[%s2444_s1 + $0xb0] sm:$0xff] }
  0x40   : > { %1594 = vmatprep.subr.mxu1 %v1734_v63  ;;  %1371 = vmatpush3.msra.mxu0 %v1980_v7  ;;  %v2073_v21 = vld [vmem:[%s2444_s1 + $0x30] sm:$0xff]  ;;  %v2080_v22 = vld [vmem:[%s2444_s1 + $0xa8] sm:$0xff]  ;;  %v2094_v24 = vld [vmem:[%s2444_s1 + $0xa0] sm:$0xff] }
  0x41   : > { %1595 = vmatpush3.msra.mxu1 %v1985_v8  ;;  %1372 = vmatprep.subr.mxu0 %v1992_v9  ;;  %v2087_v23 = vld [vmem:[%s2444_s1 + $0x28] sm:$0xff]  ;;  %v2101_v25 = vld [vmem:[%s2444_s1 + $0x20] sm:$0xff]  ;;  %v2108_v26 = vld [vmem:[%s2444_s1 + $0x98] sm:$0xff] }
  0x42   : > { %1420 = vmatprep.subr.mxu1 %v1919_v60  ;;  %1373 = vmatpush3.msra.mxu0 %v1999_v10  ;;  %v2117_v27 = vld [vmem:[%s2444_s1 + $0x18] sm:$0xff]  ;;  %v350_v28 = vld [vmem:[%s2003_s8 + $0x28] sm:$0xff]  ;;  %v2125_v29 = vld [vmem:[%s2444_s1 + $0x90] sm:$0xff] }
  0x43   : > { %1597 = vmatmul.mubr.msk.f32.vlgmr.msra.gmra.mxu1 %vm360_vm0, %v347_v11  ;;  %1374 = vmatprep.subr.mxu0 %v2009_v12  ;;  %v2133_v30 = vld [vmem:[%s2444_s1 + $0x10] sm:$0xff]  ;;  %v2140_v31 = vld [vmem:[%s2444_s1 + $0x88] sm:$0xff]  ;;  %v353_v33 = vld [vmem:[%s2003_s8 + $0x40] sm:$0xff] }
  0x44   : > { %1421 = vmatpush3.msra.mxu1 %v1924_v61  ;;  %1375 = vmatpush3.msra.mxu0 %v2017_v13  ;;  %v2149_v32 = vld [vmem:[%s2444_s1 + $0x8] sm:$0xff]  ;;  %v2157_v34 = vld [vmem:[%s2444_s1 + $0x80] sm:$0xff]  ;;  %v356_v38 = vld [vmem:[%s2003_s8 + $0x58] sm:$0xff] }
  0x45   : > { %1422 = vmatprep.subr.mxu1 %v1937_v0  ;;  %1376 = vmatprep.subr.mxu0 %v2024_v14  ;;  %v2165_v35 = vld [vmem:[%s2444_s1] sm:$0xff]  ;;  %v346_v36 = vld [vmem:[%s2003_s8 + $0x8] sm:$0xff]  ;;  %v348_v40 = vld [vmem:[%s2003_s8 + $0x18] sm:$0xff] }
  0x46   : > { %1423 = vmatpush3.msra.mxu1 %v1942_v1  ;;  %1377 = vmatpush3.msra.mxu0 %v2031_v15  ;;  %v345_v37 = vld [vmem:[%s2003_s8] sm:$0xff]  ;;  %v359_v41 = vld [vmem:[%s2003_s8 + $0x70] sm:$0xf]  ;;  %v352_v42 = vld [vmem:[%s2003_s8 + $0x38] sm:$0xff] }
  0x47   : > { %1424 = vmatprep.subr.mxu1 %v1954_v3  ;;  %1378 = vmatprep.subr.mxu0 %v2038_v16  ;;  %v349_v39 = vld [vmem:[%s2003_s8 + $0x20] sm:$0xff]  ;;  %v351_v43 = vld [vmem:[%s2003_s8 + $0x30] sm:$0xff]  ;;  %v1301_v45 = vld [vmem:[%s2003_s8 + $0x78] sm:$0xff] }
  0x48   : > { %1425 = vmatpush3.msra.mxu1 %v1961_v4  ;;  %1379 = vmatpush3.msra.mxu0 %v2045_v17  ;;  %v1302_v44 = vld [vmem:[%s2003_s8 + $0x80] sm:$0xff]  ;;  %v355_v46 = vld [vmem:[%s2003_s8 + $0x50] sm:$0xff]  ;;  %v354_v47 = vld [vmem:[%s2003_s8 + $0x48] sm:$0xff] }
  0x49   : > { %1426 = vmatprep.subr.mxu1 %v1973_v6  ;;  %1380 = vmatprep.subr.mxu0 %v2052_v18  ;;  %v358_v48 = vld [vmem:[%s2003_s8 + $0x68] sm:$0xf]  ;;  %v357_v49 = vld [vmem:[%s2003_s8 + $0x60] sm:$0xf]  ;;  %v1305_v50 = vld [vmem:[%s2003_s8 + $0x98] sm:$0xff] }
  0x4a   : > { %1427 = vmatpush3.msra.mxu1 %v1980_v7  ;;  %1381 = vmatpush3.msra.mxu0 %v2059_v19  ;;  %v1304_v51 = vld [vmem:[%s2003_s8 + $0x90] sm:$0xff]  ;;  %v1303_v52 = vld [vmem:[%s2003_s8 + $0x88] sm:$0xff]  ;;  %v1306_v55 = vld [vmem:[%s2003_s8 + $0xa0] sm:$0xff] }
  0x4b   : > { %1428 = vmatprep.subr.mxu1 %v1992_v9  ;;  %1382 = vmatprep.subr.mxu0 %v2066_v20  ;;  %v1308_v53 = vld [vmem:[%s2003_s8 + $0xb0] sm:$0xff]  ;;  %v1307_v54 = vld [vmem:[%s2003_s8 + $0xa8] sm:$0xff]  ;;  %v1310_v57 = vld [vmem:[%s2003_s8 + $0xc0] sm:$0xff] }
  0x4c   : > { %1429 = vmatpush3.msra.mxu1 %v1999_v10  ;;  %1383 = vmatpush3.msra.mxu0 %v2073_v21  ;;  %v1311_v56 = vld [vmem:[%s2003_s8 + $0xc8] sm:$0xff]  ;;  %v1309_v58 = vld [vmem:[%s2003_s8 + $0xb8] sm:$0xff]  ;;  %v1314_v59 = vld [vmem:[%s2003_s8 + $0xe0] sm:$0xf] }
  0x4d   : > { %1430 = vmatprep.subr.mxu1 %v2009_v12  ;;  %1384 = vmatprep.subr.mxu0 %v2080_v22  ;;  %v1313_v11 = vld [vmem:[%s2003_s8 + $0xd8] sm:$0xf] }
  0x4e   : > { %1431 = vmatpush3.msra.mxu1 %v2017_v13  ;;  %1385 = vmatpush3.msra.mxu0 %v2087_v23 }
  0x4f   : > { %1432 = vmatprep.subr.mxu1 %v2024_v14  ;;  %1386 = vmatprep.subr.mxu0 %v2094_v24 }
  0x50   : > { %1433 = vmatpush3.msra.mxu1 %v2031_v15  ;;  %1387 = vmatpush3.msra.mxu0 %v2101_v25 }
  0x51   : > { %1434 = vmatprep.subr.mxu1 %v2038_v16  ;;  %1388 = vmatprep.subr.mxu0 %v2108_v26 }
  0x52   : > { %1435 = vmatpush3.msra.mxu1 %v2045_v17  ;;  %1599 = vmatprep.mubr.msk.f32.mxu1 %vm1735_vm1, %v1734_v63 }
  0x53   : > { %1436 = vmatprep.subr.mxu1 %v2052_v18  ;;  %1389 = vmatpush3.msra.mxu0 %v2117_v27 }
  0x54   : > { %1600 = vmatmul.mubr.msk.f32.gmra.mxu1 %vm360_vm0, %v350_v28  ;;  %1390 = vmatprep.subr.mxu0 %v2125_v29  ;;  %v1312_v28 = vld [vmem:[%s2003_s8 + $0xd0] sm:$0xff] }
  0x55   : > { %1437 = vmatpush3.msra.mxu1 %v2059_v19  ;;  %1391 = vmatpush3.msra.mxu0 %v2133_v30 }
  0x56   : > { %1438 = vmatprep.subr.mxu1 %v2066_v20  ;;  %1392 = vmatprep.subr.mxu0 %v2140_v31 }
  0x57   : > { %1439 = vmatpush3.msra.mxu1 %v2073_v21  ;;  %1602 = vmatprep.mubr.msk.f32.mxu1 %vm1735_vm1, %v1734_v63 }
  0x58   : > { %1440 = vmatprep.subr.mxu1 %v2080_v22  ;;  %1393 = vmatpush3.msra.mxu0 %v2149_v32 }
  0x59   : > { %1603 = vmatmul.mubr.msk.f32.gmra.mxu1 %vm360_vm0, %v353_v33  ;;  %1394 = vmatprep.subr.mxu0 %v2157_v34  ;;  %v1315_v33 = vld [vmem:[%s2003_s8 + $0xe8] sm:$0xf] }
  0x5a   : > { %1441 = vmatpush3.msra.mxu1 %v2087_v23  ;;  %1395 = vmatpush3.msra.mxu0 %v2165_v35 }
  0x5b   : > { %1442 = vmatprep.subr.mxu1 %v2094_v24  ;;  %440 = vmatprep.mubr.f32.mxu0 %v346_v36  ;;  %v1322_v36 = vld [vmem:[%s2003_s8 + $0xf8] sm:$0xff] }
  0x5c   : > { %1443 = vmatpush3.msra.mxu1 %v2101_v25  ;;  %441 = vmatmul.mubr.f32.vlgmr.msra.gmra.mxu0 %v345_v37  ;;  %v1323_v37 = vld [vmem:[%s2003_s8 + $0x100] sm:$0xff] }
  0x5d   : > { %1605 = vmatprep.mubr.msk.f32.mxu1 %vm1735_vm1, %v1734_v63  ;;  %1444 = vmatprep.subr.mxu1 %v2108_v26 }
  0x5e   : > { %1611 = vmatprep.subr.mxu0 %v1734_v63  ;;  %1606 = vmatmul.mubr.msk.f32.gmra.mxu1 %vm360_vm0, %v356_v38  ;;  %v1321_v38 = vld [vmem:[%s2003_s8 + $0xf0] sm:$0xff] }
  0x5f   : > { %1445 = vmatpush3.msra.mxu1 %v2117_v27  ;;  %1612 = vmatpush3.msra.mxu0 %v1929_v62 }
  0x60   : > { %1446 = vmatprep.subr.mxu1 %v2125_v29  ;;  %445 = vmatprep.mubr.f32.mxu0 %v349_v39  ;;  %v1325_v39 = vld [vmem:[%s2003_s8 + $0x110] sm:$0xff] }
  0x61   : > { %1447 = vmatpush3.msra.mxu1 %v2133_v30  ;;  %446 = vmatmul.mubr.f32.gmra.mxu0 %v348_v40  ;;  %v1326_v40 = vld [vmem:[%s2003_s8 + $0x118] sm:$0xff] }
  0x62   : > { %1608 = vmatprep.mubr.msk.f32.mxu1 %vm1735_vm1, %v1734_v63  ;;  %1448 = vmatprep.subr.mxu1 %v2140_v31 }
  0x63   : > { %1609 = vmatmul.mubr.msk.f32.gmra.mxu1 %vm360_vm0, %v359_v41  ;;  %1613 = vmatprep.subr.mxu0 %v1734_v63  ;;  %v1324_v41 = vld [vmem:[%s2003_s8 + $0x108] sm:$0xff] }
  0x64   : > { %1449 = vmatpush3.msra.mxu1 %v2149_v32  ;;  %1614 = vmatpush3.msra.mxu0 %v1947_v2 }
  0x65   : > { %1450 = vmatprep.subr.mxu1 %v2157_v34  ;;  %450 = vmatprep.mubr.f32.mxu0 %v352_v42  ;;  %v1328_v42 = vld [vmem:[%s2003_s8 + $0x128] sm:$0xff] }
  0x66   : > { %1451 = vmatpush3.msra.mxu1 %v2165_v35  ;;  %451 = vmatmul.mubr.f32.gmra.mxu0 %v351_v43 }
  0x67   : > { %651 = vmatprep.mubr.f32.mxu1 %v1302_v44  ;;  %1476 = vmatprep.subr.mxu1 %v1919_v60 }
  0x68   : > { %652 = vmatmul.mubr.f32.vlgmr.msra.gmra.mxu1 %v1301_v45  ;;  %1615 = vmatprep.subr.mxu0 %v1734_v63 }
  0x69   : > { %1477 = vmatpush3.msra.mxu1 %v1924_v61  ;;  %455 = vmatprep.mubr.f32.mxu0 %v355_v46 }
  0x6a   : > { %1478 = vmatprep.subr.mxu1 %v1937_v0  ;;  %1616 = vmatpush3.msra.mxu0 %v1966_v5 }
  0x6b   : > { %1479 = vmatpush3.msra.mxu1 %v1942_v1  ;;  %456 = vmatmul.mubr.f32.gmra.mxu0 %v354_v47 }
  0x6c   : > { %1480 = vmatprep.subr.mxu1 %v1954_v3  ;;  %460 = vmatprep.mubr.f32.mxu0 %v358_v48 }
  0x6d   : > { %1481 = vmatpush3.msra.mxu1 %v1961_v4  ;;  %1617 = vmatprep.subr.mxu0 %v1734_v63 }
  0x6e   : > { %1482 = vmatprep.subr.mxu1 %v1973_v6  ;;  %1618 = vmatpush3.msra.mxu0 %v1985_v8 }
  0x6f   : > { %1483 = vmatpush3.msra.mxu1 %v1980_v7  ;;  %461 = vmatmul.mubr.f32.gmra.mxu0 %v357_v49 }
  0x70   : > { %1484 = vmatprep.subr.mxu1 %v1992_v9  ;;  %656 = vmatprep.mubr.f32.mxu1 %v1305_v50 }
  0x71   : > { %1485 = vmatpush3.msra.mxu1 %v1999_v10  ;;  %1619 = vmatprep.mubr.msk.f32.mxu0 %vm1735_vm1, %v1734_v63 }
  0x72   : > { %1486 = vmatprep.subr.mxu1 %v2009_v12  ;;  %657 = vmatmul.mubr.f32.gmra.mxu1 %v1304_v51 }
  0x73   : > { %1487 = vmatpush3.msra.mxu1 %v2017_v13  ;;  %1620 = vmatmul.mubr.msk.f32.vlgmr.msra.gmra.mxu0 %vm360_vm0, %v1303_v52 }
  0x74   : > { %1488 = vmatprep.subr.mxu1 %v2024_v14  ;;  %1634 = vmatprep.subr.mxu0 %v1734_v63 }
  0x75   : > { %1489 = vmatpush3.msra.mxu1 %v2031_v15  ;;  %1635 = vmatpush3.msra.mxu0 %v1929_v62 }
  0x76   : > { %1490 = vmatprep.subr.mxu1 %v2038_v16  ;;  %661 = vmatprep.mubr.f32.mxu1 %v1308_v53 }
  0x77   : > { %1622 = vmatprep.mubr.msk.f32.mxu0 %vm1735_vm1, %v1734_v63  ;;  %1491 = vmatpush3.msra.mxu1 %v2045_v17 }
  0x78   : > { %662 = vmatmul.mubr.f32.gmra.mxu1 %v1307_v54  ;;  %1623 = vmatmul.mubr.msk.f32.gmra.mxu0 %vm360_vm0, %v1306_v55 }
  0x79   : > { %1492 = vmatprep.subr.mxu1 %v2052_v18  ;;  %1636 = vmatprep.subr.mxu0 %v1734_v63 }
  0x7a   : > { %1493 = vmatpush3.msra.mxu1 %v2059_v19  ;;  %1637 = vmatpush3.msra.mxu0 %v1947_v2 }
  0x7b   : > { %1494 = vmatprep.subr.mxu1 %v2066_v20  ;;  %666 = vmatprep.mubr.f32.mxu1 %v1311_v56 }
  0x7c   : > { %1625 = vmatprep.mubr.msk.f32.mxu0 %vm1735_vm1, %v1734_v63  ;;  %1495 = vmatpush3.msra.mxu1 %v2073_v21 }
  0x7d   : > { %667 = vmatmul.mubr.f32.gmra.mxu1 %v1310_v57  ;;  %1626 = vmatmul.mubr.msk.f32.gmra.mxu0 %vm360_vm0, %v1309_v58 }
  0x7e   : > { %1496 = vmatprep.subr.mxu1 %v2080_v22  ;;  %1638 = vmatprep.subr.mxu0 %v1734_v63 }
  0x7f   : > { %1497 = vmatpush3.msra.mxu1 %v2087_v23  ;;  %671 = vmatprep.mubr.f32.mxu1 %v1314_v59 }
  0x80   : > { %1498 = vmatprep.subr.mxu1 %v2094_v24  ;;  %1628 = vmatprep.mubr.msk.f32.mxu0 %vm1735_vm1, %v1734_v63 }
  0x81   : > { %1499 = vmatpush3.msra.mxu1 %v2101_v25  ;;  %1639 = vmatpush3.msra.mxu0 %v1966_v5 }
  0x82   : > { %672 = vmatmul.mubr.f32.gmra.mxu1 %v1313_v11  ;;  %1629 = vmatmul.mubr.msk.f32.gmra.mxu0 %vm360_vm0, %v1312_v28 }
  0x83   : > { %1500 = vmatprep.subr.mxu1 %v2108_v26  ;;  %1631 = vmatprep.mubr.msk.f32.mxu0 %vm1735_vm1, %v1734_v63 }
  0x84   : > { %1501 = vmatpush3.msra.mxu1 %v2117_v27  ;;  %1640 = vmatprep.subr.mxu0 %v1734_v63 }
  0x85   : > { %1502 = vmatprep.subr.mxu1 %v2125_v29  ;;  %1641 = vmatpush3.msra.mxu0 %v1985_v8 }
  0x86   : > { %1503 = vmatpush3.msra.mxu1 %v2133_v30  ;;  %1632 = vmatmul.mubr.msk.f32.gmra.mxu0 %vm360_vm0, %v1315_v33 }
  0x87   : > { %1504 = vmatprep.subr.mxu1 %v2140_v31  ;;  %867 = vmatprep.mubr.f32.mxu1 %v1322_v36 }
  0x88   : > { %1505 = vmatpush3.msra.mxu1 %v2149_v32  ;;  %1642 = vmatprep.mubr.msk.f32.mxu0 %vm1735_vm1, %v1734_v63 }
  0x89   : > { %1506 = vmatprep.subr.mxu1 %v2157_v34  ;;  %1532 = vmatprep.subr.mxu0 %v1919_v60  ;;  %v1329_v60 = vld [vmem:[%s2003_s8 + $0x130] sm:$0xff] }
  0x8a   : > { %1507 = vmatpush3.msra.mxu1 %v2165_v35  ;;  %1643 = vmatmul.mubr.msk.f32.vlgmr.msra.gmra.mxu0 %vm360_vm0, %v1323_v37 }
  0x8b   : > { %868 = vmatmul.mubr.f32.vlgmr.msra.gmra.mxu1 %v1321_v38  ;;  %1533 = vmatpush3.msra.mxu0 %v1924_v61  ;;  %v1327_v61 = vld [vmem:[%s2003_s8 + $0x120] sm:$0xff] }
  0x8c   : > { %1534 = vmatprep.subr.mxu0 %v1937_v0  ;;  %872 = vmatprep.mubr.f32.mxu1 %v1325_v39  ;;  %v1331_v0 = vld [vmem:[%s2003_s8 + $0x140] sm:$0xff] }
  0x8d   : > { %1535 = vmatpush3.msra.mxu0 %v1942_v1  ;;  %1645 = vmatprep.mubr.msk.f32.mxu0 %vm1735_vm1, %v1734_v63  ;;  %v1330_v1 = vld [vmem:[%s2003_s8 + $0x138] sm:$0xff] }
  0x8e   : > { %1536 = vmatprep.subr.mxu0 %v1954_v3  ;;  %1646 = vmatmul.mubr.msk.f32.gmra.mxu0 %vm360_vm0, %v1326_v40  ;;  %v1334_v3 = vld [vmem:[%s2003_s8 + $0x158] sm:$0xf] }
  0x8f   : > { %873 = vmatmul.mubr.f32.gmra.mxu1 %v1324_v41  ;;  %1537 = vmatpush3.msra.mxu0 %v1961_v4  ;;  %v1332_v4 = vld [vmem:[%s2003_s8 + $0x148] sm:$0xff] }
  0x90   : > { %1538 = vmatprep.subr.mxu0 %v1973_v6  ;;  %877 = vmatprep.mubr.f32.mxu1 %v1328_v42  ;;  %v1333_v6 = vld [vmem:[%s2003_s8 + $0x150] sm:$0xf] }
  0x91   : > { %1539 = vmatpush3.msra.mxu0 %v1980_v7  ;;  %1648 = vmatprep.mubr.msk.f32.mxu0 %vm1735_vm1, %v1734_v63  ;;  %v1335_v7 = vld [vmem:[%s2003_s8 + $0x160] sm:$0xf] }
  0x92   : > { %1540 = vmatprep.subr.mxu0 %v1992_v9  ;;  %1649 = vmatmul.mubr.msk.f32.gmra.mxu0 %vm360_vm0, %v1329_v60  ;;  %v1346_v9 = vld [vmem:[%s2003_s8 + $0x190] sm:$0xff] }
  0x93   : > { %878 = vmatmul.mubr.f32.gmra.mxu1 %v1327_v61  ;;  %1541 = vmatpush3.msra.mxu0 %v1999_v10  ;;  %v1344_v10 = vld [vmem:[%s2003_s8 + $0x180] sm:$0xff] }
  0x94   : > { %1542 = vmatprep.subr.mxu0 %v2009_v12  ;;  %882 = vmatprep.mubr.f32.mxu1 %v1331_v0  ;;  %v1349_v12 = vld [vmem:[%s2003_s8 + $0x1a8] sm:$0xff] }
  0x95   : > { %1543 = vmatpush3.msra.mxu0 %v2017_v13  ;;  %1651 = vmatprep.mubr.msk.f32.mxu0 %vm1735_vm1, %v1734_v63  ;;  %v1348_v13 = vld [vmem:[%s2003_s8 + $0x1a0] sm:$0xff] }
  0x96   : > { %1544 = vmatprep.subr.mxu0 %v2024_v14  ;;  %1657 = vmatprep.subr.mxu1 %v1734_v63  ;;  %v1347_v14 = vld [vmem:[%s2003_s8 + $0x198] sm:$0xff] }
  0x97   : > { %883 = vmatmul.mubr.f32.gmra.mxu1 %v1330_v1  ;;  %1545 = vmatpush3.msra.mxu0 %v2031_v15  ;;  %v1352_v15 = vld [vmem:[%s2003_s8 + $0x1c0] sm:$0xff] }
  0x98   : > { %1546 = vmatprep.subr.mxu0 %v2038_v16  ;;  %887 = vmatprep.mubr.f32.mxu1 %v1334_v3  ;;  %v1351_v16 = vld [vmem:[%s2003_s8 + $0x1b8] sm:$0xff] }
  0x99   : > { %1547 = vmatpush3.msra.mxu0 %v2045_v17  ;;  %1658 = vmatpush3.msra.mxu1 %v1929_v62  ;;  %v1342_v62 = vld [vmem:[%s2003_s8 + $0x170] sm:$0xff] }
  0x9a   : > { %1548 = vmatprep.subr.mxu0 %v2052_v18  ;;  %1652 = vmatmul.mubr.msk.f32.gmra.mxu0 %vm360_vm0, %v1332_v4  ;;  %v1350_v17 = vld [vmem:[%s2003_s8 + $0x1b0] sm:$0xff]  ;;  %v1355_v18 = vld [vmem:[%s2003_s8 + $0x1d8] sm:$0xf] }
  0x9b   : > { %888 = vmatmul.mubr.f32.gmra.mxu1 %v1333_v6  ;;  %1549 = vmatpush3.msra.mxu0 %v2059_v19  ;;  %v1354_v19 = vld [vmem:[%s2003_s8 + $0x1d0] sm:$0xf] }
  0x9c   : > { %1550 = vmatprep.subr.mxu0 %v2066_v20  ;;  %1654 = vmatprep.mubr.msk.f32.mxu0 %vm1735_vm1, %v1734_v63  ;;  %v1353_v20 = vld [vmem:[%s2003_s8 + $0x1c8] sm:$0xf] }
  0x9d   : > { %1551 = vmatpush3.msra.mxu0 %v2073_v21  ;;  %1659 = vmatprep.subr.mxu1 %v1734_v63 }
  0x9e   : > { %1552 = vmatprep.subr.mxu0 %v2080_v22  ;;  %1655 = vmatmul.mubr.msk.f32.gmra.mxu0 %vm360_vm0, %v1335_v7 }
  0x9f   : > { %1553 = vmatpush3.msra.mxu0 %v2087_v23  ;;  %1660 = vmatpush3.msra.mxu1 %v1947_v2  ;;  %v1343_v2 = vld [vmem:[%s2003_s8 + $0x178] sm:$0xff] }
  0xa0   : > { %1554 = vmatprep.subr.mxu0 %v2094_v24  ;;  %1661 = vmatprep.subr.mxu1 %v1734_v63 }
  0xa1   : > { %1555 = vmatpush3.msra.mxu0 %v2101_v25  ;;  %1662 = vmatpush3.msra.mxu1 %v1966_v5  ;;  %v1341_v5 = vld [vmem:[%s2003_s8 + $0x168] sm:$0xff] }
  0xa2   : > { %1556 = vmatprep.subr.mxu0 %v2108_v26  ;;  %1083 = vmatprep.mubr.f32.mxu0 %v1342_v62 }
  0xa3   : > { %1557 = vmatpush3.msra.mxu0 %v2117_v27  ;;  %1663 = vmatprep.subr.mxu1 %v1734_v63 }
  0xa4   : > { %1558 = vmatprep.subr.mxu0 %v2125_v29  ;;  %1664 = vmatpush3.msra.mxu1 %v1985_v8  ;;  %v1345_v8 = vld [vmem:[%s2003_s8 + $0x188] sm:$0xff]  ;;  %s1683_s8 = smul.u32 40, %s2451_s15 }
  0xa5   : > { %1559 = vmatpush3.msra.mxu0 %v2133_v30  ;;  %1665 = vmatprep.mubr.msk.f32.mxu1 %vm1735_vm1, %v1734_v63 }
  0xa6   : > { %1560 = vmatprep.subr.mxu0 %v2140_v31  ;;  %1666 = vmatmul.mubr.msk.f32.vlgmr.msra.gmra.mxu1 %vm360_vm0, %v1343_v2  ;;  %s2416_s12 = scalar_lea.vmem %s2446_s3, %s1683_s8 }
  0xa7   : > { %1561 = vmatpush3.msra.mxu0 %v2149_v32  ;;  %1668 = vmatprep.mubr.msk.f32.mxu1 %vm1735_vm1, %v1734_v63 }
  0xa8   : > { %1562 = vmatprep.subr.mxu0 %v2157_v34 }
  0xa9   : > { %1563 = vmatpush3.msra.mxu0 %v2165_v35 }
  0xaa   : > { %1084 = vmatmul.mubr.f32.vlgmr.msra.gmra.mxu0 %v1341_v5  ;;  %1669 = vmatmul.mubr.msk.f32.gmra.mxu1 %vm360_vm0, %v1346_v9 }
  0xab   : > { %1088 = vmatprep.mubr.f32.mxu0 %v1345_v8  ;;  %1671 = vmatprep.mubr.msk.f32.mxu1 %vm1735_vm1, %v1734_v63 }
  0xae   : > { %1089 = vmatmul.mubr.f32.gmra.mxu0 %v1344_v10  ;;  %1672 = vmatmul.mubr.msk.f32.gmra.mxu1 %vm360_vm0, %v1349_v12 }
  0xaf   : > { %1093 = vmatprep.mubr.f32.mxu0 %v1348_v13  ;;  %1674 = vmatprep.mubr.msk.f32.mxu1 %vm1735_vm1, %v1734_v63 }
  0xb2   : > { %1094 = vmatmul.mubr.f32.gmra.mxu0 %v1347_v14  ;;  %1675 = vmatmul.mubr.msk.f32.gmra.mxu1 %vm360_vm0, %v1352_v15 }
  0xb3   : > { %1098 = vmatprep.mubr.f32.mxu0 %v1351_v16  ;;  %1677 = vmatprep.mubr.msk.f32.mxu1 %vm1735_vm1, %v1734_v63 }
  0xb6   : > { %1099 = vmatmul.mubr.f32.gmra.mxu0 %v1350_v17  ;;  %1678 = vmatmul.mubr.msk.f32.gmra.mxu1 %vm360_vm0, %v1355_v18 }
  0xb7   : > { %1103 = vmatprep.mubr.f32.mxu0 %v1354_v19 }
  0xba   : > { %1104 = vmatmul.mubr.f32.gmra.mxu0 %v1353_v20 }
 0x103   : > { %v532_v21 = vpop.f32.mrf.mxu1 }
 0x105   : > { %v1598_v22 = vpop.f32.mrf.mxu1 }
 0x114   : > { %v537_v23 = vpop.f32.mrf.mxu1 }
 0x116   : > { %v1601_v24 = vpop.f32.mrf.mxu1 }
 0x119   : > { %v542_v25 = vpop.f32.mrf.mxu1 }
 0x11b   : > { %v1604_v26 = vpop.f32.mrf.mxu1 }
 0x11c   : > { %v1396_v27 = vpop.f32.mrf.mxu0 }
 0x11e   : > { %v1397_v29 = vpop.f32.mrf.mxu0  ;;  %v547_v30 = vpop.f32.mrf.mxu1 }
 0x11f   : > { %v1398_v31 = vadd.f32 %v1397_v29, %v1396_v27 }
 0x120   : > { %v1607_v32 = vpop.f32.mrf.mxu1 }
 0x121   : > { %v2379_v63 = vadd.f32 %v1398_v31, %v532_v21  ;;  %v1399_v34 = vpop.f32.mrf.mxu0 }
 0x123   : > { %v1400_v35 = vpop.f32.mrf.mxu0  ;;  %v552_v43 = vpop.f32.mrf.mxu1 }
 0x124   : > { %v1401_v44 = vadd.f32 %v1400_v35, %v1399_v34 }
 0x125   : > { %v1610_v45 = vpop.f32.mrf.mxu1 }
 0x126   : > { %v2381_v46 = vadd.f32 %v1401_v44, %v537_v23  ;;  %v1402_v47 = vpop.f32.mrf.mxu0 }
 0x128   : > { %v1403_v48 = vpop.f32.mrf.mxu0  ;;  %v1452_v50 = vpop.f32.mrf.mxu1 }
 0x129   : > { %v1404_v49 = vadd.f32 %v1403_v48, %v1402_v47 }
 0x12a   : > { %v1453_v55 = vpop.f32.mrf.mxu1 }
 0x12b   : > { %v2383_v51 = vadd.f32 %v1404_v49, %v542_v25  ;;  %v1405_v52 = vpop.f32.mrf.mxu0  ;;  %v1454_v27 = vadd.f32 %v1453_v55, %v1452_v50 }
 0x12d   : > { %v1406_v53 = vpop.f32.mrf.mxu0 }
 0x12e   : > { %v1407_v54 = vadd.f32 %v1406_v53, %v1405_v52 }
 0x12f   : > { %v1408_v56 = vpop.f32.mrf.mxu0 }
 0x130   : > { %v2385_v57 = vadd.f32 %v1407_v54, %v547_v30 }
 0x131   : > { %v1409_v58 = vpop.f32.mrf.mxu0 }
 0x132   : > { %v1410_v59 = vadd.f32 %v1409_v58, %v1408_v56  ;;  %v1455_v11 = vpop.f32.mrf.mxu1 }
 0x133   : > { %v743_v28 = vpop.f32.mrf.mxu0 }
 0x134   : > { %v2387_v33 = vadd.f32 %v1410_v59, %v552_v43  ;;  %v1456_v36 = vpop.f32.mrf.mxu1  ;;  %v744_v32 = vadd.f32 %v1454_v27, %v743_v28 }
 0x135   : > { %v1621_v37 = vpop.f32.mrf.mxu0  ;;  %v1457_v34 = vadd.f32 %v1456_v36, %v1455_v11 }
 0x136   : > { %v767_v50 = vmax.f32 %v2379_v63, %v744_v32  ;;  %v1361_v37 = vld [vmem:[%s2445_s2] ss:$0 sm:$0xff] }
 0x138   : > { %v1458_v38 = vpop.f32.mrf.mxu1  ;;  %v748_v39 = vpop.f32.mrf.mxu0 }
 0x139   : > { %v749_v52 = vadd.f32 %v1457_v34, %v748_v39 }
 0x13a   : > { %v1459_v40 = vpop.f32.mrf.mxu1  ;;  %v1624_v41 = vpop.f32.mrf.mxu0 }
 0x13b   : > { %v1460_v47 = vadd.f32 %v1459_v40, %v1458_v38  ;;  %v768_v41 = vmax.f32 %v2381_v46, %v749_v52 }
 0x13d   : > { %v1461_v42 = vpop.f32.mrf.mxu1  ;;  %v753_v60 = vpop.f32.mrf.mxu0 }
 0x13e   : > { %v754_v28 = vadd.f32 %v1460_v47, %v753_v60 }
 0x13f   : > { %v1627_v61 = vpop.f32.mrf.mxu0  ;;  %v1462_v0 = vpop.f32.mrf.mxu1 }
 0x140   : > { %v1463_v36 = vadd.f32 %v1462_v0, %v1461_v42  ;;  %v769_v42 = vmax.f32 %v2383_v51, %v754_v28 }
 0x142   : > { %v2389_v1 = vpop.f32.mrf.mxu0  ;;  %v2391_v4 = vpop.f32.mrf.mxu1 }
 0x143   : > { %v759_v60 = vadd.f32 %v1463_v36, %v2389_v1 }
 0x144   : > { %v1630_v3 = vpop.f32.mrf.mxu0  ;;  %v2395_v62 = vpop.f32.mrf.mxu1 }
 0x146   : > { %v2393_v6 = vpop.f32.mrf.mxu0 }
 0x148   : > { %v1633_v7 = vpop.f32.mrf.mxu0 }
 0x14a   : > { %v959_v2 = vpop.f32.mrf.mxu0 }
 0x14b   : > { %v1508_v5 = vpop.f32.mrf.mxu1 }
 0x14c   : > { %v1644_v9 = vpop.f32.mrf.mxu0 }
 0x14d   : > { %v1509_v8 = vpop.f32.mrf.mxu1 }
 0x14e   : > { %v964_v10 = vpop.f32.mrf.mxu0  ;;  %v1510_v30 = vadd.f32 %v1509_v8, %v1508_v5 }
 0x14f   : > { %v1511_v12 = vpop.f32.mrf.mxu1 }
 0x150   : > { %v1647_v13 = vpop.f32.mrf.mxu0  ;;  %v960_v44 = vadd.f32 %v1510_v30, %v959_v2 }
 0x151   : > { %v1512_v14 = vpop.f32.mrf.mxu1 }
 0x152   : > { %v969_v15 = vpop.f32.mrf.mxu0  ;;  %v1513_v45 = vadd.f32 %v1512_v14, %v1511_v12  ;;  %v983_v59 = vmax.f32 %v767_v50, %v960_v44 }
 0x153   : > { %v1514_v16 = vpop.f32.mrf.mxu1 }
 0x154   : > { %v1650_v17 = vpop.f32.mrf.mxu0  ;;  %v965_v58 = vadd.f32 %v1513_v45, %v964_v10  ;;  %v1466_v10 = vadd.f32 %v2395_v62, %v2391_v4 }
 0x155   : > { %v1515_v18 = vpop.f32.mrf.mxu1 }
 0x156   : > { %v1516_v54 = vadd.f32 %v1515_v18, %v1514_v16  ;;  %v984_v2 = vmax.f32 %v768_v41, %v965_v58  ;;  %v764_v27 = vadd.f32 %v1466_v10, %v2393_v6 }
 0x157   : > { %v1517_v19 = vpop.f32.mrf.mxu1 }
 0x158   : > { %v970_v61 = vadd.f32 %v1516_v54, %v969_v15 }
 0x159   : > { %v1518_v21 = vpop.f32.mrf.mxu1 }
 0x15a   : > { %v974_v20 = vpop.f32.mrf.mxu0  ;;  %v1519_v5 = vadd.f32 %v1518_v21, %v1517_v19  ;;  %v985_v15 = vmax.f32 %v769_v42, %v970_v61  ;;  %v770_v21 = vmax.f32 %v2385_v57, %v759_v60  ;;  %v771_v57 = vmax.f32 %v2387_v33, %v764_v27 }
 0x15b   : > { %v1520_v24 = vpop.f32.mrf.mxu1 }
 0x15c   : > { %v1653_v22 = vpop.f32.mrf.mxu0  ;;  %v975_v1 = vadd.f32 %v1519_v5, %v974_v20 }
 0x15d   : > { %v1521_v26 = vpop.f32.mrf.mxu1 }
 0x15e   : > { %v2397_v23 = vpop.f32.mrf.mxu0  ;;  %v1522_v17 = vadd.f32 %v1521_v26, %v1520_v24 }
 0x160   : > { %v1656_v25 = vpop.f32.mrf.mxu0  ;;  %v980_v20 = vadd.f32 %v1522_v17, %v2397_v23 }
 0x166   : > { %v1175_v29 = vpop.f32.mrf.mxu1 }
 0x168   : > { %v1667_v31 = vpop.f32.mrf.mxu1 }
 0x169   : > { %v986_v31 = vmax.f32 %v770_v21, %v975_v1 }
 0x16a   : > { %v1564_v35 = vpop.f32.mrf.mxu0  ;;  %v1180_v43 = vpop.f32.mrf.mxu1 }
 0x16c   : > { %v1565_v48 = vpop.f32.mrf.mxu0  ;;  %v1670_v49 = vpop.f32.mrf.mxu1 }
 0x16d   : > { %v1566_v53 = vadd.f32 %v1565_v48, %v1564_v35 }
 0x16e   : > { %v1567_v55 = vpop.f32.mrf.mxu0  ;;  %v1185_v56 = vpop.f32.mrf.mxu1 }
 0x16f   : > { %v1176_v11 = vadd.f32 %v1566_v53, %v1175_v29 }
 0x170   : > { %v1568_v38 = vpop.f32.mrf.mxu0  ;;  %v1673_v40 = vpop.f32.mrf.mxu1 }
 0x171   : > { %v1199_v63 = vmax.f32 %v983_v59, %v1176_v11  ;;  %v1569_v39 = vadd.f32 %v1568_v38, %v1567_v55 }
 0x172   : > { %v1570_v3 = vpop.f32.mrf.mxu0  ;;  %v1190_v7 = vpop.f32.mrf.mxu1 }
 0x173   : > { %v1211_v9 = vadd.f32 %v1361_v37, %v1199_v63  ;;  %v1181_v8 = vadd.f32 %v1569_v39, %v1180_v43  ;;  %v987_v43 = vmax.f32 %v771_v57, %v980_v20 }
 0x174   : > { %v1571_v46 = vpop.f32.mrf.mxu0  ;;  %v1676_v0 = vpop.f32.mrf.mxu1 }
 0x175   : > { %v1216_v12 = vmax.f32 %v1211_v9, 0.0  ;;  %v1200_v13 = vmax.f32 %v984_v2, %v1181_v8  ;;  %v1572_v14 = vadd.f32 %v1571_v46, %v1570_v3 }
 0x176   : > { %v1573_v16 = vpop.f32.mrf.mxu0  ;;  %v1195_v51 = vpop.f32.mrf.mxu1 }
 0x177   : > { %1222 = vst.msk [vmem:[%s2416_s12] sm:$0xff] %vm1221_vm2, %v1216_v12  ;;  %v1212_v18 = vadd.f32 %v1361_v37, %v1200_v13  ;;  %v1186_v19 = vadd.f32 %v1572_v14, %v1185_v56 }
 0x178   : > { %v1574_v22 = vpop.f32.mrf.mxu0  ;;  %v1679_v25 = vpop.f32.mrf.mxu1 }
 0x179   : > { %v1217_v4 = vmax.f32 %v1212_v18, 0.0  ;;  %v1201_v62 = vmax.f32 %v985_v15, %v1186_v19  ;;  %v1575_v29 = vadd.f32 %v1574_v22, %v1573_v16 }
 0x17a   : > { %v1576_v30 = vpop.f32.mrf.mxu0 }
 0x17b   : > { %1223 = vst.msk [vmem:[%s2416_s12 + $0x8] sm:$0xff] %vm1221_vm2, %v1217_v4  ;;  %v1213_v24 = vadd.f32 %v1361_v37, %v1201_v62  ;;  %v1191_v26 = vadd.f32 %v1575_v29, %v1190_v7 }
 0x17c   : > { %v1577_v32 = vpop.f32.mrf.mxu0 }
 0x17d   : > { %v1218_v34 = vmax.f32 %v1213_v24, 0.0  ;;  %v1202_v35 = vmax.f32 %v986_v31, %v1191_v26  ;;  %v1578_v6 = vadd.f32 %v1577_v32, %v1576_v30 }
 0x17f   : > { %1224 = vst.msk [vmem:[%s2416_s12 + $0x10] sm:$0xff] %vm1221_vm2, %v1218_v34  ;;  %v1214_v44 = vadd.f32 %v1361_v37, %v1202_v35  ;;  %v1196_v45 = vadd.f32 %v1578_v6, %v1195_v51 }
 0x181   : > { %v1219_v47 = vmax.f32 %v1214_v44, 0.0  ;;  %v1203_v48 = vmax.f32 %v987_v43, %v1196_v45 }
 0x183   : > { %1225 = vst.msk [vmem:[%s2416_s12 + $0x18] sm:$0xff] %vm1221_vm2, %v1219_v47  ;;  %v1215_v23 = vadd.f32 %v1361_v37, %v1203_v48 }
 0x185   : > { %v1220_v49 = vmax.f32 %v1215_v23, 0.0 }
 0x187   : > { %1227 = vst.msk [vmem:[%s2416_s12 + $0x20] sm:$0xf] %vm1226_vm3, %v1220_v49 }
 0x188 PF: > { %p10_p9 = scmp.ge.s32.totalorder %s1773_s16, 4   ;;  %s2447_s12 = smov %s1728_s13 }
 0x189   : > { %s2448_s13 = smov %s1782_s19  ;;  %s2449_s14 = smov %s1773_s16 }
 0x18a   :  { %12 = sbr.rel (!%p10_p9) target bundleno = 2 (0x2), region = 93 }

// kernel: forward.5
= control target key start
LH: loop header
LB: loop body
LE: loop exit
PB: predicated region body
PF: predicated region fallthrough
CT: control target
= control target key end

     0   :  { %s2458_s18 = smov 0   ;;  %s4325_s0 = inlined_call_operand.vmem [shape: f32[2,2304], index: 0, kind: input, shape index: {}]   ;;  %s4326_s1 = inlined_call_operand.vmem [shape: f32[2304,512], index: 1, kind: input, shape index: {}]   ;;  %s4327_s2 = inlined_call_operand.vmem [shape: f32[1,512], index: 2, kind: input, shape index: {}]   ;;  %s4328_s3 = inlined_call_operand.vmem [shape: f32[512,784], index: 3, kind: input, shape index: {}]   ;;  %s4329_s4 = inlined_call_operand.vmem [shape: f32[1,784], index: 4, kind: input, shape index: {}]   ;;  %s4330_s5 = inlined_call_operand.vmem [shape: f32[2,784], index: 5, kind: output, shape index: {}]  }
   0x1 LB: > { %s2464_s19 = sadd.s32 4294967295, %s2424_s18   ;;  %p2327_p0 = scmp.ge.s32.totalorder %s2424_s18, 1  ;;  %s2424_s18 = sphi %s2458_s18, %s15_s18  }
   0x2   : > { %p195_p1 = scmp.lt.s32.totalorder %s2424_s18, 4 }
   0x4   : > { %p196_p2 = pnand %p2327_p0, %p195_p1 }
   0x5   : > { %s224_s20 = smul.u32 (!%p196_p2), 6, %s2464_s19  ;;  %p2331_p5 = scmp.ne.s32.totalorder (!%p196_p2), %s2464_s19, 0 }
   0x6   : > { %199 = sbr.rel (%p196_p2) target bundleno = 867 (0x363), region = 40 }
   0x7   : > { %s230_s21 = smul.u32 (!%p196_p2), 96, %s2464_s19  ;;  %p225_p3 = scmp.lt.s32.totalorder (!%p196_p2), %s224_s20, 17 }
   0x9   : > { %p231_p4 = scmp.lt.s32.totalorder (!%p196_p2), %s230_s21, 287 }
   0xb   : > { %s4332_s20 = smov (!%p225_p3, %s224_s20), 17  ;;  %s4334_s21 = smov (!%p231_p4, %s230_s21), 287 }
   0xc   : > { %s2328_s22 = sshll.u32 %s4332_s20, 1  ;;  %s2336_s26 = sshll.u32 %s4334_s21, 5 }
   0xd   : > { %s2473_s25 = scalar_lea.vmem %s4325_s0, %s2328_s22  ;;  %s2478_s29 = scalar_lea.vmem %s4326_s1, %s2336_s26 }
   0xe   : > { %240 = sbr.rel (%p2331_p5) target bundleno = 21 (0x15), region = 44 }
  0x13   : > { %v2426_v0 = vmov 0.0  }
  0x14   : > { %241 = vst [vmem:[#allocation2] sm:$0xff] %v2426_v0 }
  0x15 PF: > { %v306_v1 = vld [vmem:[%s2478_s29 + $0x1e8] sm:$0xff]  ;;  %v305_v3 = vld [vmem:[%s2478_s29 + $0x1e0] sm:$0xff]  ;;  %p2333_p6 = scmp.ne.s32.totalorder %s2464_s19, 2 }
  0x16   : > { %v434_v2 = vld [vmem:[%s2478_s29 + $0x5e8] sm:$0xff]  ;;  %662 = vmatprep.subr.mxu0 %v306_v1  ;;  %v433_v4 = vld [vmem:[%s2478_s29 + $0x5e0] sm:$0xff] }
  0x17   : > { %733 = vmatprep.subr.mxu1 %v434_v2  ;;  %v302_v5 = vld [vmem:[%s2478_s29 + $0x1c8] sm:$0xff]  ;;  %663 = vmatpush1.msra.mxu0 %v305_v3  ;;  %v301_v7 = vld [vmem:[%s2478_s29 + $0x1c0] sm:$0xff] }
  0x18   : > { %v430_v6 = vld [vmem:[%s2478_s29 + $0x5c8] sm:$0xff]  ;;  %734 = vmatpush1.msra.mxu1 %v433_v4  ;;  %v429_v8 = vld [vmem:[%s2478_s29 + $0x5c0] sm:$0xff]  ;;  %664 = vmatprep.subr.mxu0 %v302_v5 }
  0x19   : > { %v298_v9 = vld [vmem:[%s2478_s29 + $0x1a8] sm:$0xff]  ;;  %735 = vmatprep.subr.mxu1 %v430_v6  ;;  %v297_v11 = vld [vmem:[%s2478_s29 + $0x1a0] sm:$0xff]  ;;  %665 = vmatpush1.msra.mxu0 %v301_v7 }
  0x1a   : > { %v426_v10 = vld [vmem:[%s2478_s29 + $0x5a8] sm:$0xff]  ;;  %v425_v12 = vld [vmem:[%s2478_s29 + $0x5a0] sm:$0xff]  ;;  %736 = vmatpush1.msra.mxu1 %v429_v8  ;;  %666 = vmatprep.subr.mxu0 %v298_v9 }
  0x1b   : > { %v294_v13 = vld [vmem:[%s2478_s29 + $0x188] sm:$0xff]  ;;  %737 = vmatprep.subr.mxu1 %v426_v10  ;;  %v293_v15 = vld [vmem:[%s2478_s29 + $0x180] sm:$0xff]  ;;  %667 = vmatpush1.msra.mxu0 %v297_v11 }
  0x1c   : > { %v422_v14 = vld [vmem:[%s2478_s29 + $0x588] sm:$0xff]  ;;  %v421_v16 = vld [vmem:[%s2478_s29 + $0x580] sm:$0xff]  ;;  %738 = vmatpush1.msra.mxu1 %v425_v12  ;;  %668 = vmatprep.subr.mxu0 %v294_v13 }
  0x1d   : > { %v290_v17 = vld [vmem:[%s2478_s29 + $0x168] sm:$0xff]  ;;  %739 = vmatprep.subr.mxu1 %v422_v14  ;;  %v289_v19 = vld [vmem:[%s2478_s29 + $0x160] sm:$0xff]  ;;  %669 = vmatpush1.msra.mxu0 %v293_v15 }
  0x1e   : > { %v418_v18 = vld [vmem:[%s2478_s29 + $0x568] sm:$0xff]  ;;  %v417_v20 = vld [vmem:[%s2478_s29 + $0x560] sm:$0xff]  ;;  %740 = vmatpush1.msra.mxu1 %v421_v16  ;;  %670 = vmatprep.subr.mxu0 %v290_v17 }
  0x1f   : > { %v286_v21 = vld [vmem:[%s2478_s29 + $0x148] sm:$0xff]  ;;  %741 = vmatprep.subr.mxu1 %v418_v18  ;;  %v285_v23 = vld [vmem:[%s2478_s29 + $0x140] sm:$0xff]  ;;  %671 = vmatpush1.msra.mxu0 %v289_v19 }
  0x20   : > { %v414_v22 = vld [vmem:[%s2478_s29 + $0x548] sm:$0xff]  ;;  %v413_v24 = vld [vmem:[%s2478_s29 + $0x540] sm:$0xff]  ;;  %742 = vmatpush1.msra.mxu1 %v417_v20  ;;  %672 = vmatprep.subr.mxu0 %v286_v21 }
  0x21   : > { %v282_v25 = vld [vmem:[%s2478_s29 + $0x128] sm:$0xff]  ;;  %743 = vmatprep.subr.mxu1 %v414_v22  ;;  %v281_v27 = vld [vmem:[%s2478_s29 + $0x120] sm:$0xff]  ;;  %673 = vmatpush1.msra.mxu0 %v285_v23 }
  0x22   : > { %v410_v26 = vld [vmem:[%s2478_s29 + $0x528] sm:$0xff]  ;;  %v409_v28 = vld [vmem:[%s2478_s29 + $0x520] sm:$0xff]  ;;  %744 = vmatpush1.msra.mxu1 %v413_v24  ;;  %674 = vmatprep.subr.mxu0 %v282_v25 }
  0x23   : > { %v278_v29 = vld [vmem:[%s2478_s29 + $0x108] sm:$0xff]  ;;  %745 = vmatprep.subr.mxu1 %v410_v26  ;;  %v277_v31 = vld [vmem:[%s2478_s29 + $0x100] sm:$0xff]  ;;  %675 = vmatpush1.msra.mxu0 %v281_v27 }
  0x24   : > { %v406_v30 = vld [vmem:[%s2478_s29 + $0x508] sm:$0xff]  ;;  %v405_v32 = vld [vmem:[%s2478_s29 + $0x500] sm:$0xff]  ;;  %746 = vmatpush1.msra.mxu1 %v409_v28  ;;  %676 = vmatprep.subr.mxu0 %v278_v29 }
  0x25   : > { %v274_v33 = vld [vmem:[%s2478_s29 + $0xe8] sm:$0xff]  ;;  %747 = vmatprep.subr.mxu1 %v406_v30  ;;  %v273_v35 = vld [vmem:[%s2478_s29 + $0xe0] sm:$0xff]  ;;  %677 = vmatpush1.msra.mxu0 %v277_v31  ;;  %v2427_v31 = vmov 1983009808  }
  0x26   : > { %v402_v34 = vld [vmem:[%s2478_s29 + $0x4e8] sm:$0xff]  ;;  %v401_v36 = vld [vmem:[%s2478_s29 + $0x4e0] sm:$0xff]  ;;  %748 = vmatpush1.msra.mxu1 %v405_v32  ;;  %678 = vmatprep.subr.mxu0 %v274_v33  ;;  %v633_v32 = vunpack.c.l.s4 %v2427_v31  ;;  %v635_v33 = vlaneseq }
  0x27   : > { %v270_v37 = vld [vmem:[%s2478_s29 + $0xc8] sm:$0xff]  ;;  %749 = vmatprep.subr.mxu1 %v402_v34  ;;  %v269_v39 = vld [vmem:[%s2478_s29 + $0xc0] sm:$0xff]  ;;  %679 = vmatpush1.msra.mxu0 %v273_v35 }
  0x28   : > { %v398_v38 = vld [vmem:[%s2478_s29 + $0x4c8] sm:$0xff]  ;;  %v397_v40 = vld [vmem:[%s2478_s29 + $0x4c0] sm:$0xff]  ;;  %750 = vmatpush1.msra.mxu1 %v401_v36  ;;  %680 = vmatprep.subr.mxu0 %v270_v37 }
  0x29   : > { %v266_v41 = vld [vmem:[%s2478_s29 + $0xa8] sm:$0xff]  ;;  %751 = vmatprep.subr.mxu1 %v398_v38  ;;  %v265_v43 = vld [vmem:[%s2478_s29 + $0xa0] sm:$0xff]  ;;  %681 = vmatpush1.msra.mxu0 %v269_v39 }
  0x2a   : > { %v394_v42 = vld [vmem:[%s2478_s29 + $0x4a8] sm:$0xff]  ;;  %v393_v44 = vld [vmem:[%s2478_s29 + $0x4a0] sm:$0xff]  ;;  %752 = vmatpush1.msra.mxu1 %v397_v40  ;;  %682 = vmatprep.subr.mxu0 %v266_v41 }
  0x2b   : > { %v262_v45 = vld [vmem:[%s2478_s29 + $0x88] sm:$0xff]  ;;  %753 = vmatprep.subr.mxu1 %v394_v42  ;;  %v261_v47 = vld [vmem:[%s2478_s29 + $0x80] sm:$0xff]  ;;  %683 = vmatpush1.msra.mxu0 %v265_v43  ;;  %v634_v42 = vunpack.c.0.s8 %v633_v32  ;;  %v2583_v43 = vshrl.u32 %v635_v33, 7  ;;  %v291_v32 = vld [vmem:[%s2478_s29 + $0x170] sm:$0xff] }
  0x2c   : > { %v390_v46 = vld [vmem:[%s2478_s29 + $0x488] sm:$0xff]  ;;  %v389_v48 = vld [vmem:[%s2478_s29 + $0x480] sm:$0xff]  ;;  %754 = vmatpush1.msra.mxu1 %v393_v44  ;;  %684 = vmatprep.subr.mxu0 %v262_v45 }
  0x2d   : > { %v258_v49 = vld [vmem:[%s2478_s29 + $0x68] sm:$0xff]  ;;  %755 = vmatprep.subr.mxu1 %v390_v46  ;;  %v257_v51 = vld [vmem:[%s2478_s29 + $0x60] sm:$0xff]  ;;  %685 = vmatpush1.msra.mxu0 %v261_v47 }
  0x2e   : > { %v386_v50 = vld [vmem:[%s2478_s29 + $0x468] sm:$0xff]  ;;  %v385_v52 = vld [vmem:[%s2478_s29 + $0x460] sm:$0xff]  ;;  %756 = vmatpush1.msra.mxu1 %v389_v48  ;;  %686 = vmatprep.subr.mxu0 %v258_v49 }
  0x2f   : > { %v254_v53 = vld [vmem:[%s2478_s29 + $0x48] sm:$0xff]  ;;  %757 = vmatprep.subr.mxu1 %v386_v50  ;;  %v253_v55 = vld [vmem:[%s2478_s29 + $0x40] sm:$0xff]  ;;  %687 = vmatpush1.msra.mxu0 %v257_v51 }
  0x30   : > { %v382_v54 = vld [vmem:[%s2478_s29 + $0x448] sm:$0xff]  ;;  %v381_v56 = vld [vmem:[%s2478_s29 + $0x440] sm:$0xff]  ;;  %758 = vmatpush1.msra.mxu1 %v385_v52  ;;  %688 = vmatprep.subr.mxu0 %v254_v53  ;;  %v2595_v53 = vsub.s32 %v634_v42, %v2583_v43  ;;  %v280_v42 = vld [vmem:[%s2478_s29 + $0x118] sm:$0xff] }
  0x31   : > { %v250_v57 = vld [vmem:[%s2478_s29 + $0x28] sm:$0xff]  ;;  %759 = vmatprep.subr.mxu1 %v382_v54  ;;  %v249_v59 = vld [vmem:[%s2478_s29 + $0x20] sm:$0xff]  ;;  %689 = vmatpush1.msra.mxu0 %v253_v55 }
  0x32   : > { %v378_v58 = vld [vmem:[%s2478_s29 + $0x428] sm:$0xff]  ;;  %v377_v60 = vld [vmem:[%s2478_s29 + $0x420] sm:$0xff]  ;;  %760 = vmatpush1.msra.mxu1 %v381_v56  ;;  %690 = vmatprep.subr.mxu0 %v250_v57 }
  0x33   : > { %v246_v61 = vld [vmem:[%s2478_s29 + $0x8] sm:$0xff]  ;;  %761 = vmatprep.subr.mxu1 %v378_v58  ;;  %v245_v63 = vld [vmem:[%s2478_s29] sm:$0xff]  ;;  %691 = vmatpush1.msra.mxu0 %v249_v59 }
  0x34   : > { %v374_v62 = vld [vmem:[%s2478_s29 + $0x408] sm:$0xff]  ;;  %v373_v0 = vld [vmem:[%s2478_s29 + $0x400] sm:$0xff]  ;;  %762 = vmatpush1.msra.mxu1 %v377_v60  ;;  %692 = vmatprep.subr.mxu0 %v246_v61 }
  0x35   : > { %v370_v1 = vld [vmem:[%s2478_s29 + $0x3e8] sm:$0xff]  ;;  %763 = vmatprep.subr.mxu1 %v374_v62  ;;  %v369_v3 = vld [vmem:[%s2478_s29 + $0x3e0] sm:$0xff]  ;;  %693 = vmatpush1.msra.mxu0 %v245_v63 }
  0x36   : > { %v498_v2 = vld [vmem:[%s2478_s29 + $0x7e8] sm:$0xff]  ;;  %v497_v4 = vld [vmem:[%s2478_s29 + $0x7e0] sm:$0xff]  ;;  %764 = vmatpush1.msra.mxu1 %v373_v0  ;;  %694 = vmatprep.subr.mxu0 %v370_v1 }
  0x37   : > { %v366_v5 = vld [vmem:[%s2478_s29 + $0x3c8] sm:$0xff]  ;;  %765 = vmatprep.subr.mxu1 %v498_v2  ;;  %v365_v7 = vld [vmem:[%s2478_s29 + $0x3c0] sm:$0xff]  ;;  %695 = vmatpush2.msra.mxu0 %v369_v3 }
  0x38   : > { %v494_v6 = vld [vmem:[%s2478_s29 + $0x7c8] sm:$0xff]  ;;  %v493_v8 = vld [vmem:[%s2478_s29 + $0x7c0] sm:$0xff]  ;;  %766 = vmatpush2.msra.mxu1 %v497_v4  ;;  %696 = vmatprep.subr.mxu0 %v366_v5 }
  0x39   : > { %v362_v9 = vld [vmem:[%s2478_s29 + $0x3a8] sm:$0xff]  ;;  %767 = vmatprep.subr.mxu1 %v494_v6  ;;  %v361_v11 = vld [vmem:[%s2478_s29 + $0x3a0] sm:$0xff]  ;;  %697 = vmatpush2.msra.mxu0 %v365_v7 }
  0x3a   : > { %v490_v10 = vld [vmem:[%s2478_s29 + $0x7a8] sm:$0xff]  ;;  %v489_v12 = vld [vmem:[%s2478_s29 + $0x7a0] sm:$0xff]  ;;  %768 = vmatpush2.msra.mxu1 %v493_v8  ;;  %698 = vmatprep.subr.mxu0 %v362_v9 }
  0x3b   : > { %v358_v13 = vld [vmem:[%s2478_s29 + $0x388] sm:$0xff]  ;;  %769 = vmatprep.subr.mxu1 %v490_v10  ;;  %v357_v15 = vld [vmem:[%s2478_s29 + $0x380] sm:$0xff]  ;;  %699 = vmatpush2.msra.mxu0 %v361_v11 }
  0x3c   : > { %v486_v14 = vld [vmem:[%s2478_s29 + $0x788] sm:$0xff]  ;;  %v485_v16 = vld [vmem:[%s2478_s29 + $0x780] sm:$0xff]  ;;  %770 = vmatpush2.msra.mxu1 %v489_v12  ;;  %700 = vmatprep.subr.mxu0 %v358_v13 }
  0x3d   : > { %v354_v17 = vld [vmem:[%s2478_s29 + $0x368] sm:$0xff]  ;;  %771 = vmatprep.subr.mxu1 %v486_v14  ;;  %v353_v19 = vld [vmem:[%s2478_s29 + $0x360] sm:$0xff]  ;;  %701 = vmatpush2.msra.mxu0 %v357_v15  ;;  %v308_v14 = vld [vmem:[%s2478_s29 + $0x1f8] sm:$0xff] }
  0x3e   : > { %v482_v18 = vld [vmem:[%s2478_s29 + $0x768] sm:$0xff]  ;;  %v481_v20 = vld [vmem:[%s2478_s29 + $0x760] sm:$0xff]  ;;  %772 = vmatpush2.msra.mxu1 %v485_v16  ;;  %702 = vmatprep.subr.mxu0 %v354_v17  ;;  %v307_v16 = vld [vmem:[%s2478_s29 + $0x1f0] sm:$0xff] }
  0x3f   : > { %v350_v21 = vld [vmem:[%s2478_s29 + $0x348] sm:$0xff]  ;;  %773 = vmatprep.subr.mxu1 %v482_v18  ;;  %v349_v23 = vld [vmem:[%s2478_s29 + $0x340] sm:$0xff]  ;;  %703 = vmatpush2.msra.mxu0 %v353_v19  ;;  %v304_v18 = vld [vmem:[%s2478_s29 + $0x1d8] sm:$0xff] }
  0x40   : > { %v478_v22 = vld [vmem:[%s2478_s29 + $0x748] sm:$0xff]  ;;  %v477_v24 = vld [vmem:[%s2478_s29 + $0x740] sm:$0xff]  ;;  %774 = vmatpush2.msra.mxu1 %v481_v20  ;;  %704 = vmatprep.subr.mxu0 %v350_v21  ;;  %v303_v20 = vld [vmem:[%s2478_s29 + $0x1d0] sm:$0xff] }
  0x41   : > { %v346_v25 = vld [vmem:[%s2478_s29 + $0x328] sm:$0xff]  ;;  %775 = vmatprep.subr.mxu1 %v478_v22  ;;  %v345_v27 = vld [vmem:[%s2478_s29 + $0x320] sm:$0xff]  ;;  %705 = vmatpush2.msra.mxu0 %v349_v23  ;;  %v300_v22 = vld [vmem:[%s2478_s29 + $0x1b8] sm:$0xff] }
  0x42   : > { %v474_v26 = vld [vmem:[%s2478_s29 + $0x728] sm:$0xff]  ;;  %v473_v28 = vld [vmem:[%s2478_s29 + $0x720] sm:$0xff]  ;;  %776 = vmatpush2.msra.mxu1 %v477_v24  ;;  %706 = vmatprep.subr.mxu0 %v346_v25  ;;  %v299_v24 = vld [vmem:[%s2478_s29 + $0x1b0] sm:$0xff] }
  0x43   : > { %v342_v29 = vld [vmem:[%s2478_s29 + $0x308] sm:$0xff]  ;;  %777 = vmatprep.subr.mxu1 %v474_v26  ;;  %v341_v34 = vld [vmem:[%s2478_s29 + $0x300] sm:$0xff]  ;;  %707 = vmatpush2.msra.mxu0 %v345_v27  ;;  %v296_v26 = vld [vmem:[%s2478_s29 + $0x198] sm:$0xff] }
  0x44   : > { %v470_v30 = vld [vmem:[%s2478_s29 + $0x708] sm:$0xff]  ;;  %v469_v35 = vld [vmem:[%s2478_s29 + $0x700] sm:$0xff]  ;;  %778 = vmatpush2.msra.mxu1 %v473_v28  ;;  %708 = vmatprep.subr.mxu0 %v342_v29  ;;  %v295_v28 = vld [vmem:[%s2478_s29 + $0x190] sm:$0xff] }
  0x45   : > { %v338_v36 = vld [vmem:[%s2478_s29 + $0x2e8] sm:$0xff]  ;;  %779 = vmatprep.subr.mxu1 %v470_v30  ;;  %v337_v38 = vld [vmem:[%s2478_s29 + $0x2e0] sm:$0xff]  ;;  %709 = vmatpush2.msra.mxu0 %v341_v34  ;;  %v292_v30 = vld [vmem:[%s2478_s29 + $0x178] sm:$0xff] }
  0x46   : > { %v466_v37 = vld [vmem:[%s2478_s29 + $0x6e8] sm:$0xff]  ;;  %v465_v39 = vld [vmem:[%s2478_s29 + $0x6e0] sm:$0xff]  ;;  %780 = vmatpush2.msra.mxu1 %v469_v35  ;;  %710 = vmatprep.subr.mxu0 %v338_v36  ;;  %v288_v34 = vld [vmem:[%s2478_s29 + $0x158] sm:$0xff] }
  0x47   : > { %v334_v40 = vld [vmem:[%s2478_s29 + $0x2c8] sm:$0xff]  ;;  %781 = vmatprep.subr.mxu1 %v466_v37  ;;  %v333_v44 = vld [vmem:[%s2478_s29 + $0x2c0] sm:$0xff]  ;;  %711 = vmatpush2.msra.mxu0 %v337_v38  ;;  %v287_v36 = vld [vmem:[%s2478_s29 + $0x150] sm:$0xff] }
  0x48   : > { %v462_v41 = vld [vmem:[%s2478_s29 + $0x6c8] sm:$0xff]  ;;  %v461_v45 = vld [vmem:[%s2478_s29 + $0x6c0] sm:$0xff]  ;;  %782 = vmatpush2.msra.mxu1 %v465_v39  ;;  %712 = vmatprep.subr.mxu0 %v334_v40  ;;  %v284_v38 = vld [vmem:[%s2478_s29 + $0x138] sm:$0xff] }
  0x49   : > { %v330_v46 = vld [vmem:[%s2478_s29 + $0x2a8] sm:$0xff]  ;;  %v243_v48 = vld [vmem:[%s2473_s25] sm:$0xff]  ;;  %783 = vmatprep.subr.mxu1 %v462_v41  ;;  %713 = vmatpush2.msra.mxu0 %v333_v44  ;;  %v283_v40 = vld [vmem:[%s2478_s29 + $0x130] sm:$0xff] }
  0x4a   : > { %v458_v47 = vld [vmem:[%s2478_s29 + $0x6a8] sm:$0xff]  ;;  %v329_v49 = vld [vmem:[%s2478_s29 + $0x2a0] sm:$0xff]  ;;  %784 = vmatpush2.msra.mxu1 %v461_v45  ;;  %714 = vmatprep.subr.mxu0 %v330_v46  ;;  %v631_v56 = vcombine.high %v243_v48, %v243_v48  ;;  %v2606_v63 = vrot.slane %v243_v48, %v2595_v53  ;;  %v279_v45 = vld [vmem:[%s2478_s29 + $0x110] sm:$0xff] }
  0x4b   : > { %v457_v50 = vld [vmem:[%s2478_s29 + $0x6a0] sm:$0xff]  ;;  %v326_v51 = vld [vmem:[%s2478_s29 + $0x288] sm:$0xff]  ;;  %785 = vmatprep.subr.mxu1 %v458_v47  ;;  %715 = vmatpush2.msra.mxu0 %v329_v49  ;;  %v276_v47 = vld [vmem:[%s2478_s29 + $0xf8] sm:$0xff] }
  0x4c   : > { %v454_v52 = vld [vmem:[%s2478_s29 + $0x688] sm:$0xff]  ;;  %v325_v54 = vld [vmem:[%s2478_s29 + $0x280] sm:$0xff]  ;;  %786 = vmatpush2.msra.mxu1 %v457_v50  ;;  %716 = vmatprep.subr.mxu0 %v326_v51  ;;  %v2611_v2 = vrot.slane %v631_v56, %v2595_v53  ;;  %v2621_v9 = vcombine.high %v2606_v63, %v2606_v63  ;;  %v275_v49 = vld [vmem:[%s2478_s29 + $0xf0] sm:$0xff] }
  0x4d   : > { %v453_v55 = vld [vmem:[%s2478_s29 + $0x680] sm:$0xff]  ;;  %v322_v57 = vld [vmem:[%s2478_s29 + $0x268] sm:$0xff]  ;;  %787 = vmatprep.subr.mxu1 %v454_v52  ;;  %717 = vmatpush2.msra.mxu0 %v325_v54  ;;  %v272_v51 = vld [vmem:[%s2478_s29 + $0xd8] sm:$0xff] }
  0x4e   : > { %v450_v58 = vld [vmem:[%s2478_s29 + $0x668] sm:$0xff]  ;;  %v321_v59 = vld [vmem:[%s2478_s29 + $0x260] sm:$0xff]  ;;  %788 = vmatpush2.msra.mxu1 %v453_v55  ;;  %718 = vmatprep.subr.mxu0 %v322_v57  ;;  %v2626_v11 = vcombine.high %v2611_v2, %v2611_v2  ;;  %v271_v54 = vld [vmem:[%s2478_s29 + $0xd0] sm:$0xff] }
  0x4f   : > { %v449_v60 = vld [vmem:[%s2478_s29 + $0x660] sm:$0xff]  ;;  %v318_v61 = vld [vmem:[%s2478_s29 + $0x248] sm:$0xff]  ;;  %789 = vmatprep.subr.mxu1 %v450_v58  ;;  %719 = vmatpush2.msra.mxu0 %v321_v59  ;;  %v268_v56 = vld [vmem:[%s2478_s29 + $0xb8] sm:$0xff] }
  0x50   : > { %v446_v62 = vld [vmem:[%s2478_s29 + $0x648] sm:$0xff]  ;;  %v317_v0 = vld [vmem:[%s2478_s29 + $0x240] sm:$0xff]  ;;  %790 = vmatpush2.msra.mxu1 %v449_v60  ;;  %720 = vmatprep.subr.mxu0 %v318_v61  ;;  %v267_v58 = vld [vmem:[%s2478_s29 + $0xb0] sm:$0xff] }
  0x51   : > { %v445_v1 = vld [vmem:[%s2478_s29 + $0x640] sm:$0xff]  ;;  %v314_v3 = vld [vmem:[%s2478_s29 + $0x228] sm:$0xff]  ;;  %791 = vmatprep.subr.mxu1 %v446_v62  ;;  %721 = vmatpush2.msra.mxu0 %v317_v0  ;;  %v264_v60 = vld [vmem:[%s2478_s29 + $0x98] sm:$0xff] }
  0x52   : > { %v442_v4 = vld [vmem:[%s2478_s29 + $0x628] sm:$0xff]  ;;  %v313_v5 = vld [vmem:[%s2478_s29 + $0x220] sm:$0xff]  ;;  %792 = vmatpush2.msra.mxu1 %v445_v1  ;;  %722 = vmatprep.subr.mxu0 %v314_v3  ;;  %v263_v62 = vld [vmem:[%s2478_s29 + $0x90] sm:$0xff] }
  0x53   : > { %v441_v6 = vld [vmem:[%s2478_s29 + $0x620] sm:$0xff]  ;;  %v310_v7 = vld [vmem:[%s2478_s29 + $0x208] sm:$0xff]  ;;  %793 = vmatprep.subr.mxu1 %v442_v4  ;;  %723 = vmatpush2.msra.mxu0 %v313_v5  ;;  %v260_v1 = vld [vmem:[%s2478_s29 + $0x78] sm:$0xff] }
  0x54   : > { %v438_v8 = vld [vmem:[%s2478_s29 + $0x608] sm:$0xff]  ;;  %v309_v10 = vld [vmem:[%s2478_s29 + $0x200] sm:$0xff]  ;;  %794 = vmatpush2.msra.mxu1 %v441_v6  ;;  %724 = vmatprep.subr.mxu0 %v310_v7  ;;  %v259_v4 = vld [vmem:[%s2478_s29 + $0x70] sm:$0xff] }
  0x55   : > { %v437_v12 = vld [vmem:[%s2478_s29 + $0x600] sm:$0xff]  ;;  %795 = vmatprep.subr.mxu1 %v438_v8  ;;  %725 = vmatpush2.msra.mxu0 %v309_v10  ;;  %v562_v13 = vld [vmem:[%s2478_s29 + $0x9e8] sm:$0xff]  ;;  %v256_v6 = vld [vmem:[%s2478_s29 + $0x58] sm:$0xff] }
  0x56   : > { %726 = vmatprep.mubr.f32.mxu0 %v2621_v9  ;;  %796 = vmatpush2.msra.mxu1 %v437_v12  ;;  %v561_v15 = vld [vmem:[%s2478_s29 + $0x9e0] sm:$0xff]  ;;  %v558_v17 = vld [vmem:[%s2478_s29 + $0x9c8] sm:$0xff]  ;;  %v255_v8 = vld [vmem:[%s2478_s29 + $0x50] sm:$0xff] }
  0x57   : > { %797 = vmatprep.mubr.f32.mxu1 %v2626_v11  ;;  %727 = vmatmul.mubr.f32.vlgmr.msra.gmra.mxu0 %v2606_v63  ;;  %v557_v19 = vld [vmem:[%s2478_s29 + $0x9c0] sm:$0xff]  ;;  %v554_v21 = vld [vmem:[%s2478_s29 + $0x9a8] sm:$0xff]  ;;  %v252_v12 = vld [vmem:[%s2478_s29 + $0x38] sm:$0xff] }
  0x58   : > { %798 = vmatmul.mubr.f32.vlgmr.msra.gmra.mxu1 %v2611_v2  ;;  %804 = vmatprep.subr.mxu0 %v562_v13  ;;  %v553_v23 = vld [vmem:[%s2478_s29 + $0x9a0] sm:$0xff]  ;;  %v550_v25 = vld [vmem:[%s2478_s29 + $0x988] sm:$0xff] }
  0x59   : > { %875 = vmatprep.subr.mxu1 %v308_v14  ;;  %805 = vmatpush1.msra.mxu0 %v561_v15  ;;  %v549_v27 = vld [vmem:[%s2478_s29 + $0x980] sm:$0xff]  ;;  %v546_v29 = vld [vmem:[%s2478_s29 + $0x968] sm:$0xff]  ;;  %v251_v14 = vld [vmem:[%s2478_s29 + $0x30] sm:$0xff] }
  0x5a   : > { %876 = vmatpush1.msra.mxu1 %v307_v16  ;;  %806 = vmatprep.subr.mxu0 %v558_v17  ;;  %v545_v31 = vld [vmem:[%s2478_s29 + $0x960] sm:$0xff]  ;;  %v542_v33 = vld [vmem:[%s2478_s29 + $0x948] sm:$0xff]  ;;  %v248_v16 = vld [vmem:[%s2478_s29 + $0x18] sm:$0xff] }
  0x5b   : > { %877 = vmatprep.subr.mxu1 %v304_v18  ;;  %807 = vmatpush1.msra.mxu0 %v557_v19  ;;  %v541_v35 = vld [vmem:[%s2478_s29 + $0x940] sm:$0xff]  ;;  %v538_v37 = vld [vmem:[%s2478_s29 + $0x928] sm:$0xff]  ;;  %v247_v18 = vld [vmem:[%s2478_s29 + $0x10] sm:$0xff] }
  0x5c   : > { %878 = vmatpush1.msra.mxu1 %v303_v20  ;;  %808 = vmatprep.subr.mxu0 %v554_v21  ;;  %v537_v39 = vld [vmem:[%s2478_s29 + $0x920] sm:$0xff]  ;;  %v534_v41 = vld [vmem:[%s2478_s29 + $0x908] sm:$0xff]  ;;  %v372_v20 = vld [vmem:[%s2478_s29 + $0x3f8] sm:$0xff] }
  0x5d   : > { %879 = vmatprep.subr.mxu1 %v300_v22  ;;  %809 = vmatpush1.msra.mxu0 %v553_v23  ;;  %v533_v44 = vld [vmem:[%s2478_s29 + $0x900] sm:$0xff]  ;;  %v530_v46 = vld [vmem:[%s2478_s29 + $0x8e8] sm:$0xff]  ;;  %v371_v22 = vld [vmem:[%s2478_s29 + $0x3f0] sm:$0xff] }
  0x5e   : > { %880 = vmatpush1.msra.mxu1 %v299_v24  ;;  %810 = vmatprep.subr.mxu0 %v550_v25  ;;  %v529_v48 = vld [vmem:[%s2478_s29 + $0x8e0] sm:$0xff]  ;;  %v526_v50 = vld [vmem:[%s2478_s29 + $0x8c8] sm:$0xff]  ;;  %v368_v24 = vld [vmem:[%s2478_s29 + $0x3d8] sm:$0xff] }
  0x5f   : > { %881 = vmatprep.subr.mxu1 %v296_v26  ;;  %811 = vmatpush1.msra.mxu0 %v549_v27  ;;  %v525_v52 = vld [vmem:[%s2478_s29 + $0x8c0] sm:$0xff]  ;;  %v522_v55 = vld [vmem:[%s2478_s29 + $0x8a8] sm:$0xff]  ;;  %v367_v26 = vld [vmem:[%s2478_s29 + $0x3d0] sm:$0xff] }
  0x60   : > { %882 = vmatpush1.msra.mxu1 %v295_v28  ;;  %812 = vmatprep.subr.mxu0 %v546_v29  ;;  %v521_v57 = vld [vmem:[%s2478_s29 + $0x8a0] sm:$0xff]  ;;  %v518_v59 = vld [vmem:[%s2478_s29 + $0x888] sm:$0xff]  ;;  %v364_v28 = vld [vmem:[%s2478_s29 + $0x3b8] sm:$0xff] }
  0x61   : > { %883 = vmatprep.subr.mxu1 %v292_v30  ;;  %813 = vmatpush1.msra.mxu0 %v545_v31  ;;  %v517_v61 = vld [vmem:[%s2478_s29 + $0x880] sm:$0xff]  ;;  %v514_v0 = vld [vmem:[%s2478_s29 + $0x868] sm:$0xff]  ;;  %v363_v30 = vld [vmem:[%s2478_s29 + $0x3b0] sm:$0xff] }
  0x62   : > { %884 = vmatpush1.msra.mxu1 %v291_v32  ;;  %814 = vmatprep.subr.mxu0 %v542_v33  ;;  %v513_v3 = vld [vmem:[%s2478_s29 + $0x860] sm:$0xff]  ;;  %v510_v5 = vld [vmem:[%s2478_s29 + $0x848] sm:$0xff]  ;;  %v360_v32 = vld [vmem:[%s2478_s29 + $0x398] sm:$0xff] }
  0x63   : > { %885 = vmatprep.subr.mxu1 %v288_v34  ;;  %815 = vmatpush1.msra.mxu0 %v541_v35  ;;  %v509_v7 = vld [vmem:[%s2478_s29 + $0x840] sm:$0xff]  ;;  %v506_v10 = vld [vmem:[%s2478_s29 + $0x828] sm:$0xff]  ;;  %v359_v34 = vld [vmem:[%s2478_s29 + $0x390] sm:$0xff] }
  0x64   : > { %886 = vmatpush1.msra.mxu1 %v287_v36  ;;  %816 = vmatprep.subr.mxu0 %v538_v37  ;;  %v505_v13 = vld [vmem:[%s2478_s29 + $0x820] sm:$0xff]  ;;  %v502_v15 = vld [vmem:[%s2478_s29 + $0x808] sm:$0xff]  ;;  %v356_v36 = vld [vmem:[%s2478_s29 + $0x378] sm:$0xff] }
  0x65   : > { %887 = vmatprep.subr.mxu1 %v284_v38  ;;  %817 = vmatpush1.msra.mxu0 %v537_v39  ;;  %v501_v17 = vld [vmem:[%s2478_s29 + $0x800] sm:$0xff]  ;;  %v626_v19 = vld [vmem:[%s2478_s29 + $0xbe8] sm:$0xff]  ;;  %v355_v38 = vld [vmem:[%s2478_s29 + $0x370] sm:$0xff] }
  0x66   : > { %888 = vmatpush1.msra.mxu1 %v283_v40  ;;  %818 = vmatprep.subr.mxu0 %v534_v41  ;;  %v625_v21 = vld [vmem:[%s2478_s29 + $0xbe0] sm:$0xff]  ;;  %v622_v23 = vld [vmem:[%s2478_s29 + $0xbc8] sm:$0xff]  ;;  %v352_v40 = vld [vmem:[%s2478_s29 + $0x358] sm:$0xff] }
  0x67   : > { %889 = vmatprep.subr.mxu1 %v280_v42  ;;  %819 = vmatpush1.msra.mxu0 %v533_v44  ;;  %v621_v25 = vld [vmem:[%s2478_s29 + $0xbc0] sm:$0xff]  ;;  %v618_v27 = vld [vmem:[%s2478_s29 + $0xba8] sm:$0xff]  ;;  %v351_v42 = vld [vmem:[%s2478_s29 + $0x350] sm:$0xff] }
  0x68   : > { %890 = vmatpush1.msra.mxu1 %v279_v45  ;;  %820 = vmatprep.subr.mxu0 %v530_v46  ;;  %v617_v29 = vld [vmem:[%s2478_s29 + $0xba0] sm:$0xff]  ;;  %v614_v31 = vld [vmem:[%s2478_s29 + $0xb88] sm:$0xff]  ;;  %v348_v45 = vld [vmem:[%s2478_s29 + $0x338] sm:$0xff] }
  0x69   : > { %891 = vmatprep.subr.mxu1 %v276_v47  ;;  %821 = vmatpush1.msra.mxu0 %v529_v48  ;;  %v613_v33 = vld [vmem:[%s2478_s29 + $0xb80] sm:$0xff]  ;;  %v610_v35 = vld [vmem:[%s2478_s29 + $0xb68] sm:$0xff]  ;;  %v347_v47 = vld [vmem:[%s2478_s29 + $0x330] sm:$0xff] }
  0x6a   : > { %892 = vmatpush1.msra.mxu1 %v275_v49  ;;  %822 = vmatprep.subr.mxu0 %v526_v50  ;;  %v609_v37 = vld [vmem:[%s2478_s29 + $0xb60] sm:$0xff]  ;;  %v606_v39 = vld [vmem:[%s2478_s29 + $0xb48] sm:$0xff]  ;;  %v344_v49 = vld [vmem:[%s2478_s29 + $0x318] sm:$0xff] }
  0x6b   : > { %893 = vmatprep.subr.mxu1 %v272_v51  ;;  %823 = vmatpush1.msra.mxu0 %v525_v52  ;;  %v605_v41 = vld [vmem:[%s2478_s29 + $0xb40] sm:$0xff]  ;;  %v602_v44 = vld [vmem:[%s2478_s29 + $0xb28] sm:$0xff]  ;;  %v343_v51 = vld [vmem:[%s2478_s29 + $0x310] sm:$0xff] }
  0x6c   : > { %894 = vmatpush1.msra.mxu1 %v271_v54  ;;  %824 = vmatprep.subr.mxu0 %v522_v55  ;;  %v601_v46 = vld [vmem:[%s2478_s29 + $0xb20] sm:$0xff]  ;;  %v598_v48 = vld [vmem:[%s2478_s29 + $0xb08] sm:$0xff]  ;;  %v340_v54 = vld [vmem:[%s2478_s29 + $0x2f8] sm:$0xff] }
  0x6d   : > { %895 = vmatprep.subr.mxu1 %v268_v56  ;;  %825 = vmatpush1.msra.mxu0 %v521_v57  ;;  %v597_v50 = vld [vmem:[%s2478_s29 + $0xb00] sm:$0xff]  ;;  %v594_v52 = vld [vmem:[%s2478_s29 + $0xae8] sm:$0xff]  ;;  %v339_v56 = vld [vmem:[%s2478_s29 + $0x2f0] sm:$0xff] }
  0x6e   : > { %896 = vmatpush1.msra.mxu1 %v267_v58  ;;  %826 = vmatprep.subr.mxu0 %v518_v59  ;;  %v593_v55 = vld [vmem:[%s2478_s29 + $0xae0] sm:$0xff]  ;;  %v590_v57 = vld [vmem:[%s2478_s29 + $0xac8] sm:$0xff]  ;;  %v336_v58 = vld [vmem:[%s2478_s29 + $0x2d8] sm:$0xff] }
  0x6f   : > { %897 = vmatprep.subr.mxu1 %v264_v60  ;;  %827 = vmatpush1.msra.mxu0 %v517_v61  ;;  %v589_v59 = vld [vmem:[%s2478_s29 + $0xac0] sm:$0xff]  ;;  %v335_v60 = vld [vmem:[%s2478_s29 + $0x2d0] sm:$0xff]  ;;  %v586_v61 = vld [vmem:[%s2478_s29 + $0xaa8] sm:$0xff] }
  0x70   : > { %898 = vmatpush1.msra.mxu1 %v263_v62  ;;  %828 = vmatprep.subr.mxu0 %v514_v0  ;;  %v332_v62 = vld [vmem:[%s2478_s29 + $0x2b8] sm:$0xff]  ;;  %v585_v0 = vld [vmem:[%s2478_s29 + $0xaa0] sm:$0xff] }
  0x71   : > { %899 = vmatprep.subr.mxu1 %v260_v1  ;;  %829 = vmatpush1.msra.mxu0 %v513_v3  ;;  %v331_v1 = vld [vmem:[%s2478_s29 + $0x2b0] sm:$0xff]  ;;  %v582_v3 = vld [vmem:[%s2478_s29 + $0xa88] sm:$0xff] }
  0x72   : > { %900 = vmatpush1.msra.mxu1 %v259_v4  ;;  %830 = vmatprep.subr.mxu0 %v510_v5  ;;  %v328_v4 = vld [vmem:[%s2478_s29 + $0x298] sm:$0xff]  ;;  %v581_v5 = vld [vmem:[%s2478_s29 + $0xa80] sm:$0xff] }
  0x73   : > { %901 = vmatprep.subr.mxu1 %v256_v6  ;;  %831 = vmatpush1.msra.mxu0 %v509_v7  ;;  %v327_v6 = vld [vmem:[%s2478_s29 + $0x290] sm:$0xff]  ;;  %v578_v7 = vld [vmem:[%s2478_s29 + $0xa68] sm:$0xff] }
  0x74   : > { %902 = vmatpush1.msra.mxu1 %v255_v8  ;;  %832 = vmatprep.subr.mxu0 %v506_v10  ;;  %v324_v8 = vld [vmem:[%s2478_s29 + $0x278] sm:$0xff]  ;;  %v577_v10 = vld [vmem:[%s2478_s29 + $0xa60] sm:$0xff] }
  0x75   : > { %903 = vmatprep.subr.mxu1 %v252_v12  ;;  %833 = vmatpush1.msra.mxu0 %v505_v13  ;;  %v323_v12 = vld [vmem:[%s2478_s29 + $0x270] sm:$0xff]  ;;  %v574_v13 = vld [vmem:[%s2478_s29 + $0xa48] sm:$0xff] }
  0x76   : > { %904 = vmatpush1.msra.mxu1 %v251_v14  ;;  %834 = vmatprep.subr.mxu0 %v502_v15  ;;  %v320_v14 = vld [vmem:[%s2478_s29 + $0x258] sm:$0xff]  ;;  %v573_v15 = vld [vmem:[%s2478_s29 + $0xa40] sm:$0xff] }
  0x77   : > { %905 = vmatprep.subr.mxu1 %v248_v16  ;;  %835 = vmatpush1.msra.mxu0 %v501_v17  ;;  %v319_v16 = vld [vmem:[%s2478_s29 + $0x250] sm:$0xff]  ;;  %v2754_v17 = vld.sshfl [vmem:[%s2473_s25 + $0x8] sm:$0x33 pattern:$0x76325410] }
  0x78   : > { %906 = vmatpush1.msra.mxu1 %v247_v18  ;;  %836 = vmatprep.subr.mxu0 %v626_v19  ;;  %v570_v18 = vld [vmem:[%s2478_s29 + $0xa28] sm:$0xff]  ;;  %v316_v19 = vld [vmem:[%s2478_s29 + $0x238] sm:$0xff] }
  0x79   : > { %907 = vmatprep.subr.mxu1 %v372_v20  ;;  %837 = vmatpush2.msra.mxu0 %v625_v21  ;;  %v569_v20 = vld [vmem:[%s2478_s29 + $0xa20] sm:$0xff]  ;;  %v315_v21 = vld [vmem:[%s2478_s29 + $0x230] sm:$0xff] }
  0x7a   : > { %908 = vmatpush2.msra.mxu1 %v371_v22  ;;  %838 = vmatprep.subr.mxu0 %v622_v23  ;;  %v566_v22 = vld [vmem:[%s2478_s29 + $0xa08] sm:$0xff]  ;;  %v312_v23 = vld [vmem:[%s2478_s29 + $0x218] sm:$0xff] }
  0x7b   : > { %909 = vmatprep.subr.mxu1 %v368_v24  ;;  %839 = vmatpush2.msra.mxu0 %v621_v25  ;;  %v2764_v24 = vcombine.high %v2754_v17, %v2754_v17  ;;  %v565_v25 = vld [vmem:[%s2478_s29 + $0xa00] sm:$0xff] }
  0x7c   : > { %910 = vmatpush2.msra.mxu1 %v367_v26  ;;  %840 = vmatprep.subr.mxu0 %v618_v27  ;;  %v311_v26 = vld [vmem:[%s2478_s29 + $0x210] sm:$0xff]  ;;  %v436_v27 = vld [vmem:[%s2478_s29 + $0x5f8] sm:$0xff] }
  0x7d   : > { %911 = vmatprep.subr.mxu1 %v364_v28  ;;  %841 = vmatpush2.msra.mxu0 %v617_v29  ;;  %v564_v28 = vld [vmem:[%s2478_s29 + $0x9f8] sm:$0xff]  ;;  %v435_v29 = vld [vmem:[%s2478_s29 + $0x5f0] sm:$0xff] }
  0x7e   : > { %912 = vmatpush2.msra.mxu1 %v363_v30  ;;  %842 = vmatprep.subr.mxu0 %v614_v31  ;;  %v563_v30 = vld [vmem:[%s2478_s29 + $0x9f0] sm:$0xff]  ;;  %v432_v31 = vld [vmem:[%s2478_s29 + $0x5d8] sm:$0xff] }
  0x7f   : > { %913 = vmatprep.subr.mxu1 %v360_v32  ;;  %843 = vmatpush2.msra.mxu0 %v613_v33  ;;  %v560_v32 = vld [vmem:[%s2478_s29 + $0x9d8] sm:$0xff]  ;;  %v431_v33 = vld [vmem:[%s2478_s29 + $0x5d0] sm:$0xff] }
  0x80   : > { %914 = vmatpush2.msra.mxu1 %v359_v34  ;;  %844 = vmatprep.subr.mxu0 %v610_v35  ;;  %v559_v34 = vld [vmem:[%s2478_s29 + $0x9d0] sm:$0xff]  ;;  %v428_v35 = vld [vmem:[%s2478_s29 + $0x5b8] sm:$0xff] }
  0x81   : > { %915 = vmatprep.subr.mxu1 %v356_v36  ;;  %845 = vmatpush2.msra.mxu0 %v609_v37  ;;  %v556_v36 = vld [vmem:[%s2478_s29 + $0x9b8] sm:$0xff]  ;;  %v555_v37 = vld [vmem:[%s2478_s29 + $0x9b0] sm:$0xff] }
  0x82   : > { %916 = vmatpush2.msra.mxu1 %v355_v38  ;;  %846 = vmatprep.subr.mxu0 %v606_v39  ;;  %v424_v38 = vld [vmem:[%s2478_s29 + $0x598] sm:$0xff]  ;;  %v423_v39 = vld [vmem:[%s2478_s29 + $0x590] sm:$0xff] }
  0x83   : > { %917 = vmatprep.subr.mxu1 %v352_v40  ;;  %847 = vmatpush2.msra.mxu0 %v605_v41  ;;  %v551_v40 = vld [vmem:[%s2478_s29 + $0x990] sm:$0xff]  ;;  %v420_v41 = vld [vmem:[%s2478_s29 + $0x578] sm:$0xff] }
  0x84   : > { %918 = vmatpush2.msra.mxu1 %v351_v42  ;;  %848 = vmatprep.subr.mxu0 %v602_v44  ;;  %v548_v42 = vld [vmem:[%s2478_s29 + $0x978] sm:$0xff]  ;;  %v419_v44 = vld [vmem:[%s2478_s29 + $0x570] sm:$0xff] }
  0x85   : > { %919 = vmatprep.subr.mxu1 %v348_v45  ;;  %849 = vmatpush2.msra.mxu0 %v601_v46  ;;  %v547_v45 = vld [vmem:[%s2478_s29 + $0x970] sm:$0xff]  ;;  %v416_v46 = vld [vmem:[%s2478_s29 + $0x558] sm:$0xff] }
  0x86   : > { %920 = vmatpush2.msra.mxu1 %v347_v47  ;;  %850 = vmatprep.subr.mxu0 %v598_v48  ;;  %v544_v47 = vld [vmem:[%s2478_s29 + $0x958] sm:$0xff]  ;;  %v415_v48 = vld [vmem:[%s2478_s29 + $0x550] sm:$0xff] }
  0x87   : > { %921 = vmatprep.subr.mxu1 %v344_v49  ;;  %851 = vmatpush2.msra.mxu0 %v597_v50  ;;  %v543_v49 = vld [vmem:[%s2478_s29 + $0x950] sm:$0xff]  ;;  %v412_v50 = vld [vmem:[%s2478_s29 + $0x538] sm:$0xff] }
  0x88   : > { %922 = vmatpush2.msra.mxu1 %v343_v51  ;;  %852 = vmatprep.subr.mxu0 %v594_v52  ;;  %v540_v51 = vld [vmem:[%s2478_s29 + $0x938] sm:$0xff]  ;;  %v411_v52 = vld [vmem:[%s2478_s29 + $0x530] sm:$0xff] }
  0x89   : > { %923 = vmatprep.subr.mxu1 %v340_v54  ;;  %853 = vmatpush2.msra.mxu0 %v593_v55  ;;  %v539_v54 = vld [vmem:[%s2478_s29 + $0x930] sm:$0xff]  ;;  %v408_v55 = vld [vmem:[%s2478_s29 + $0x518] sm:$0xff] }
  0x8a   : > { %924 = vmatpush2.msra.mxu1 %v339_v56  ;;  %854 = vmatprep.subr.mxu0 %v590_v57  ;;  %v536_v56 = vld [vmem:[%s2478_s29 + $0x918] sm:$0xff]  ;;  %v407_v57 = vld [vmem:[%s2478_s29 + $0x510] sm:$0xff] }
  0x8b   : > { %925 = vmatprep.subr.mxu1 %v336_v58  ;;  %855 = vmatpush2.msra.mxu0 %v589_v59  ;;  %v535_v58 = vld [vmem:[%s2478_s29 + $0x910] sm:$0xff]  ;;  %v404_v59 = vld [vmem:[%s2478_s29 + $0x4f8] sm:$0xff] }
  0x8c   : > { %926 = vmatpush2.msra.mxu1 %v335_v60  ;;  %856 = vmatprep.subr.mxu0 %v586_v61  ;;  %v532_v60 = vld [vmem:[%s2478_s29 + $0x8f8] sm:$0xff]  ;;  %v403_v61 = vld [vmem:[%s2478_s29 + $0x4f0] sm:$0xff] }
  0x8d   : > { %927 = vmatprep.subr.mxu1 %v332_v62  ;;  %857 = vmatpush2.msra.mxu0 %v585_v0  ;;  %v531_v62 = vld [vmem:[%s2478_s29 + $0x8f0] sm:$0xff]  ;;  %v400_v0 = vld [vmem:[%s2478_s29 + $0x4d8] sm:$0xff] }
  0x8e   : > { %928 = vmatpush2.msra.mxu1 %v331_v1  ;;  %858 = vmatprep.subr.mxu0 %v582_v3  ;;  %v528_v1 = vld [vmem:[%s2478_s29 + $0x8d8] sm:$0xff]  ;;  %v399_v3 = vld [vmem:[%s2478_s29 + $0x4d0] sm:$0xff] }
  0x8f   : > { %929 = vmatprep.subr.mxu1 %v328_v4  ;;  %859 = vmatpush2.msra.mxu0 %v581_v5  ;;  %v527_v4 = vld [vmem:[%s2478_s29 + $0x8d0] sm:$0xff]  ;;  %v396_v5 = vld [vmem:[%s2478_s29 + $0x4b8] sm:$0xff] }
  0x90   : > { %930 = vmatpush2.msra.mxu1 %v327_v6  ;;  %860 = vmatprep.subr.mxu0 %v578_v7  ;;  %v524_v6 = vld [vmem:[%s2478_s29 + $0x8b8] sm:$0xff]  ;;  %v395_v7 = vld [vmem:[%s2478_s29 + $0x4b0] sm:$0xff] }
  0x91   : > { %931 = vmatprep.subr.mxu1 %v324_v8  ;;  %861 = vmatpush2.msra.mxu0 %v577_v10  ;;  %v523_v8 = vld [vmem:[%s2478_s29 + $0x8b0] sm:$0xff]  ;;  %v392_v10 = vld [vmem:[%s2478_s29 + $0x498] sm:$0xff] }
  0x92   : > { %932 = vmatpush2.msra.mxu1 %v323_v12  ;;  %862 = vmatprep.subr.mxu0 %v574_v13  ;;  %v520_v12 = vld [vmem:[%s2478_s29 + $0x898] sm:$0xff]  ;;  %v391_v13 = vld [vmem:[%s2478_s29 + $0x490] sm:$0xff] }
  0x93   : > { %933 = vmatprep.subr.mxu1 %v320_v14  ;;  %863 = vmatpush2.msra.mxu0 %v573_v15  ;;  %v519_v14 = vld [vmem:[%s2478_s29 + $0x890] sm:$0xff]  ;;  %v388_v15 = vld [vmem:[%s2478_s29 + $0x478] sm:$0xff] }
  0x94   : > { %934 = vmatpush2.msra.mxu1 %v319_v16  ;;  %864 = vmatprep.subr.mxu0 %v570_v18  ;;  %v516_v16 = vld [vmem:[%s2478_s29 + $0x878] sm:$0xff]  ;;  %v387_v18 = vld [vmem:[%s2478_s29 + $0x470] sm:$0xff] }
  0x95   : > { %935 = vmatprep.subr.mxu1 %v316_v19  ;;  %865 = vmatpush2.msra.mxu0 %v569_v20  ;;  %v515_v19 = vld [vmem:[%s2478_s29 + $0x870] sm:$0xff]  ;;  %v384_v20 = vld [vmem:[%s2478_s29 + $0x458] sm:$0xff] }
  0x96   : > { %936 = vmatpush2.msra.mxu1 %v315_v21  ;;  %866 = vmatprep.subr.mxu0 %v566_v22  ;;  %v512_v21 = vld [vmem:[%s2478_s29 + $0x858] sm:$0xff]  ;;  %v383_v22 = vld [vmem:[%s2478_s29 + $0x450] sm:$0xff] }
  0x97   : > { %937 = vmatprep.subr.mxu1 %v312_v23  ;;  %867 = vmatpush2.msra.mxu0 %v565_v25  ;;  %v511_v23 = vld [vmem:[%s2478_s29 + $0x850] sm:$0xff]  ;;  %v380_v25 = vld [vmem:[%s2478_s29 + $0x438] sm:$0xff] }
  0x98   : > { %868 = vmatprep.mubr.f32.mxu0 %v2764_v24  ;;  %938 = vmatpush2.msra.mxu1 %v311_v26  ;;  %v508_v26 = vld [vmem:[%s2478_s29 + $0x838] sm:$0xff] }
  0x99   : > { %869 = vmatmul.mubr.f32.vlgmr.msra.gmra.mxu0 %v2754_v17  ;;  %939 = vmatprep.mubr.f32.mxu1 %v2621_v9  ;;  %v427_v9 = vld [vmem:[%s2478_s29 + $0x5b0] sm:$0xff] }
  0x9a   : > { %946 = vmatprep.subr.mxu0 %v436_v27  ;;  %1017 = vmatprep.subr.mxu1 %v564_v28  ;;  %v379_v27 = vld [vmem:[%s2478_s29 + $0x430] sm:$0xff] }
  0x9b   : > { %940 = vmatmul.mubr.f32.vlgmr.msra.gmra.mxu1 %v2606_v63  ;;  %947 = vmatpush1.msra.mxu0 %v435_v29  ;;  %v552_v63 = vld [vmem:[%s2478_s29 + $0x998] sm:$0xff]  ;;  %v507_v28 = vld [vmem:[%s2478_s29 + $0x830] sm:$0xff] }
  0x9c   : > { %1018 = vmatpush1.msra.mxu1 %v563_v30  ;;  %948 = vmatprep.subr.mxu0 %v432_v31  ;;  %v376_v29 = vld [vmem:[%s2478_s29 + $0x418] sm:$0xff]  ;;  %v375_v31 = vld [vmem:[%s2478_s29 + $0x410] sm:$0xff] }
  0x9d   : > { %1019 = vmatprep.subr.mxu1 %v560_v32  ;;  %949 = vmatpush1.msra.mxu0 %v431_v33  ;;  %v504_v30 = vld [vmem:[%s2478_s29 + $0x818] sm:$0xff]  ;;  %v503_v32 = vld [vmem:[%s2478_s29 + $0x810] sm:$0xff] }
  0x9e   : > { %1020 = vmatpush1.msra.mxu1 %v559_v34  ;;  %950 = vmatprep.subr.mxu0 %v428_v35  ;;  %v500_v33 = vld [vmem:[%s2478_s29 + $0x7f8] sm:$0xff]  ;;  %v499_v35 = vld [vmem:[%s2478_s29 + $0x7f0] sm:$0xff] }
  0x9f   : > { %1021 = vmatprep.subr.mxu1 %v556_v36  ;;  %951 = vmatpush1.msra.mxu0 %v427_v9  ;;  %v628_v34 = vld [vmem:[%s2478_s29 + $0xbf8] sm:$0xff]  ;;  %v627_v36 = vld [vmem:[%s2478_s29 + $0xbf0] sm:$0xff] }
  0xa0   : > { %1022 = vmatpush1.msra.mxu1 %v555_v37  ;;  %952 = vmatprep.subr.mxu0 %v424_v38  ;;  %v496_v9 = vld [vmem:[%s2478_s29 + $0x7d8] sm:$0xff]  ;;  %v495_v38 = vld [vmem:[%s2478_s29 + $0x7d0] sm:$0xff] }
  0xa1   : > { %1023 = vmatprep.subr.mxu1 %v552_v63  ;;  %953 = vmatpush1.msra.mxu0 %v423_v39  ;;  %v624_v37 = vld [vmem:[%s2478_s29 + $0xbd8] sm:$0xff]  ;;  %v623_v63 = vld [vmem:[%s2478_s29 + $0xbd0] sm:$0xff] }
  0xa2   : > { %1024 = vmatpush1.msra.mxu1 %v551_v40  ;;  %954 = vmatprep.subr.mxu0 %v420_v41  ;;  %v492_v39 = vld [vmem:[%s2478_s29 + $0x7b8] sm:$0xff]  ;;  %v491_v41 = vld [vmem:[%s2478_s29 + $0x7b0] sm:$0xff] }
  0xa3   : > { %1025 = vmatprep.subr.mxu1 %v548_v42  ;;  %955 = vmatpush1.msra.mxu0 %v419_v44  ;;  %v620_v40 = vld [vmem:[%s2478_s29 + $0xbb8] sm:$0xff]  ;;  %v619_v42 = vld [vmem:[%s2478_s29 + $0xbb0] sm:$0xff] }
  0xa4   : > { %1026 = vmatpush1.msra.mxu1 %v547_v45  ;;  %956 = vmatprep.subr.mxu0 %v416_v46  ;;  %v488_v44 = vld [vmem:[%s2478_s29 + $0x798] sm:$0xff]  ;;  %v487_v46 = vld [vmem:[%s2478_s29 + $0x790] sm:$0xff] }
  0xa5   : > { %1027 = vmatprep.subr.mxu1 %v544_v47  ;;  %957 = vmatpush1.msra.mxu0 %v415_v48  ;;  %v616_v45 = vld [vmem:[%s2478_s29 + $0xb98] sm:$0xff]  ;;  %v615_v47 = vld [vmem:[%s2478_s29 + $0xb90] sm:$0xff] }
  0xa6   : > { %1028 = vmatpush1.msra.mxu1 %v543_v49  ;;  %958 = vmatprep.subr.mxu0 %v412_v50  ;;  %v484_v48 = vld [vmem:[%s2478_s29 + $0x778] sm:$0xff]  ;;  %v483_v50 = vld [vmem:[%s2478_s29 + $0x770] sm:$0xff] }
  0xa7   : > { %1029 = vmatprep.subr.mxu1 %v540_v51  ;;  %959 = vmatpush1.msra.mxu0 %v411_v52  ;;  %v612_v49 = vld [vmem:[%s2478_s29 + $0xb78] sm:$0xff]  ;;  %v611_v51 = vld [vmem:[%s2478_s29 + $0xb70] sm:$0xff] }
  0xa8   : > { %1030 = vmatpush1.msra.mxu1 %v539_v54  ;;  %960 = vmatprep.subr.mxu0 %v408_v55  ;;  %v480_v52 = vld [vmem:[%s2478_s29 + $0x758] sm:$0xff]  ;;  %v479_v55 = vld [vmem:[%s2478_s29 + $0x750] sm:$0xff] }
  0xa9   : > { %1031 = vmatprep.subr.mxu1 %v536_v56  ;;  %961 = vmatpush1.msra.mxu0 %v407_v57  ;;  %v608_v54 = vld [vmem:[%s2478_s29 + $0xb58] sm:$0xff]  ;;  %v607_v56 = vld [vmem:[%s2478_s29 + $0xb50] sm:$0xff] }
  0xaa   : > { %1032 = vmatpush1.msra.mxu1 %v535_v58  ;;  %962 = vmatprep.subr.mxu0 %v404_v59  ;;  %v476_v57 = vld [vmem:[%s2478_s29 + $0x738] sm:$0xff]  ;;  %v475_v59 = vld [vmem:[%s2478_s29 + $0x730] sm:$0xff] }
  0xab   : > { %1033 = vmatprep.subr.mxu1 %v532_v60  ;;  %963 = vmatpush1.msra.mxu0 %v403_v61  ;;  %v604_v58 = vld [vmem:[%s2478_s29 + $0xb38] sm:$0xff]  ;;  %v603_v60 = vld [vmem:[%s2478_s29 + $0xb30] sm:$0xff] }
  0xac   : > { %1034 = vmatpush1.msra.mxu1 %v531_v62  ;;  %964 = vmatprep.subr.mxu0 %v400_v0  ;;  %v472_v61 = vld [vmem:[%s2478_s29 + $0x718] sm:$0xff]  ;;  %v471_v0 = vld [vmem:[%s2478_s29 + $0x710] sm:$0xff] }
  0xad   : > { %1035 = vmatprep.subr.mxu1 %v528_v1  ;;  %965 = vmatpush1.msra.mxu0 %v399_v3  ;;  %v600_v62 = vld [vmem:[%s2478_s29 + $0xb18] sm:$0xff]  ;;  %v599_v1 = vld [vmem:[%s2478_s29 + $0xb10] sm:$0xff] }
  0xae   : > { %1036 = vmatpush1.msra.mxu1 %v527_v4  ;;  %966 = vmatprep.subr.mxu0 %v396_v5  ;;  %v468_v3 = vld [vmem:[%s2478_s29 + $0x6f8] sm:$0xff]  ;;  %v467_v5 = vld [vmem:[%s2478_s29 + $0x6f0] sm:$0xff] }
  0xaf   : > { %1037 = vmatprep.subr.mxu1 %v524_v6  ;;  %967 = vmatpush1.msra.mxu0 %v395_v7  ;;  %v596_v4 = vld [vmem:[%s2478_s29 + $0xaf8] sm:$0xff]  ;;  %v595_v6 = vld [vmem:[%s2478_s29 + $0xaf0] sm:$0xff] }
  0xb0   : > { %1038 = vmatpush1.msra.mxu1 %v523_v8  ;;  %968 = vmatprep.subr.mxu0 %v392_v10  ;;  %v464_v7 = vld [vmem:[%s2478_s29 + $0x6d8] sm:$0xff]  ;;  %v463_v10 = vld [vmem:[%s2478_s29 + $0x6d0] sm:$0xff] }
  0xb1   : > { %1039 = vmatprep.subr.mxu1 %v520_v12  ;;  %969 = vmatpush1.msra.mxu0 %v391_v13  ;;  %v592_v8 = vld [vmem:[%s2478_s29 + $0xad8] sm:$0xff]  ;;  %v591_v12 = vld [vmem:[%s2478_s29 + $0xad0] sm:$0xff] }
  0xb2   : > { %1040 = vmatpush1.msra.mxu1 %v519_v14  ;;  %970 = vmatprep.subr.mxu0 %v388_v15  ;;  %v460_v13 = vld [vmem:[%s2478_s29 + $0x6b8] sm:$0xff]  ;;  %v459_v15 = vld [vmem:[%s2478_s29 + $0x6b0] sm:$0xff] }
  0xb3   : > { %1041 = vmatprep.subr.mxu1 %v516_v16  ;;  %971 = vmatpush1.msra.mxu0 %v387_v18  ;;  %v588_v14 = vld [vmem:[%s2478_s29 + $0xab8] sm:$0xff]  ;;  %v587_v16 = vld [vmem:[%s2478_s29 + $0xab0] sm:$0xff] }
  0xb4   : > { %1042 = vmatpush1.msra.mxu1 %v515_v19  ;;  %972 = vmatprep.subr.mxu0 %v384_v20  ;;  %v456_v18 = vld [vmem:[%s2478_s29 + $0x698] sm:$0xff]  ;;  %v455_v20 = vld [vmem:[%s2478_s29 + $0x690] sm:$0xff] }
  0xb5   : > { %1043 = vmatprep.subr.mxu1 %v512_v21  ;;  %973 = vmatpush1.msra.mxu0 %v383_v22  ;;  %v584_v19 = vld [vmem:[%s2478_s29 + $0xa98] sm:$0xff]  ;;  %v583_v21 = vld [vmem:[%s2478_s29 + $0xa90] sm:$0xff] }
  0xb6   : > { %1044 = vmatpush1.msra.mxu1 %v511_v23  ;;  %974 = vmatprep.subr.mxu0 %v380_v25  ;;  %v452_v22 = vld [vmem:[%s2478_s29 + $0x678] sm:$0xff]  ;;  %v451_v25 = vld [vmem:[%s2478_s29 + $0x670] sm:$0xff] }
  0xb7   : > { %1045 = vmatprep.subr.mxu1 %v508_v26  ;;  %975 = vmatpush1.msra.mxu0 %v379_v27  ;;  %v580_v23 = vld [vmem:[%s2478_s29 + $0xa78] sm:$0xff]  ;;  %v579_v26 = vld [vmem:[%s2478_s29 + $0xa70] sm:$0xff] }
  0xb8   : > { %1046 = vmatpush1.msra.mxu1 %v507_v28  ;;  %976 = vmatprep.subr.mxu0 %v376_v29  ;;  %v448_v27 = vld [vmem:[%s2478_s29 + $0x658] sm:$0xff]  ;;  %v447_v29 = vld [vmem:[%s2478_s29 + $0x650] sm:$0xff] }
  0xb9   : > { %1047 = vmatprep.subr.mxu1 %v504_v30  ;;  %977 = vmatpush1.msra.mxu0 %v375_v31  ;;  %v576_v28 = vld [vmem:[%s2478_s29 + $0xa58] sm:$0xff]  ;;  %v575_v30 = vld [vmem:[%s2478_s29 + $0xa50] sm:$0xff] }
  0xba   : > { %1048 = vmatpush1.msra.mxu1 %v503_v32  ;;  %978 = vmatprep.subr.mxu0 %v500_v33  ;;  %v444_v31 = vld [vmem:[%s2478_s29 + $0x638] sm:$0xff]  ;;  %v443_v33 = vld [vmem:[%s2478_s29 + $0x630] sm:$0xff] }
  0xbb   : > { %1049 = vmatprep.subr.mxu1 %v628_v34  ;;  %979 = vmatpush2.msra.mxu0 %v499_v35  ;;  %v572_v32 = vld [vmem:[%s2478_s29 + $0xa38] sm:$0xff]  ;;  %v571_v34 = vld [vmem:[%s2478_s29 + $0xa30] sm:$0xff] }
  0xbc   : > { %1050 = vmatpush2.msra.mxu1 %v627_v36  ;;  %980 = vmatprep.subr.mxu0 %v496_v9  ;;  %v440_v35 = vld [vmem:[%s2478_s29 + $0x618] sm:$0xff]  ;;  %v439_v9 = vld [vmem:[%s2478_s29 + $0x610] sm:$0xff] }
  0xbd   : > { %1051 = vmatprep.subr.mxu1 %v624_v37  ;;  %981 = vmatpush2.msra.mxu0 %v495_v38  ;;  %v568_v36 = vld [vmem:[%s2478_s29 + $0xa18] sm:$0xff]  ;;  %v567_v37 = vld [vmem:[%s2478_s29 + $0xa10] sm:$0xff] }
  0xbe   : > { %1052 = vmatpush2.msra.mxu1 %v623_v63  ;;  %982 = vmatprep.subr.mxu0 %v492_v39 }
  0xbf   : > { %1053 = vmatprep.subr.mxu1 %v620_v40  ;;  %983 = vmatpush2.msra.mxu0 %v491_v41 }
  0xc0   : > { %1054 = vmatpush2.msra.mxu1 %v619_v42  ;;  %984 = vmatprep.subr.mxu0 %v488_v44 }
  0xc1   : > { %1055 = vmatprep.subr.mxu1 %v616_v45  ;;  %985 = vmatpush2.msra.mxu0 %v487_v46 }
  0xc2   : > { %1056 = vmatpush2.msra.mxu1 %v615_v47  ;;  %986 = vmatprep.subr.mxu0 %v484_v48 }
  0xc3   : > { %1057 = vmatprep.subr.mxu1 %v612_v49  ;;  %987 = vmatpush2.msra.mxu0 %v483_v50 }
  0xc4   : > { %1058 = vmatpush2.msra.mxu1 %v611_v51  ;;  %988 = vmatprep.subr.mxu0 %v480_v52 }
  0xc5   : > { %1059 = vmatprep.subr.mxu1 %v608_v54  ;;  %989 = vmatpush2.msra.mxu0 %v479_v55 }
  0xc6   : > { %1060 = vmatpush2.msra.mxu1 %v607_v56  ;;  %990 = vmatprep.subr.mxu0 %v476_v57 }
  0xc7   : > { %1061 = vmatprep.subr.mxu1 %v604_v58  ;;  %991 = vmatpush2.msra.mxu0 %v475_v59  ;;  %v242_v59 = vld [vmem:[#allocation2] sm:$0xff] }
  0xc8   : > { %1062 = vmatpush2.msra.mxu1 %v603_v60  ;;  %992 = vmatprep.subr.mxu0 %v472_v61 }
  0xc9   : > { %1063 = vmatprep.subr.mxu1 %v600_v62  ;;  %993 = vmatpush2.msra.mxu0 %v471_v0 }
  0xca   : > { %1064 = vmatpush2.msra.mxu1 %v599_v1  ;;  %994 = vmatprep.subr.mxu0 %v468_v3 }
  0xcb   : > { %1065 = vmatprep.subr.mxu1 %v596_v4  ;;  %995 = vmatpush2.msra.mxu0 %v467_v5 }
  0xcc   : > { %1066 = vmatpush2.msra.mxu1 %v595_v6  ;;  %996 = vmatprep.subr.mxu0 %v464_v7 }
  0xcd   : > { %1067 = vmatprep.subr.mxu1 %v592_v8  ;;  %997 = vmatpush2.msra.mxu0 %v463_v10 }
  0xce   : > { %1068 = vmatpush2.msra.mxu1 %v591_v12  ;;  %998 = vmatprep.subr.mxu0 %v460_v13 }
  0xcf   : > { %1069 = vmatprep.subr.mxu1 %v588_v14  ;;  %999 = vmatpush2.msra.mxu0 %v459_v15 }
  0xd0   : > { %1070 = vmatpush2.msra.mxu1 %v587_v16  ;;  %1000 = vmatprep.subr.mxu0 %v456_v18 }
  0xd1   : > { %1071 = vmatprep.subr.mxu1 %v584_v19  ;;  %1001 = vmatpush2.msra.mxu0 %v455_v20 }
  0xd2   : > { %1072 = vmatpush2.msra.mxu1 %v583_v21  ;;  %1002 = vmatprep.subr.mxu0 %v452_v22 }
  0xd3   : > { %1073 = vmatprep.subr.mxu1 %v580_v23  ;;  %1003 = vmatpush2.msra.mxu0 %v451_v25 }
  0xd4   : > { %1074 = vmatpush2.msra.mxu1 %v579_v26  ;;  %1004 = vmatprep.subr.mxu0 %v448_v27 }
  0xd5   : > { %1075 = vmatprep.subr.mxu1 %v576_v28  ;;  %1005 = vmatpush2.msra.mxu0 %v447_v29 }
  0xd6   : > { %1076 = vmatpush2.msra.mxu1 %v575_v30  ;;  %1006 = vmatprep.subr.mxu0 %v444_v31 }
  0xd7   : > { %1077 = vmatprep.subr.mxu1 %v572_v32  ;;  %1007 = vmatpush2.msra.mxu0 %v443_v33 }
  0xd8   : > { %1078 = vmatpush2.msra.mxu1 %v571_v34  ;;  %1008 = vmatprep.subr.mxu0 %v440_v35 }
  0xd9   : > { %1079 = vmatprep.subr.mxu1 %v568_v36  ;;  %1009 = vmatpush2.msra.mxu0 %v439_v9 }
  0xda   : > { %1010 = vmatprep.mubr.f32.mxu0 %v2626_v11  ;;  %1080 = vmatpush2.msra.mxu1 %v567_v37 }
  0xdb   : > { %1081 = vmatprep.mubr.f32.mxu1 %v2764_v24  ;;  %1011 = vmatmul.mubr.f32.vlgmr.msra.gmra.mxu0 %v2611_v2 }
  0xdc   : > { %1082 = vmatmul.mubr.f32.vlgmr.msra.gmra.mxu1 %v2754_v17 }
 0x117   : > { %v728_v38 = vpop.f32.mrf.mxu0 }
 0x118   : > { %v799_v63 = vpop.f32.mrf.mxu1 }
 0x119   : > { %v730_v39 = vpop.f32.mrf.mxu0  ;;  %v800_v49 = vadd.f32 %v799_v63, %v728_v38 }
 0x11a   : > { %v801_v40 = vpop.f32.mrf.mxu1 }
 0x11b   : > { %v802_v46 = vadd.f32 %v801_v40, %v730_v39 }
 0x159   : > { %v870_v41 = vpop.f32.mrf.mxu0 }
 0x15a   : > { %v871_v24 = vadd.f32 %v870_v41, %v800_v49 }
 0x15b   : > { %v941_v42 = vpop.f32.mrf.mxu1  ;;  %v872_v44 = vpop.f32.mrf.mxu0 }
 0x15c   : > { %v873_v11 = vadd.f32 %v872_v44, %v802_v46 }
 0x15d   : > { %v943_v45 = vpop.f32.mrf.mxu1 }
 0x15e   : > { %v1092_v54 = vcombine.low %v871_v24, %v873_v11 }
 0x160   : > { %v1100_v57 = vrot.slane %v1092_v54, %v2595_v53 }
 0x19b   : > { %v1012_v47 = vpop.f32.mrf.mxu0 }
 0x19c   : > { %v1083_v48 = vpop.f32.mrf.mxu1  ;;  %v1013_v50 = vadd.f32 %v1012_v47, %v941_v42 }
 0x19d   : > { %v1014_v51 = vpop.f32.mrf.mxu0 }
 0x19e   : > { %v1015_v52 = vadd.f32 %v1014_v51, %v943_v45  ;;  %v1085_v2 = vpop.f32.mrf.mxu1  ;;  %v1084_v17 = vadd.f32 %v1083_v48, %v1013_v50 }
 0x1a0   : > { %v1086_v55 = vadd.f32 %v1085_v2, %v1015_v52 }
 0x1a2   : > { %v1093_v56 = vcombine.low %v1084_v17, %v1086_v55 }
 0x1a4   : > { %v1107_v58 = vrot.slane %v1093_v56, %v2595_v53 }
 0x1a6   : > { %v1108_v60 = vcombine.low %v1100_v57, %v1107_v58  ;;  %1115 = sbr.rel (%p2333_p6) target bundleno = 867 (0x363), region = 48 }
 0x1a8   : > { %v1110_v61 = vadd.f32 %v1108_v60, %v242_v59 }
 0x1aa   : > { %1111 = vst [vmem:[#allocation2] sm:$0xff] %v1110_v61 }
 0x1ab   : > { %v1261_v62 = vld [vmem:[%s4328_s3 + $0x350] sm:$0xff]  ;;  %v1260_v1 = vld [vmem:[%s4328_s3 + $0x348] sm:$0xff]  ;;  %v1254_v4 = vld [vmem:[%s4328_s3 + $0x318] sm:$0xff]  ;;  %vm2278_vm0 = vcmask 1041408   ;;  %vm2279_vm1 = vcmask 1043458   ;;  %vm2281_vm3 = vcmask 128004  }
 0x1ac   : > { %v1485_v0 = vld [vmem:[%s4328_s3 + $0xa50] sm:$0xff]  ;;  %1662 = vmatprep.subr.mxu0 %v1261_v62  ;;  %v1484_v3 = vld [vmem:[%s4328_s3 + $0xa48] sm:$0xff]  ;;  %v1478_v5 = vld [vmem:[%s4328_s3 + $0xa18] sm:$0xff] }
 0x1ad   : > { %1733 = vmatprep.subr.mxu1 %v1485_v0  ;;  %1663 = vmatpush1.msra.mxu0 %v1260_v1  ;;  %v1253_v6 = vld [vmem:[%s4328_s3 + $0x310] sm:$0xff]  ;;  %v1247_v8 = vld [vmem:[%s4328_s3 + $0x2e0] sm:$0xff]  ;;  %v1246_v12 = vld [vmem:[%s4328_s3 + $0x2d8] sm:$0xff] }
 0x1ae   : > { %1734 = vmatpush1.msra.mxu1 %v1484_v3  ;;  %v1477_v7 = vld [vmem:[%s4328_s3 + $0xa10] sm:$0xff]  ;;  %1664 = vmatprep.subr.mxu0 %v1254_v4  ;;  %v1471_v10 = vld [vmem:[%s4328_s3 + $0x9e0] sm:$0xff]  ;;  %v1470_v13 = vld [vmem:[%s4328_s3 + $0x9d8] sm:$0xff] }
 0x1af   : > { %1735 = vmatprep.subr.mxu1 %v1478_v5  ;;  %1665 = vmatpush1.msra.mxu0 %v1253_v6  ;;  %v1240_v14 = vld [vmem:[%s4328_s3 + $0x2a8] sm:$0xff]  ;;  %v1239_v16 = vld [vmem:[%s4328_s3 + $0x2a0] sm:$0xff]  ;;  %v1233_v19 = vld [vmem:[%s4328_s3 + $0x270] sm:$0xff] }
 0x1b0   : > { %1736 = vmatpush1.msra.mxu1 %v1477_v7  ;;  %v1464_v15 = vld [vmem:[%s4328_s3 + $0x9a8] sm:$0xff]  ;;  %1666 = vmatprep.subr.mxu0 %v1247_v8  ;;  %v1463_v18 = vld [vmem:[%s4328_s3 + $0x9a0] sm:$0xff]  ;;  %v1457_v20 = vld [vmem:[%s4328_s3 + $0x970] sm:$0xff] }
 0x1b1   : > { %1737 = vmatprep.subr.mxu1 %v1471_v10  ;;  %1667 = vmatpush1.msra.mxu0 %v1246_v12  ;;  %v1232_v21 = vld [vmem:[%s4328_s3 + $0x268] sm:$0xff]  ;;  %v1226_v23 = vld [vmem:[%s4328_s3 + $0x238] sm:$0xff]  ;;  %v1225_v26 = vld [vmem:[%s4328_s3 + $0x230] sm:$0xff] }
 0x1b2   : > { %1738 = vmatpush1.msra.mxu1 %v1470_v13  ;;  %1668 = vmatprep.subr.mxu0 %v1240_v14  ;;  %v1456_v22 = vld [vmem:[%s4328_s3 + $0x968] sm:$0xff]  ;;  %v1450_v25 = vld [vmem:[%s4328_s3 + $0x938] sm:$0xff]  ;;  %v1449_v27 = vld [vmem:[%s4328_s3 + $0x930] sm:$0xff] }
 0x1b3   : > { %1739 = vmatprep.subr.mxu1 %v1464_v15  ;;  %1669 = vmatpush1.msra.mxu0 %v1239_v16  ;;  %v1219_v28 = vld [vmem:[%s4328_s3 + $0x200] sm:$0xff]  ;;  %v1218_v30 = vld [vmem:[%s4328_s3 + $0x1f8] sm:$0xff]  ;;  %v1212_v32 = vld [vmem:[%s4328_s3 + $0x1c8] sm:$0xff] }
 0x1b4   : > { %1740 = vmatpush1.msra.mxu1 %v1463_v18  ;;  %1670 = vmatprep.subr.mxu0 %v1233_v19  ;;  %v1443_v29 = vld [vmem:[%s4328_s3 + $0x900] sm:$0xff]  ;;  %v1442_v31 = vld [vmem:[%s4328_s3 + $0x8f8] sm:$0xff]  ;;  %v1436_v33 = vld [vmem:[%s4328_s3 + $0x8c8] sm:$0xff] }
 0x1b5   : > { %1741 = vmatprep.subr.mxu1 %v1457_v20  ;;  %1671 = vmatpush1.msra.mxu0 %v1232_v21  ;;  %v1211_v34 = vld [vmem:[%s4328_s3 + $0x1c0] sm:$0xff]  ;;  %v1205_v36 = vld [vmem:[%s4328_s3 + $0x190] sm:$0xff]  ;;  %v1204_v37 = vld [vmem:[%s4328_s3 + $0x188] sm:$0xff] }
 0x1b6   : > { %1742 = vmatpush1.msra.mxu1 %v1456_v22  ;;  %1672 = vmatprep.subr.mxu0 %v1226_v23  ;;  %v1435_v35 = vld [vmem:[%s4328_s3 + $0x8c0] sm:$0xff]  ;;  %v1429_v9 = vld [vmem:[%s4328_s3 + $0x890] sm:$0xff]  ;;  %v1428_v38 = vld [vmem:[%s4328_s3 + $0x888] sm:$0xff] }
 0x1b7   : > { %1743 = vmatprep.subr.mxu1 %v1450_v25  ;;  %1673 = vmatpush1.msra.mxu0 %v1225_v26  ;;  %v1198_v63 = vld [vmem:[%s4328_s3 + $0x158] sm:$0xff]  ;;  %v1197_v40 = vld [vmem:[%s4328_s3 + $0x150] sm:$0xff]  ;;  %v1191_v42 = vld [vmem:[%s4328_s3 + $0x120] sm:$0xff]  ;;  %v1121_v26 = vsub.s32 0, %v2583_v43 }
 0x1b8   : > { %1744 = vmatpush1.msra.mxu1 %v1449_v27  ;;  %1674 = vmatprep.subr.mxu0 %v1219_v28  ;;  %v1422_v39 = vld [vmem:[%s4328_s3 + $0x858] sm:$0xff]  ;;  %v1421_v41 = vld [vmem:[%s4328_s3 + $0x850] sm:$0xff]  ;;  %v1415_v44 = vld [vmem:[%s4328_s3 + $0x820] sm:$0xff]  ;;  %v1125_v27 = vsub.s32 1, %v2583_v43  ;;  %v1129_v28 = vsub.s32 2, %v2583_v43 }
 0x1b9   : > { %1745 = vmatprep.subr.mxu1 %v1443_v29  ;;  %1675 = vmatpush1.msra.mxu0 %v1218_v30  ;;  %v1190_v45 = vld [vmem:[%s4328_s3 + $0x118] sm:$0xff]  ;;  %v1184_v47 = vld [vmem:[%s4328_s3 + $0xe8] sm:$0xff]  ;;  %v1183_v49 = vld [vmem:[%s4328_s3 + $0xe0] sm:$0xff] }
 0x1ba   : > { %1746 = vmatpush1.msra.mxu1 %v1442_v31  ;;  %1676 = vmatprep.subr.mxu0 %v1212_v32  ;;  %v1414_v46 = vld [vmem:[%s4328_s3 + $0x818] sm:$0xff]  ;;  %v1408_v48 = vld [vmem:[%s4328_s3 + $0x7e8] sm:$0xff]  ;;  %v1407_v11 = vld [vmem:[%s4328_s3 + $0x7e0] sm:$0xff]  ;;  %v1133_v31 = vsub.s32 3, %v2583_v43 }
 0x1bb   : > { %1747 = vmatprep.subr.mxu1 %v1436_v33  ;;  %1677 = vmatpush1.msra.mxu0 %v1211_v34  ;;  %v1177_v50 = vld [vmem:[%s4328_s3 + $0xb0] sm:$0xff]  ;;  %v1176_v24 = vld [vmem:[%s4328_s3 + $0xa8] sm:$0xff]  ;;  %v1170_v2 = vld [vmem:[%s4328_s3 + $0x78] sm:$0xff] }
 0x1bc   : > { %1748 = vmatpush1.msra.mxu1 %v1435_v35  ;;  %1678 = vmatprep.subr.mxu0 %v1205_v36  ;;  %v1401_v51 = vld [vmem:[%s4328_s3 + $0x7b0] sm:$0xff]  ;;  %v1400_v52 = vld [vmem:[%s4328_s3 + $0x7a8] sm:$0xff]  ;;  %v1394_v54 = vld [vmem:[%s4328_s3 + $0x778] sm:$0xff] }
 0x1bd   : > { %1749 = vmatprep.subr.mxu1 %v1429_v9  ;;  %1679 = vmatpush1.msra.mxu0 %v1204_v37  ;;  %v1169_v17 = vld [vmem:[%s4328_s3 + $0x70] sm:$0xff]  ;;  %v1163_v56 = vld [vmem:[%s4328_s3 + $0x40] sm:$0xff]  ;;  %v1162_v58 = vld [vmem:[%s4328_s3 + $0x38] sm:$0xff] }
 0x1be   : > { %1750 = vmatpush1.msra.mxu1 %v1428_v38  ;;  %1680 = vmatprep.subr.mxu0 %v1198_v63  ;;  %v1393_v55 = vld [vmem:[%s4328_s3 + $0x770] sm:$0xff]  ;;  %v1387_v57 = vld [vmem:[%s4328_s3 + $0x740] sm:$0xff]  ;;  %v1386_v59 = vld [vmem:[%s4328_s3 + $0x738] sm:$0xff] }
 0x1bf   : > { %1751 = vmatprep.subr.mxu1 %v1422_v39  ;;  %1681 = vmatpush1.msra.mxu0 %v1197_v40  ;;  %v1156_v60 = vld [vmem:[%s4328_s3 + $0x8] sm:$0xff]  ;;  %v1155_v62 = vld [vmem:[%s4328_s3] sm:$0xff]  ;;  %v1373_v1 = vld [vmem:[%s4328_s3 + $0x6d0] sm:$0xff] }
 0x1c0   : > { %1752 = vmatpush1.msra.mxu1 %v1421_v41  ;;  %1682 = vmatprep.subr.mxu0 %v1191_v42  ;;  %v1380_v61 = vld [vmem:[%s4328_s3 + $0x708] sm:$0xff]  ;;  %v1379_v0 = vld [vmem:[%s4328_s3 + $0x700] sm:$0xff]  ;;  %v1597_v3 = vld [vmem:[%s4328_s3 + $0xdd0] sm:$0xff] }
 0x1c1   : > { %1753 = vmatprep.subr.mxu1 %v1415_v44  ;;  %1683 = vmatpush1.msra.mxu0 %v1190_v45  ;;  %v1372_v4 = vld [vmem:[%s4328_s3 + $0x6c8] sm:$0xff]  ;;  %v1366_v6 = vld [vmem:[%s4328_s3 + $0x698] sm:$0xff]  ;;  %v1365_v8 = vld [vmem:[%s4328_s3 + $0x690] sm:$0xff] }
 0x1c2   : > { %1754 = vmatpush1.msra.mxu1 %v1414_v46  ;;  %1684 = vmatprep.subr.mxu0 %v1184_v47  ;;  %v1596_v5 = vld [vmem:[%s4328_s3 + $0xdc8] sm:$0xff]  ;;  %v1590_v7 = vld [vmem:[%s4328_s3 + $0xd98] sm:$0xff]  ;;  %v1589_v10 = vld [vmem:[%s4328_s3 + $0xd90] sm:$0xff] }
 0x1c3   : > { %1755 = vmatprep.subr.mxu1 %v1408_v48  ;;  %1685 = vmatpush1.msra.mxu0 %v1183_v49  ;;  %v1359_v12 = vld [vmem:[%s4328_s3 + $0x660] sm:$0xff]  ;;  %v1358_v14 = vld [vmem:[%s4328_s3 + $0x658] sm:$0xff]  ;;  %v1352_v16 = vld [vmem:[%s4328_s3 + $0x628] sm:$0xff] }
 0x1c4   : > { %1756 = vmatpush1.msra.mxu1 %v1407_v11  ;;  %1686 = vmatprep.subr.mxu0 %v1177_v50  ;;  %v1583_v13 = vld [vmem:[%s4328_s3 + $0xd60] sm:$0xff]  ;;  %v1582_v15 = vld [vmem:[%s4328_s3 + $0xd58] sm:$0xff]  ;;  %v1576_v18 = vld [vmem:[%s4328_s3 + $0xd28] sm:$0xff] }
 0x1c5   : > { %1757 = vmatprep.subr.mxu1 %v1401_v51  ;;  %1687 = vmatpush1.msra.mxu0 %v1176_v24  ;;  %v1351_v19 = vld [vmem:[%s4328_s3 + $0x620] sm:$0xff]  ;;  %v1345_v21 = vld [vmem:[%s4328_s3 + $0x5f0] sm:$0xff]  ;;  %v1344_v23 = vld [vmem:[%s4328_s3 + $0x5e8] sm:$0xff] }
 0x1c6   : > { %1758 = vmatpush1.msra.mxu1 %v1400_v52  ;;  %1688 = vmatprep.subr.mxu0 %v1170_v2  ;;  %v1575_v20 = vld [vmem:[%s4328_s3 + $0xd20] sm:$0xff]  ;;  %v1569_v22 = vld [vmem:[%s4328_s3 + $0xcf0] sm:$0xff]  ;;  %v1568_v25 = vld [vmem:[%s4328_s3 + $0xce8] sm:$0xff] }
 0x1c7   : > { %1759 = vmatprep.subr.mxu1 %v1394_v54  ;;  %1689 = vmatpush1.msra.mxu0 %v1169_v17  ;;  %v1338_v29 = vld [vmem:[%s4328_s3 + $0x5b8] sm:$0xff]  ;;  %v1337_v32 = vld [vmem:[%s4328_s3 + $0x5b0] sm:$0xff]  ;;  %v1331_v34 = vld [vmem:[%s4328_s3 + $0x580] sm:$0xff] }
 0x1c8   : > { %1760 = vmatpush1.msra.mxu1 %v1393_v55  ;;  %1690 = vmatprep.subr.mxu0 %v1163_v56  ;;  %v1562_v30 = vld [vmem:[%s4328_s3 + $0xcb8] sm:$0xff]  ;;  %v1561_v33 = vld [vmem:[%s4328_s3 + $0xcb0] sm:$0xff]  ;;  %v1555_v35 = vld [vmem:[%s4328_s3 + $0xc80] sm:$0xff] }
 0x1c9   : > { %1761 = vmatprep.subr.mxu1 %v1387_v57  ;;  %1691 = vmatpush1.msra.mxu0 %v1162_v58  ;;  %v1117_v36 = vld [vmem:[%s4327_s2] sm:$0xf]  ;;  %v1330_v9 = vld [vmem:[%s4328_s3 + $0x578] sm:$0xff]  ;;  %v1324_v40 = vld [vmem:[%s4328_s3 + $0x548] sm:$0xff] }
 0x1ca   : > { %1762 = vmatpush1.msra.mxu1 %v1386_v59  ;;  %1692 = vmatprep.subr.mxu0 %v1156_v60  ;;  %v1554_v37 = vld [vmem:[%s4328_s3 + $0xc78] sm:$0xff]  ;;  %v1122_v38 = vrot.slane %v1117_v36, %v1121_v26  ;;  %v1126_v63 = vrot.slane %v1117_v36, %v1125_v27  ;;  %v1130_v39 = vrot.slane %v1117_v36, %v1129_v28  ;;  %v1548_v41 = vld [vmem:[%s4328_s3 + $0xc48] sm:$0xff]  ;;  %v1323_v44 = vld [vmem:[%s4328_s3 + $0x540] sm:$0xff] }
 0x1cb   : > { %1763 = vmatprep.subr.mxu1 %v1380_v61  ;;  %1693 = vmatpush1.msra.mxu0 %v1155_v62  ;;  %v1134_v42 = vrot.slane %v1117_v36, %v1133_v31  ;;  %v1547_v45 = vld [vmem:[%s4328_s3 + $0xc40] sm:$0xff]  ;;  %v1317_v47 = vld [vmem:[%s4328_s3 + $0x510] sm:$0xff]  ;;  %v1316_v11 = vld [vmem:[%s4328_s3 + $0x508] sm:$0xff] }
 0x1cc   : > { %1764 = vmatpush1.msra.mxu1 %v1379_v0  ;;  %1694 = vmatprep.subr.mxu0 %v1373_v1  ;;  %v1135_v46 = vcombine.low %v1122_v38, %v1126_v63  ;;  %v1541_v48 = vld [vmem:[%s4328_s3 + $0xc10] sm:$0xff]  ;;  %v1540_v50 = vld [vmem:[%s4328_s3 + $0xc08] sm:$0xff]  ;;  %v1310_v24 = vld [vmem:[%s4328_s3 + $0x4d8] sm:$0xff] }
 0x1cd   : > { %1765 = vmatprep.subr.mxu1 %v1597_v3  ;;  %1695 = vmatpush2.msra.mxu0 %v1372_v4  ;;  %v1136_v49 = vcombine.low %v1130_v39, %v1134_v42  ;;  %v1534_v52 = vld [vmem:[%s4328_s3 + $0xbd8] sm:$0xff]  ;;  %v1309_v54 = vld [vmem:[%s4328_s3 + $0x4d0] sm:$0xff]  ;;  %v1116_v55 = vld [vmem:[#allocation2] sm:$0xff] }
 0x1ce   : > { %1766 = vmatpush2.msra.mxu1 %v1596_v5  ;;  %1696 = vmatprep.subr.mxu0 %v1366_v6  ;;  %v1143_v51 = vrot.slane %v1135_v46, %v2595_v53  ;;  %v1533_v17 = vld [vmem:[%s4328_s3 + $0xbd0] sm:$0xff]  ;;  %v1303_v56 = vld [vmem:[%s4328_s3 + $0x4a0] sm:$0xff]  ;;  %v1302_v59 = vld [vmem:[%s4328_s3 + $0x498] sm:$0xff] }
 0x1cf   : > { %1767 = vmatprep.subr.mxu1 %v1590_v7  ;;  %1697 = vmatpush2.msra.mxu0 %v1365_v8  ;;  %v1150_v2 = vrot.slane %v1136_v49, %v2595_v53  ;;  %v1527_v57 = vld [vmem:[%s4328_s3 + $0xba0] sm:$0xff]  ;;  %v1526_v60 = vld [vmem:[%s4328_s3 + $0xb98] sm:$0xff]  ;;  %v1296_v61 = vld [vmem:[%s4328_s3 + $0x468] sm:$0xff] }
 0x1d0   : > { %1768 = vmatpush2.msra.mxu1 %v1589_v10  ;;  %1698 = vmatprep.subr.mxu0 %v1359_v12  ;;  %v1520_v62 = vld [vmem:[%s4328_s3 + $0xb68] sm:$0xff]  ;;  %v1295_v1 = vld [vmem:[%s4328_s3 + $0x460] sm:$0xff]  ;;  %v1289_v4 = vld [vmem:[%s4328_s3 + $0x430] sm:$0xff] }
 0x1d1   : > { %1769 = vmatprep.subr.mxu1 %v1583_v13  ;;  %1699 = vmatpush2.msra.mxu0 %v1358_v14  ;;  %v1151_v58 = vcombine.low %v1143_v51, %v1150_v2  ;;  %v1519_v3 = vld [vmem:[%s4328_s3 + $0xb60] sm:$0xff]  ;;  %v1513_v5 = vld [vmem:[%s4328_s3 + $0xb30] sm:$0xff]  ;;  %v1288_v7 = vld [vmem:[%s4328_s3 + $0x428] sm:$0xff] }
 0x1d2   : > { %1770 = vmatpush2.msra.mxu1 %v1582_v15  ;;  %1700 = vmatprep.subr.mxu0 %v1352_v16  ;;  %v1512_v8 = vld [vmem:[%s4328_s3 + $0xb28] sm:$0xff]  ;;  %v1282_v10 = vld [vmem:[%s4328_s3 + $0x3f8] sm:$0xff]  ;;  %v1281_v15 = vld [vmem:[%s4328_s3 + $0x3f0] sm:$0xff] }
 0x1d3   : > { %1771 = vmatprep.subr.mxu1 %v1576_v18  ;;  %1701 = vmatpush2.msra.mxu0 %v1351_v19  ;;  %v1153_v0 = vadd.f32 %v1151_v58, %v1116_v55  ;;  %v1506_v12 = vld [vmem:[%s4328_s3 + $0xaf8] sm:$0xff]  ;;  %v1505_v16 = vld [vmem:[%s4328_s3 + $0xaf0] sm:$0xff]  ;;  %v1275_v18 = vld [vmem:[%s4328_s3 + $0x3c0] sm:$0xff] }
 0x1d4   : > { %1772 = vmatpush2.msra.mxu1 %v1575_v20  ;;  %1702 = vmatprep.subr.mxu0 %v1345_v21  ;;  %v1499_v19 = vld [vmem:[%s4328_s3 + $0xac0] sm:$0xff]  ;;  %v1274_v21 = vld [vmem:[%s4328_s3 + $0x3b8] sm:$0xff]  ;;  %v1480_v38 = vld [vmem:[%s4328_s3 + $0xa28] sm:$0xff] }
 0x1d5   : > { %1773 = vmatprep.subr.mxu1 %v1569_v22  ;;  %1703 = vmatpush2.msra.mxu0 %v1344_v23  ;;  %v1154_v6 = vmax.f32 %v1153_v0, 0.0  ;;  %v1498_v22 = vld [vmem:[%s4328_s3 + $0xab8] sm:$0xff]  ;;  %v1268_v23 = vld [vmem:[%s4328_s3 + $0x388] sm:$0xff]  ;;  %v1255_v63 = vld [vmem:[%s4328_s3 + $0x320] sm:$0xff] }
 0x1d6   : > { %1774 = vmatpush2.msra.mxu1 %v1568_v25  ;;  %1704 = vmatprep.subr.mxu0 %v1338_v29  ;;  %v1492_v25 = vld [vmem:[%s4328_s3 + $0xa88] sm:$0xff]  ;;  %v1262_v36 = vld [vmem:[%s4328_s3 + $0x358] sm:$0xff]  ;;  %v1479_v39 = vld [vmem:[%s4328_s3 + $0xa20] sm:$0xff] }
 0x1d7   : > { %1775 = vmatprep.subr.mxu1 %v1562_v30  ;;  %1705 = vmatpush2.msra.mxu0 %v1337_v32  ;;  %v3279_v13 = vrot.slane %v1154_v6, %v2595_v53  ;;  %v1641_v14 = vcombine.high %v1154_v6, %v1154_v6  ;;  %v1267_v30 = vld [vmem:[%s4328_s3 + $0x380] sm:$0xff]  ;;  %v1248_v42 = vld [vmem:[%s4328_s3 + $0x2e8] sm:$0xff]  ;;  %v1466_v46 = vld [vmem:[%s4328_s3 + $0x9b8] sm:$0xff] }
 0x1d8   : > { %1776 = vmatpush2.msra.mxu1 %v1561_v33  ;;  %1706 = vmatprep.subr.mxu0 %v1331_v34  ;;  %v1491_v32 = vld [vmem:[%s4328_s3 + $0xa80] sm:$0xff]  ;;  %v1458_v51 = vld [vmem:[%s4328_s3 + $0x978] sm:$0xff]  ;;  %v1445_v55 = vld [vmem:[%s4328_s3 + $0x910] sm:$0xff] }
 0x1d9   : > { %1777 = vmatprep.subr.mxu1 %v1555_v35  ;;  %1707 = vmatpush2.msra.mxu0 %v1330_v9  ;;  %v3294_v20 = vrot.slane %v1641_v14, %v2595_v53  ;;  %v3310_v29 = vcombine.high %v3279_v13, %v3279_v13  ;;  %v1263_v34 = vld [vmem:[%s4328_s3 + $0x360] sm:$0xff]  ;;  %v1486_v9 = vld [vmem:[%s4328_s3 + $0xa58] sm:$0xff]  ;;  %v1416_v14 = vld [vmem:[%s4328_s3 + $0x828] sm:$0xff] }
 0x1da   : > { %1778 = vmatpush2.msra.mxu1 %v1554_v37  ;;  %1708 = vmatprep.subr.mxu0 %v1324_v40  ;;  %v1487_v35 = vld [vmem:[%s4328_s3 + $0xa60] sm:$0xff]  ;;  %v1256_v37 = vld [vmem:[%s4328_s3 + $0x328] sm:$0xff]  ;;  %v1249_v40 = vld [vmem:[%s4328_s3 + $0x2f0] sm:$0xff] }
 0x1db   : > { %1779 = vmatprep.subr.mxu1 %v1548_v41  ;;  %1709 = vmatpush2.msra.mxu0 %v1323_v44  ;;  %v3320_v33 = vcombine.high %v3294_v20, %v3294_v20  ;;  %v1473_v41 = vld [vmem:[%s4328_s3 + $0x9f0] sm:$0xff]  ;;  %v1472_v44 = vld [vmem:[%s4328_s3 + $0x9e8] sm:$0xff]  ;;  %v1235_v49 = vld [vmem:[%s4328_s3 + $0x280] sm:$0xff] }
 0x1dc   : > { %1780 = vmatpush2.msra.mxu1 %v1547_v45  ;;  %1710 = vmatprep.subr.mxu0 %v1317_v47  ;;  %v1242_v45 = vld [vmem:[%s4328_s3 + $0x2b8] sm:$0xff]  ;;  %v1241_v47 = vld [vmem:[%s4328_s3 + $0x2b0] sm:$0xff]  ;;  %v1227_v2 = vld [vmem:[%s4328_s3 + $0x240] sm:$0xff] }
 0x1dd   : > { %1781 = vmatprep.subr.mxu1 %v1541_v48  ;;  %1711 = vmatpush2.msra.mxu0 %v1316_v11  ;;  %v1465_v48 = vld [vmem:[%s4328_s3 + $0x9b0] sm:$0xff]  ;;  %v1459_v11 = vld [vmem:[%s4328_s3 + $0x980] sm:$0xff]  ;;  %v1214_v58 = vld [vmem:[%s4328_s3 + $0x1d8] sm:$0xff] }
 0x1de   : > { %1782 = vmatpush2.msra.mxu1 %v1540_v50  ;;  %1712 = vmatprep.subr.mxu0 %v1310_v24  ;;  %v1234_v50 = vld [vmem:[%s4328_s3 + $0x278] sm:$0xff]  ;;  %v1228_v24 = vld [vmem:[%s4328_s3 + $0x248] sm:$0xff]  ;;  %v1431_v0 = vld [vmem:[%s4328_s3 + $0x8a0] sm:$0xff] }
 0x1df   : > { %1783 = vmatprep.subr.mxu1 %v1534_v52  ;;  %1713 = vmatpush2.msra.mxu0 %v1309_v54  ;;  %v1452_v52 = vld [vmem:[%s4328_s3 + $0x948] sm:$0xff]  ;;  %v1451_v54 = vld [vmem:[%s4328_s3 + $0x940] sm:$0xff]  ;;  %vm2280_vm2 = vmor %vm2279_vm1, %vm2278_vm0 }
 0x1e0   : > { %1784 = vmatpush2.msra.mxu1 %v1533_v17  ;;  %1714 = vmatprep.subr.mxu0 %v1303_v56  ;;  %v1221_v17 = vld [vmem:[%s4328_s3 + $0x210] sm:$0xff]  ;;  %v1220_v56 = vld [vmem:[%s4328_s3 + $0x208] sm:$0xff]  ;;  %v1199_v6 = vld [vmem:[%s4328_s3 + $0x160] sm:$0xff] }
 0x1e1   : > { %1785 = vmatprep.subr.mxu1 %v1527_v57  ;;  %1715 = vmatpush2.msra.mxu0 %v1302_v59  ;;  %v1444_v57 = vld [vmem:[%s4328_s3 + $0x908] sm:$0xff]  ;;  %v1438_v59 = vld [vmem:[%s4328_s3 + $0x8d8] sm:$0xff]  ;;  %vm2282_vm4 = vmor %vm2281_vm3, %vm2280_vm2 }
 0x1e2   : > { %1786 = vmatpush2.msra.mxu1 %v1526_v60  ;;  %1716 = vmatprep.subr.mxu0 %v1296_v61  ;;  %v1213_v60 = vld [vmem:[%s4328_s3 + $0x1d0] sm:$0xff] }
 0x1e3   : > { %1787 = vmatprep.subr.mxu1 %v1520_v62  ;;  %1717 = vmatpush2.msra.mxu0 %v1295_v1  ;;  %v1437_v61 = vld [vmem:[%s4328_s3 + $0x8d0] sm:$0xff]  ;;  %v1207_v62 = vld [vmem:[%s4328_s3 + $0x1a0] sm:$0xff]  ;;  %v1206_v1 = vld [vmem:[%s4328_s3 + $0x198] sm:$0xff] }
 0x1e4   : > { %1788 = vmatpush2.msra.mxu1 %v1519_v3  ;;  %1718 = vmatprep.subr.mxu0 %v1289_v4  ;;  %v1430_v3 = vld [vmem:[%s4328_s3 + $0x898] sm:$0xff]  ;;  %v1200_v4 = vld [vmem:[%s4328_s3 + $0x168] sm:$0xff] }
 0x1e5   : > { %1789 = vmatprep.subr.mxu1 %v1513_v5  ;;  %1719 = vmatpush2.msra.mxu0 %v1288_v7  ;;  %v1424_v5 = vld [vmem:[%s4328_s3 + $0x868] sm:$0xff]  ;;  %v1423_v7 = vld [vmem:[%s4328_s3 + $0x860] sm:$0xff] }
 0x1e6   : > { %1790 = vmatpush2.msra.mxu1 %v1512_v8  ;;  %1720 = vmatprep.subr.mxu0 %v1282_v10  ;;  %v1193_v8 = vld [vmem:[%s4328_s3 + $0x130] sm:$0xff] }
 0x1e7   : > { %1791 = vmatprep.subr.mxu1 %v1506_v12  ;;  %1721 = vmatpush2.msra.mxu0 %v1281_v15  ;;  %v1417_v10 = vld [vmem:[%s4328_s3 + $0x830] sm:$0xff]  ;;  %v1192_v12 = vld [vmem:[%s4328_s3 + $0x128] sm:$0xff]  ;;  %v1186_v15 = vld [vmem:[%s4328_s3 + $0xf8] sm:$0xff] }
 0x1e8   : > { %1792 = vmatpush2.msra.mxu1 %v1505_v16  ;;  %1722 = vmatprep.subr.mxu0 %v1275_v18  ;;  %v1410_v16 = vld [vmem:[%s4328_s3 + $0x7f8] sm:$0xff]  ;;  %v1185_v18 = vld [vmem:[%s4328_s3 + $0xf0] sm:$0xff] }
 0x1e9   : > { %1793 = vmatprep.subr.mxu1 %v1499_v19  ;;  %1723 = vmatpush2.msra.mxu0 %v1274_v21  ;;  %v1409_v19 = vld [vmem:[%s4328_s3 + $0x7f0] sm:$0xff]  ;;  %v1179_v21 = vld [vmem:[%s4328_s3 + $0xc0] sm:$0xff] }
 0x1ea   : > { %1794 = vmatpush2.msra.mxu1 %v1498_v22  ;;  %1724 = vmatprep.subr.mxu0 %v1268_v23  ;;  %v1403_v22 = vld [vmem:[%s4328_s3 + $0x7c0] sm:$0xff]  ;;  %v1178_v23 = vld [vmem:[%s4328_s3 + $0xb8] sm:$0xff] }
 0x1eb   : > { %1795 = vmatprep.subr.mxu1 %v1492_v25  ;;  %1725 = vmatpush2.msra.mxu0 %v1267_v30  ;;  %v1402_v25 = vld [vmem:[%s4328_s3 + $0x7b8] sm:$0xff]  ;;  %v1172_v30 = vld [vmem:[%s4328_s3 + $0x88] sm:$0xff] }
 0x1ec   : > { %1726 = vmatprep.mubr.f32.mxu0 %v3310_v29  ;;  %1796 = vmatpush2.msra.mxu1 %v1491_v32  ;;  %v1396_v32 = vld [vmem:[%s4328_s3 + $0x788] sm:$0xff] }
 0x1ed   : > { %1727 = vmatmul.mubr.f32.vlgmr.msra.gmra.mxu0 %v3279_v13  ;;  %1797 = vmatprep.mubr.f32.mxu1 %v3320_v33 }
 0x1ee   : > { %1804 = vmatprep.subr.mxu0 %v1263_v34  ;;  %1875 = vmatprep.subr.mxu1 %v1487_v35  ;;  %v1171_v34 = vld [vmem:[%s4328_s3 + $0x80] sm:$0xff] }
 0x1ef   : > { %1798 = vmatmul.mubr.f32.vlgmr.msra.gmra.mxu1 %v3294_v20  ;;  %1805 = vmatpush1.msra.mxu0 %v1262_v36  ;;  %v1395_v35 = vld [vmem:[%s4328_s3 + $0x780] sm:$0xff]  ;;  %v1165_v36 = vld [vmem:[%s4328_s3 + $0x50] sm:$0xff] }
 0x1f0   : > { %1876 = vmatpush1.msra.mxu1 %v1486_v9  ;;  %1806 = vmatprep.subr.mxu0 %v1256_v37  ;;  %v1389_v9 = vld [vmem:[%s4328_s3 + $0x750] sm:$0xff]  ;;  %v1164_v37 = vld [vmem:[%s4328_s3 + $0x48] sm:$0xff] }
 0x1f1   : > { %1877 = vmatprep.subr.mxu1 %v1480_v38  ;;  %1807 = vmatpush1.msra.mxu0 %v1255_v63  ;;  %v1388_v38 = vld [vmem:[%s4328_s3 + $0x748] sm:$0xff]  ;;  %v1158_v63 = vld [vmem:[%s4328_s3 + $0x18] sm:$0xff] }
 0x1f2   : > { %1878 = vmatpush1.msra.mxu1 %v1479_v39  ;;  %1808 = vmatprep.subr.mxu0 %v1249_v40  ;;  %v1382_v39 = vld [vmem:[%s4328_s3 + $0x718] sm:$0xff]  ;;  %v1157_v40 = vld [vmem:[%s4328_s3 + $0x10] sm:$0xff] }
 0x1f3   : > { %1879 = vmatprep.subr.mxu1 %v1473_v41  ;;  %1809 = vmatpush1.msra.mxu0 %v1248_v42  ;;  %v1381_v41 = vld [vmem:[%s4328_s3 + $0x710] sm:$0xff]  ;;  %v1375_v42 = vld [vmem:[%s4328_s3 + $0x6e0] sm:$0xff] }
 0x1f4   : > { %1880 = vmatpush1.msra.mxu1 %v1472_v44  ;;  %1810 = vmatprep.subr.mxu0 %v1242_v45  ;;  %v1599_v44 = vld [vmem:[%s4328_s3 + $0xde0] sm:$0xff]  ;;  %v1374_v45 = vld [vmem:[%s4328_s3 + $0x6d8] sm:$0xff] }
 0x1f5   : > { %1881 = vmatprep.subr.mxu1 %v1466_v46  ;;  %1811 = vmatpush1.msra.mxu0 %v1241_v47  ;;  %v1598_v46 = vld [vmem:[%s4328_s3 + $0xdd8] sm:$0xff]  ;;  %v1368_v47 = vld [vmem:[%s4328_s3 + $0x6a8] sm:$0xff] }
 0x1f6   : > { %1882 = vmatpush1.msra.mxu1 %v1465_v48  ;;  %1812 = vmatprep.subr.mxu0 %v1235_v49  ;;  %v1592_v48 = vld [vmem:[%s4328_s3 + $0xda8] sm:$0xff]  ;;  %v1367_v49 = vld [vmem:[%s4328_s3 + $0x6a0] sm:$0xff] }
 0x1f7   : > { %1883 = vmatprep.subr.mxu1 %v1459_v11  ;;  %1813 = vmatpush1.msra.mxu0 %v1234_v50  ;;  %v1591_v11 = vld [vmem:[%s4328_s3 + $0xda0] sm:$0xff]  ;;  %v1361_v50 = vld [vmem:[%s4328_s3 + $0x670] sm:$0xff] }
 0x1f8   : > { %1884 = vmatpush1.msra.mxu1 %v1458_v51  ;;  %1814 = vmatprep.subr.mxu0 %v1228_v24  ;;  %v1585_v51 = vld [vmem:[%s4328_s3 + $0xd70] sm:$0xff]  ;;  %v1360_v24 = vld [vmem:[%s4328_s3 + $0x668] sm:$0xff] }
 0x1f9   : > { %1885 = vmatprep.subr.mxu1 %v1452_v52  ;;  %1815 = vmatpush1.msra.mxu0 %v1227_v2  ;;  %v1584_v52 = vld [vmem:[%s4328_s3 + $0xd68] sm:$0xff]  ;;  %v1354_v2 = vld [vmem:[%s4328_s3 + $0x638] sm:$0xff] }
 0x1fa   : > { %1886 = vmatpush1.msra.mxu1 %v1451_v54  ;;  %1816 = vmatprep.subr.mxu0 %v1221_v17  ;;  %v1578_v54 = vld [vmem:[%s4328_s3 + $0xd38] sm:$0xff]  ;;  %v1353_v17 = vld [vmem:[%s4328_s3 + $0x630] sm:$0xff] }
 0x1fb   : > { %1887 = vmatprep.subr.mxu1 %v1445_v55  ;;  %1817 = vmatpush1.msra.mxu0 %v1220_v56  ;;  %v1577_v55 = vld [vmem:[%s4328_s3 + $0xd30] sm:$0xff]  ;;  %v1347_v56 = vld [vmem:[%s4328_s3 + $0x600] sm:$0xff] }
 0x1fc   : > { %1888 = vmatpush1.msra.mxu1 %v1444_v57  ;;  %1818 = vmatprep.subr.mxu0 %v1214_v58  ;;  %v1571_v57 = vld [vmem:[%s4328_s3 + $0xd00] sm:$0xff]  ;;  %v1346_v58 = vld [vmem:[%s4328_s3 + $0x5f8] sm:$0xff] }
 0x1fd   : > { %1889 = vmatprep.subr.mxu1 %v1438_v59  ;;  %1819 = vmatpush1.msra.mxu0 %v1213_v60  ;;  %v1570_v59 = vld [vmem:[%s4328_s3 + $0xcf8] sm:$0xff]  ;;  %v1340_v60 = vld [vmem:[%s4328_s3 + $0x5c8] sm:$0xff] }
 0x1fe   : > { %1890 = vmatpush1.msra.mxu1 %v1437_v61  ;;  %1820 = vmatprep.subr.mxu0 %v1207_v62  ;;  %v1564_v61 = vld [vmem:[%s4328_s3 + $0xcc8] sm:$0xff]  ;;  %v1339_v62 = vld [vmem:[%s4328_s3 + $0x5c0] sm:$0xff] }
 0x1ff   : > { %1891 = vmatprep.subr.mxu1 %v1431_v0  ;;  %1821 = vmatpush1.msra.mxu0 %v1206_v1  ;;  %v1563_v0 = vld [vmem:[%s4328_s3 + $0xcc0] sm:$0xff]  ;;  %v1333_v1 = vld [vmem:[%s4328_s3 + $0x590] sm:$0xff] }
 0x200   : > { %1892 = vmatpush1.msra.mxu1 %v1430_v3  ;;  %1822 = vmatprep.subr.mxu0 %v1200_v4  ;;  %v1557_v3 = vld [vmem:[%s4328_s3 + $0xc90] sm:$0xff]  ;;  %v1332_v4 = vld [vmem:[%s4328_s3 + $0x588] sm:$0xff] }
 0x201   : > { %1893 = vmatprep.subr.mxu1 %v1424_v5  ;;  %1823 = vmatpush1.msra.mxu0 %v1199_v6  ;;  %v1556_v5 = vld [vmem:[%s4328_s3 + $0xc88] sm:$0xff]  ;;  %v1326_v6 = vld [vmem:[%s4328_s3 + $0x558] sm:$0xff] }
 0x202   : > { %1894 = vmatpush1.msra.mxu1 %v1423_v7  ;;  %1824 = vmatprep.subr.mxu0 %v1193_v8  ;;  %v1550_v7 = vld [vmem:[%s4328_s3 + $0xc58] sm:$0xff]  ;;  %v1325_v8 = vld [vmem:[%s4328_s3 + $0x550] sm:$0xff] }
 0x203   : > { %1895 = vmatprep.subr.mxu1 %v1417_v10  ;;  %1825 = vmatpush1.msra.mxu0 %v1192_v12  ;;  %v1549_v10 = vld [vmem:[%s4328_s3 + $0xc50] sm:$0xff]  ;;  %v1319_v12 = vld [vmem:[%s4328_s3 + $0x520] sm:$0xff] }
 0x204   : > { %1896 = vmatpush1.msra.mxu1 %v1416_v14  ;;  %1826 = vmatprep.subr.mxu0 %v1186_v15  ;;  %v1543_v14 = vld [vmem:[%s4328_s3 + $0xc20] sm:$0xff]  ;;  %v1318_v15 = vld [vmem:[%s4328_s3 + $0x518] sm:$0xff] }
 0x205   : > { %1897 = vmatprep.subr.mxu1 %v1410_v16  ;;  %1827 = vmatpush1.msra.mxu0 %v1185_v18  ;;  %v1542_v16 = vld [vmem:[%s4328_s3 + $0xc18] sm:$0xff]  ;;  %v1312_v18 = vld [vmem:[%s4328_s3 + $0x4e8] sm:$0xff] }
 0x206   : > { %1898 = vmatpush1.msra.mxu1 %v1409_v19  ;;  %1828 = vmatprep.subr.mxu0 %v1179_v21  ;;  %v1536_v19 = vld [vmem:[%s4328_s3 + $0xbe8] sm:$0xff]  ;;  %v1311_v21 = vld [vmem:[%s4328_s3 + $0x4e0] sm:$0xff] }
 0x207   : > { %1899 = vmatprep.subr.mxu1 %v1403_v22  ;;  %1829 = vmatpush1.msra.mxu0 %v1178_v23  ;;  %v1535_v22 = vld [vmem:[%s4328_s3 + $0xbe0] sm:$0xff]  ;;  %v1305_v23 = vld [vmem:[%s4328_s3 + $0x4b0] sm:$0xff] }
 0x208   : > { %1900 = vmatpush1.msra.mxu1 %v1402_v25  ;;  %1830 = vmatprep.subr.mxu0 %v1172_v30  ;;  %v1529_v25 = vld [vmem:[%s4328_s3 + $0xbb0] sm:$0xff]  ;;  %v1304_v30 = vld [vmem:[%s4328_s3 + $0x4a8] sm:$0xff] }
 0x209   : > { %1901 = vmatprep.subr.mxu1 %v1396_v32  ;;  %1831 = vmatpush1.msra.mxu0 %v1171_v34  ;;  %v1528_v32 = vld [vmem:[%s4328_s3 + $0xba8] sm:$0xff]  ;;  %v1298_v34 = vld [vmem:[%s4328_s3 + $0x478] sm:$0xff] }
 0x20a   : > { %1902 = vmatpush1.msra.mxu1 %v1395_v35  ;;  %1832 = vmatprep.subr.mxu0 %v1165_v36  ;;  %v1522_v35 = vld [vmem:[%s4328_s3 + $0xb78] sm:$0xff]  ;;  %v1297_v36 = vld [vmem:[%s4328_s3 + $0x470] sm:$0xff] }
 0x20b   : > { %1903 = vmatprep.subr.mxu1 %v1389_v9  ;;  %1833 = vmatpush1.msra.mxu0 %v1164_v37  ;;  %v1521_v9 = vld [vmem:[%s4328_s3 + $0xb70] sm:$0xff]  ;;  %v1291_v37 = vld [vmem:[%s4328_s3 + $0x440] sm:$0xff] }
 0x20c   : > { %1904 = vmatpush1.msra.mxu1 %v1388_v38  ;;  %1834 = vmatprep.subr.mxu0 %v1158_v63  ;;  %v1515_v38 = vld [vmem:[%s4328_s3 + $0xb40] sm:$0xff]  ;;  %v1290_v63 = vld [vmem:[%s4328_s3 + $0x438] sm:$0xff] }
 0x20d   : > { %1905 = vmatprep.subr.mxu1 %v1382_v39  ;;  %1835 = vmatpush1.msra.mxu0 %v1157_v40  ;;  %v1514_v39 = vld [vmem:[%s4328_s3 + $0xb38] sm:$0xff]  ;;  %v1284_v40 = vld [vmem:[%s4328_s3 + $0x408] sm:$0xff] }
 0x20e   : > { %1906 = vmatpush1.msra.mxu1 %v1381_v41  ;;  %1836 = vmatprep.subr.mxu0 %v1375_v42  ;;  %v1508_v41 = vld [vmem:[%s4328_s3 + $0xb08] sm:$0xff]  ;;  %v1283_v42 = vld [vmem:[%s4328_s3 + $0x400] sm:$0xff] }
 0x20f   : > { %1907 = vmatprep.subr.mxu1 %v1599_v44  ;;  %1837 = vmatpush2.msra.mxu0 %v1374_v45  ;;  %v1507_v44 = vld [vmem:[%s4328_s3 + $0xb00] sm:$0xff]  ;;  %v1277_v45 = vld [vmem:[%s4328_s3 + $0x3d0] sm:$0xff] }
 0x210   : > { %1908 = vmatpush2.msra.mxu1 %v1598_v46  ;;  %1838 = vmatprep.subr.mxu0 %v1368_v47  ;;  %v1501_v46 = vld [vmem:[%s4328_s3 + $0xad0] sm:$0xff]  ;;  %v1276_v47 = vld [vmem:[%s4328_s3 + $0x3c8] sm:$0xff] }
 0x211   : > { %1909 = vmatprep.subr.mxu1 %v1592_v48  ;;  %1839 = vmatpush2.msra.mxu0 %v1367_v49  ;;  %v1500_v48 = vld [vmem:[%s4328_s3 + $0xac8] sm:$0xff]  ;;  %v1270_v49 = vld [vmem:[%s4328_s3 + $0x398] sm:$0xff] }
 0x212   : > { %1910 = vmatpush2.msra.mxu1 %v1591_v11  ;;  %1840 = vmatprep.subr.mxu0 %v1361_v50  ;;  %v1494_v11 = vld [vmem:[%s4328_s3 + $0xa98] sm:$0xff]  ;;  %v1269_v50 = vld [vmem:[%s4328_s3 + $0x390] sm:$0xff] }
 0x213   : > { %1911 = vmatprep.subr.mxu1 %v1585_v51  ;;  %1841 = vmatpush2.msra.mxu0 %v1360_v24  ;;  %v1493_v51 = vld [vmem:[%s4328_s3 + $0xa90] sm:$0xff] }
 0x214   : > { %1912 = vmatpush2.msra.mxu1 %v1584_v52  ;;  %1842 = vmatprep.subr.mxu0 %v1354_v2  ;;  %v1265_v24 = vld [vmem:[%s4328_s3 + $0x370] sm:$0xff]  ;;  %v1264_v2 = vld [vmem:[%s4328_s3 + $0x368] sm:$0xff] }
 0x215   : > { %1913 = vmatprep.subr.mxu1 %v1578_v54  ;;  %1843 = vmatpush2.msra.mxu0 %v1353_v17  ;;  %v1489_v52 = vld [vmem:[%s4328_s3 + $0xa70] sm:$0xff]  ;;  %v1488_v54 = vld [vmem:[%s4328_s3 + $0xa68] sm:$0xff]  ;;  %v1258_v17 = vld [vmem:[%s4328_s3 + $0x338] sm:$0xff] }
 0x216   : > { %1914 = vmatpush2.msra.mxu1 %v1577_v55  ;;  %1844 = vmatprep.subr.mxu0 %v1347_v56  ;;  %v1482_v55 = vld [vmem:[%s4328_s3 + $0xa38] sm:$0xff]  ;;  %v1257_v56 = vld [vmem:[%s4328_s3 + $0x330] sm:$0xff] }
 0x217   : > { %1915 = vmatprep.subr.mxu1 %v1571_v57  ;;  %1845 = vmatpush2.msra.mxu0 %v1346_v58  ;;  %v1481_v57 = vld [vmem:[%s4328_s3 + $0xa30] sm:$0xff]  ;;  %v1251_v58 = vld [vmem:[%s4328_s3 + $0x300] sm:$0xff] }
 0x218   : > { %1916 = vmatpush2.msra.mxu1 %v1570_v59  ;;  %1846 = vmatprep.subr.mxu0 %v1340_v60  ;;  %v1475_v59 = vld [vmem:[%s4328_s3 + $0xa00] sm:$0xff]  ;;  %v1250_v60 = vld [vmem:[%s4328_s3 + $0x2f8] sm:$0xff] }
 0x219   : > { %1917 = vmatprep.subr.mxu1 %v1564_v61  ;;  %1847 = vmatpush2.msra.mxu0 %v1339_v62  ;;  %v1474_v61 = vld [vmem:[%s4328_s3 + $0x9f8] sm:$0xff]  ;;  %v1244_v62 = vld [vmem:[%s4328_s3 + $0x2c8] sm:$0xff] }
 0x21a   : > { %1918 = vmatpush2.msra.mxu1 %v1563_v0  ;;  %1848 = vmatprep.subr.mxu0 %v1333_v1  ;;  %v1468_v0 = vld [vmem:[%s4328_s3 + $0x9c8] sm:$0xff]  ;;  %v1243_v1 = vld [vmem:[%s4328_s3 + $0x2c0] sm:$0xff] }
 0x21b   : > { %1919 = vmatprep.subr.mxu1 %v1557_v3  ;;  %1849 = vmatpush2.msra.mxu0 %v1332_v4  ;;  %v1467_v3 = vld [vmem:[%s4328_s3 + $0x9c0] sm:$0xff]  ;;  %v1237_v4 = vld [vmem:[%s4328_s3 + $0x290] sm:$0xff] }
 0x21c   : > { %1920 = vmatpush2.msra.mxu1 %v1556_v5  ;;  %1850 = vmatprep.subr.mxu0 %v1326_v6  ;;  %v1461_v5 = vld [vmem:[%s4328_s3 + $0x990] sm:$0xff]  ;;  %v1236_v6 = vld [vmem:[%s4328_s3 + $0x288] sm:$0xff] }
 0x21d   : > { %1921 = vmatprep.subr.mxu1 %v1550_v7  ;;  %1851 = vmatpush2.msra.mxu0 %v1325_v8  ;;  %v1460_v7 = vld [vmem:[%s4328_s3 + $0x988] sm:$0xff]  ;;  %v1230_v8 = vld [vmem:[%s4328_s3 + $0x258] sm:$0xff] }
 0x21e   : > { %1922 = vmatpush2.msra.mxu1 %v1549_v10  ;;  %1852 = vmatprep.subr.mxu0 %v1319_v12  ;;  %v1454_v10 = vld [vmem:[%s4328_s3 + $0x958] sm:$0xff]  ;;  %v1229_v12 = vld [vmem:[%s4328_s3 + $0x250] sm:$0xff] }
 0x21f   : > { %1923 = vmatprep.subr.mxu1 %v1543_v14  ;;  %1853 = vmatpush2.msra.mxu0 %v1318_v15  ;;  %v1453_v14 = vld [vmem:[%s4328_s3 + $0x950] sm:$0xff]  ;;  %v1223_v15 = vld [vmem:[%s4328_s3 + $0x220] sm:$0xff] }
 0x220   : > { %1924 = vmatpush2.msra.mxu1 %v1542_v16  ;;  %1854 = vmatprep.subr.mxu0 %v1312_v18  ;;  %v1447_v16 = vld [vmem:[%s4328_s3 + $0x920] sm:$0xff]  ;;  %v1222_v18 = vld [vmem:[%s4328_s3 + $0x218] sm:$0xff] }
 0x221   : > { %1925 = vmatprep.subr.mxu1 %v1536_v19  ;;  %1855 = vmatpush2.msra.mxu0 %v1311_v21  ;;  %v1446_v19 = vld [vmem:[%s4328_s3 + $0x918] sm:$0xff]  ;;  %v1216_v21 = vld [vmem:[%s4328_s3 + $0x1e8] sm:$0xff] }
 0x222   : > { %1926 = vmatpush2.msra.mxu1 %v1535_v22  ;;  %1856 = vmatprep.subr.mxu0 %v1305_v23  ;;  %v1440_v22 = vld [vmem:[%s4328_s3 + $0x8e8] sm:$0xff]  ;;  %v1215_v23 = vld [vmem:[%s4328_s3 + $0x1e0] sm:$0xff] }
 0x223   : > { %1927 = vmatprep.subr.mxu1 %v1529_v25  ;;  %1857 = vmatpush2.msra.mxu0 %v1304_v30  ;;  %v1439_v25 = vld [vmem:[%s4328_s3 + $0x8e0] sm:$0xff]  ;;  %v1209_v30 = vld [vmem:[%s4328_s3 + $0x1b0] sm:$0xff] }
 0x224   : > { %1928 = vmatpush2.msra.mxu1 %v1528_v32  ;;  %1858 = vmatprep.subr.mxu0 %v1298_v34  ;;  %v1433_v32 = vld [vmem:[%s4328_s3 + $0x8b0] sm:$0xff]  ;;  %v1208_v34 = vld [vmem:[%s4328_s3 + $0x1a8] sm:$0xff] }
 0x225   : > { %1929 = vmatprep.subr.mxu1 %v1522_v35  ;;  %1859 = vmatpush2.msra.mxu0 %v1297_v36  ;;  %v1432_v35 = vld [vmem:[%s4328_s3 + $0x8a8] sm:$0xff]  ;;  %v1202_v36 = vld [vmem:[%s4328_s3 + $0x178] sm:$0xff] }
 0x226   : > { %1930 = vmatpush2.msra.mxu1 %v1521_v9  ;;  %1860 = vmatprep.subr.mxu0 %v1291_v37  ;;  %v1426_v9 = vld [vmem:[%s4328_s3 + $0x878] sm:$0xff]  ;;  %v1201_v37 = vld [vmem:[%s4328_s3 + $0x170] sm:$0xff] }
 0x227   : > { %1931 = vmatprep.subr.mxu1 %v1515_v38  ;;  %1861 = vmatpush2.msra.mxu0 %v1290_v63  ;;  %v1425_v38 = vld [vmem:[%s4328_s3 + $0x870] sm:$0xff]  ;;  %v1195_v63 = vld [vmem:[%s4328_s3 + $0x140] sm:$0xff] }
 0x228   : > { %1932 = vmatpush2.msra.mxu1 %v1514_v39  ;;  %1862 = vmatprep.subr.mxu0 %v1284_v40  ;;  %v1419_v39 = vld [vmem:[%s4328_s3 + $0x840] sm:$0xff]  ;;  %v1194_v40 = vld [vmem:[%s4328_s3 + $0x138] sm:$0xff] }
 0x229   : > { %1933 = vmatprep.subr.mxu1 %v1508_v41  ;;  %1863 = vmatpush2.msra.mxu0 %v1283_v42  ;;  %v1418_v41 = vld [vmem:[%s4328_s3 + $0x838] sm:$0xff]  ;;  %v1188_v42 = vld [vmem:[%s4328_s3 + $0x108] sm:$0xff] }
 0x22a   : > { %1934 = vmatpush2.msra.mxu1 %v1507_v44  ;;  %1864 = vmatprep.subr.mxu0 %v1277_v45  ;;  %v1412_v44 = vld [vmem:[%s4328_s3 + $0x808] sm:$0xff]  ;;  %v1187_v45 = vld [vmem:[%s4328_s3 + $0x100] sm:$0xff] }
 0x22b   : > { %1935 = vmatprep.subr.mxu1 %v1501_v46  ;;  %1865 = vmatpush2.msra.mxu0 %v1276_v47  ;;  %v1411_v46 = vld [vmem:[%s4328_s3 + $0x800] sm:$0xff]  ;;  %v1181_v47 = vld [vmem:[%s4328_s3 + $0xd0] sm:$0xff] }
 0x22c   : > { %1936 = vmatpush2.msra.mxu1 %v1500_v48  ;;  %1866 = vmatprep.subr.mxu0 %v1270_v49  ;;  %v1405_v48 = vld [vmem:[%s4328_s3 + $0x7d0] sm:$0xff]  ;;  %v1180_v49 = vld [vmem:[%s4328_s3 + $0xc8] sm:$0xff] }
 0x22d   : > { %1937 = vmatprep.subr.mxu1 %v1494_v11  ;;  %1867 = vmatpush2.msra.mxu0 %v1269_v50  ;;  %v1404_v11 = vld [vmem:[%s4328_s3 + $0x7c8] sm:$0xff]  ;;  %v1174_v50 = vld [vmem:[%s4328_s3 + $0x98] sm:$0xff] }
 0x22e   : > { %1868 = vmatprep.mubr.f32.mxu0 %v3310_v29  ;;  %1938 = vmatpush2.msra.mxu1 %v1493_v51  ;;  %v1398_v51 = vld [vmem:[%s4328_s3 + $0x798] sm:$0xff] }
 0x22f   : > { %1869 = vmatmul.mubr.f32.vlgmr.msra.gmra.mxu0 %v3279_v13  ;;  %1939 = vmatprep.mubr.f32.mxu1 %v3320_v33 }
 0x230   : > { %1946 = vmatprep.subr.mxu0 %v1265_v24  ;;  %2017 = vmatprep.subr.mxu1 %v1489_v52  ;;  %v1173_v24 = vld [vmem:[%s4328_s3 + $0x90] sm:$0xff] }
 0x231   : > { %1940 = vmatmul.mubr.f32.vlgmr.msra.gmra.mxu1 %v3294_v20  ;;  %1947 = vmatpush1.msra.mxu0 %v1264_v2  ;;  %v1397_v52 = vld [vmem:[%s4328_s3 + $0x790] sm:$0xff]  ;;  %v1167_v2 = vld [vmem:[%s4328_s3 + $0x60] sm:$0xff] }
 0x232   : > { %2018 = vmatpush1.msra.mxu1 %v1488_v54  ;;  %1948 = vmatprep.subr.mxu0 %v1258_v17  ;;  %v1391_v54 = vld [vmem:[%s4328_s3 + $0x760] sm:$0xff]  ;;  %v1166_v17 = vld [vmem:[%s4328_s3 + $0x58] sm:$0xff] }
 0x233   : > { %2019 = vmatprep.subr.mxu1 %v1482_v55  ;;  %1949 = vmatpush1.msra.mxu0 %v1257_v56  ;;  %v1390_v55 = vld [vmem:[%s4328_s3 + $0x758] sm:$0xff]  ;;  %v1160_v56 = vld [vmem:[%s4328_s3 + $0x28] sm:$0xff] }
 0x234   : > { %2020 = vmatpush1.msra.mxu1 %v1481_v57  ;;  %1950 = vmatprep.subr.mxu0 %v1251_v58  ;;  %v1384_v57 = vld [vmem:[%s4328_s3 + $0x728] sm:$0xff]  ;;  %v1159_v58 = vld [vmem:[%s4328_s3 + $0x20] sm:$0xff] }
 0x235   : > { %2021 = vmatprep.subr.mxu1 %v1475_v59  ;;  %1951 = vmatpush1.msra.mxu0 %v1250_v60  ;;  %v1383_v59 = vld [vmem:[%s4328_s3 + $0x720] sm:$0xff]  ;;  %v1377_v60 = vld [vmem:[%s4328_s3 + $0x6f0] sm:$0xff] }
 0x236   : > { %2022 = vmatpush1.msra.mxu1 %v1474_v61  ;;  %1952 = vmatprep.subr.mxu0 %v1244_v62  ;;  %v1601_v61 = vld [vmem:[%s4328_s3 + $0xdf0] sm:$0xff]  ;;  %v1376_v62 = vld [vmem:[%s4328_s3 + $0x6e8] sm:$0xff] }
 0x237   : > { %2023 = vmatprep.subr.mxu1 %v1468_v0  ;;  %1953 = vmatpush1.msra.mxu0 %v1243_v1  ;;  %v1600_v0 = vld [vmem:[%s4328_s3 + $0xde8] sm:$0xff]  ;;  %v1370_v1 = vld [vmem:[%s4328_s3 + $0x6b8] sm:$0xff] }
 0x238   : > { %2024 = vmatpush1.msra.mxu1 %v1467_v3  ;;  %1954 = vmatprep.subr.mxu0 %v1237_v4  ;;  %v1594_v3 = vld [vmem:[%s4328_s3 + $0xdb8] sm:$0xff]  ;;  %v1369_v4 = vld [vmem:[%s4328_s3 + $0x6b0] sm:$0xff] }
 0x239   : > { %2025 = vmatprep.subr.mxu1 %v1461_v5  ;;  %1955 = vmatpush1.msra.mxu0 %v1236_v6  ;;  %v1593_v5 = vld [vmem:[%s4328_s3 + $0xdb0] sm:$0xff]  ;;  %v1363_v6 = vld [vmem:[%s4328_s3 + $0x680] sm:$0xff] }
 0x23a   : > { %2026 = vmatpush1.msra.mxu1 %v1460_v7  ;;  %1956 = vmatprep.subr.mxu0 %v1230_v8  ;;  %v1587_v7 = vld [vmem:[%s4328_s3 + $0xd80] sm:$0xff]  ;;  %v1362_v8 = vld [vmem:[%s4328_s3 + $0x678] sm:$0xff] }
 0x23b   : > { %2027 = vmatprep.subr.mxu1 %v1454_v10  ;;  %1957 = vmatpush1.msra.mxu0 %v1229_v12  ;;  %v1586_v10 = vld [vmem:[%s4328_s3 + $0xd78] sm:$0xff]  ;;  %v1356_v12 = vld [vmem:[%s4328_s3 + $0x648] sm:$0xff] }
 0x23c   : > { %2028 = vmatpush1.msra.mxu1 %v1453_v14  ;;  %1958 = vmatprep.subr.mxu0 %v1223_v15  ;;  %v1580_v14 = vld [vmem:[%s4328_s3 + $0xd48] sm:$0xff]  ;;  %v1355_v15 = vld [vmem:[%s4328_s3 + $0x640] sm:$0xff] }
 0x23d   : > { %2029 = vmatprep.subr.mxu1 %v1447_v16  ;;  %1959 = vmatpush1.msra.mxu0 %v1222_v18  ;;  %v1579_v16 = vld [vmem:[%s4328_s3 + $0xd40] sm:$0xff]  ;;  %v1349_v18 = vld [vmem:[%s4328_s3 + $0x610] sm:$0xff] }
 0x23e   : > { %2030 = vmatpush1.msra.mxu1 %v1446_v19  ;;  %1960 = vmatprep.subr.mxu0 %v1216_v21  ;;  %v1573_v19 = vld [vmem:[%s4328_s3 + $0xd10] sm:$0xff]  ;;  %v1348_v21 = vld [vmem:[%s4328_s3 + $0x608] sm:$0xff] }
 0x23f   : > { %2031 = vmatprep.subr.mxu1 %v1440_v22  ;;  %1961 = vmatpush1.msra.mxu0 %v1215_v23  ;;  %v1572_v22 = vld [vmem:[%s4328_s3 + $0xd08] sm:$0xff]  ;;  %v1342_v23 = vld [vmem:[%s4328_s3 + $0x5d8] sm:$0xff] }
 0x240   : > { %2032 = vmatpush1.msra.mxu1 %v1439_v25  ;;  %1962 = vmatprep.subr.mxu0 %v1209_v30  ;;  %v1566_v25 = vld [vmem:[%s4328_s3 + $0xcd8] sm:$0xff]  ;;  %v1341_v30 = vld [vmem:[%s4328_s3 + $0x5d0] sm:$0xff] }
 0x241   : > { %2033 = vmatprep.subr.mxu1 %v1433_v32  ;;  %1963 = vmatpush1.msra.mxu0 %v1208_v34  ;;  %v1565_v32 = vld [vmem:[%s4328_s3 + $0xcd0] sm:$0xff]  ;;  %v1335_v34 = vld [vmem:[%s4328_s3 + $0x5a0] sm:$0xff] }
 0x242   : > { %2034 = vmatpush1.msra.mxu1 %v1432_v35  ;;  %1964 = vmatprep.subr.mxu0 %v1202_v36  ;;  %v1559_v35 = vld [vmem:[%s4328_s3 + $0xca0] sm:$0xff]  ;;  %v1334_v36 = vld [vmem:[%s4328_s3 + $0x598] sm:$0xff] }
 0x243   : > { %2035 = vmatprep.subr.mxu1 %v1426_v9  ;;  %1965 = vmatpush1.msra.mxu0 %v1201_v37  ;;  %v1558_v9 = vld [vmem:[%s4328_s3 + $0xc98] sm:$0xff]  ;;  %v1328_v37 = vld [vmem:[%s4328_s3 + $0x568] sm:$0xff] }
 0x244   : > { %2036 = vmatpush1.msra.mxu1 %v1425_v38  ;;  %1966 = vmatprep.subr.mxu0 %v1195_v63  ;;  %v1552_v38 = vld [vmem:[%s4328_s3 + $0xc68] sm:$0xff]  ;;  %v1327_v63 = vld [vmem:[%s4328_s3 + $0x560] sm:$0xff] }
 0x245   : > { %2037 = vmatprep.subr.mxu1 %v1419_v39  ;;  %1967 = vmatpush1.msra.mxu0 %v1194_v40  ;;  %v1551_v39 = vld [vmem:[%s4328_s3 + $0xc60] sm:$0xff]  ;;  %v1321_v40 = vld [vmem:[%s4328_s3 + $0x530] sm:$0xff] }
 0x246   : > { %2038 = vmatpush1.msra.mxu1 %v1418_v41  ;;  %1968 = vmatprep.subr.mxu0 %v1188_v42  ;;  %v1545_v41 = vld [vmem:[%s4328_s3 + $0xc30] sm:$0xff]  ;;  %v1320_v42 = vld [vmem:[%s4328_s3 + $0x528] sm:$0xff] }
 0x247   : > { %2039 = vmatprep.subr.mxu1 %v1412_v44  ;;  %1969 = vmatpush1.msra.mxu0 %v1187_v45  ;;  %v1544_v44 = vld [vmem:[%s4328_s3 + $0xc28] sm:$0xff]  ;;  %v1314_v45 = vld [vmem:[%s4328_s3 + $0x4f8] sm:$0xff] }
 0x248   : > { %2040 = vmatpush1.msra.mxu1 %v1411_v46  ;;  %1970 = vmatprep.subr.mxu0 %v1181_v47  ;;  %v1538_v46 = vld [vmem:[%s4328_s3 + $0xbf8] sm:$0xff]  ;;  %v1313_v47 = vld [vmem:[%s4328_s3 + $0x4f0] sm:$0xff] }
 0x249   : > { %2041 = vmatprep.subr.mxu1 %v1405_v48  ;;  %1971 = vmatpush1.msra.mxu0 %v1180_v49  ;;  %v1537_v48 = vld [vmem:[%s4328_s3 + $0xbf0] sm:$0xff]  ;;  %v1307_v49 = vld [vmem:[%s4328_s3 + $0x4c0] sm:$0xff] }
 0x24a   : > { %2042 = vmatpush1.msra.mxu1 %v1404_v11  ;;  %1972 = vmatprep.subr.mxu0 %v1174_v50  ;;  %v1531_v11 = vld [vmem:[%s4328_s3 + $0xbc0] sm:$0xff]  ;;  %v1306_v50 = vld [vmem:[%s4328_s3 + $0x4b8] sm:$0xff] }
 0x24b   : > { %2043 = vmatprep.subr.mxu1 %v1398_v51  ;;  %1973 = vmatpush1.msra.mxu0 %v1173_v24  ;;  %v1530_v51 = vld [vmem:[%s4328_s3 + $0xbb8] sm:$0xff]  ;;  %v1300_v24 = vld [vmem:[%s4328_s3 + $0x488] sm:$0xff] }
 0x24c   : > { %2044 = vmatpush1.msra.mxu1 %v1397_v52  ;;  %1974 = vmatprep.subr.mxu0 %v1167_v2  ;;  %v1524_v52 = vld [vmem:[%s4328_s3 + $0xb88] sm:$0xff]  ;;  %v1299_v2 = vld [vmem:[%s4328_s3 + $0x480] sm:$0xff] }
 0x24d   : > { %2045 = vmatprep.subr.mxu1 %v1391_v54  ;;  %1975 = vmatpush1.msra.mxu0 %v1166_v17  ;;  %v1523_v54 = vld [vmem:[%s4328_s3 + $0xb80] sm:$0xff]  ;;  %v1293_v17 = vld [vmem:[%s4328_s3 + $0x450] sm:$0xff] }
 0x24e   : > { %2046 = vmatpush1.msra.mxu1 %v1390_v55  ;;  %1976 = vmatprep.subr.mxu0 %v1160_v56  ;;  %v1517_v55 = vld [vmem:[%s4328_s3 + $0xb50] sm:$0xff]  ;;  %v1292_v56 = vld [vmem:[%s4328_s3 + $0x448] sm:$0xff] }
 0x24f   : > { %2047 = vmatprep.subr.mxu1 %v1384_v57  ;;  %1977 = vmatpush1.msra.mxu0 %v1159_v58  ;;  %v1516_v57 = vld [vmem:[%s4328_s3 + $0xb48] sm:$0xff]  ;;  %v1286_v58 = vld [vmem:[%s4328_s3 + $0x418] sm:$0xff] }
 0x250   : > { %2048 = vmatpush1.msra.mxu1 %v1383_v59  ;;  %1978 = vmatprep.subr.mxu0 %v1377_v60  ;;  %v1510_v59 = vld [vmem:[%s4328_s3 + $0xb18] sm:$0xff]  ;;  %v1285_v60 = vld [vmem:[%s4328_s3 + $0x410] sm:$0xff] }
 0x251   : > { %2049 = vmatprep.subr.mxu1 %v1601_v61  ;;  %1979 = vmatpush2.msra.mxu0 %v1376_v62  ;;  %v1509_v61 = vld [vmem:[%s4328_s3 + $0xb10] sm:$0xff]  ;;  %v1279_v62 = vld [vmem:[%s4328_s3 + $0x3e0] sm:$0xff] }
 0x252   : > { %2050 = vmatpush2.msra.mxu1 %v1600_v0  ;;  %1980 = vmatprep.subr.mxu0 %v1370_v1  ;;  %v1503_v0 = vld [vmem:[%s4328_s3 + $0xae0] sm:$0xff]  ;;  %v1278_v1 = vld [vmem:[%s4328_s3 + $0x3d8] sm:$0xff] }
 0x253   : > { %2051 = vmatprep.subr.mxu1 %v1594_v3  ;;  %1981 = vmatpush2.msra.mxu0 %v1369_v4  ;;  %v1502_v3 = vld [vmem:[%s4328_s3 + $0xad8] sm:$0xff]  ;;  %v1272_v4 = vld [vmem:[%s4328_s3 + $0x3a8] sm:$0xff] }
 0x254   : > { %2052 = vmatpush2.msra.mxu1 %v1593_v5  ;;  %1982 = vmatprep.subr.mxu0 %v1363_v6  ;;  %v1496_v5 = vld [vmem:[%s4328_s3 + $0xaa8] sm:$0xff]  ;;  %v1271_v6 = vld [vmem:[%s4328_s3 + $0x3a0] sm:$0xff] }
 0x255   : > { %2053 = vmatprep.subr.mxu1 %v1587_v7  ;;  %1983 = vmatpush2.msra.mxu0 %v1362_v8  ;;  %v1495_v7 = vld [vmem:[%s4328_s3 + $0xaa0] sm:$0xff]  ;;  %v1378_v8 = vld [vmem:[%s4328_s3 + $0x6f8] sm:$0xff] }
 0x256   : > { %2054 = vmatpush2.msra.mxu1 %v1586_v10  ;;  %1984 = vmatprep.subr.mxu0 %v1356_v12  ;;  %v1602_v10 = vld [vmem:[%s4328_s3 + $0xdf8] sm:$0xff] }
 0x257   : > { %2055 = vmatprep.subr.mxu1 %v1580_v14  ;;  %1985 = vmatpush2.msra.mxu0 %v1355_v15  ;;  %v1266_v12 = vld [vmem:[%s4328_s3 + $0x378] sm:$0xff]  ;;  %v1371_v15 = vld [vmem:[%s4328_s3 + $0x6c0] sm:$0xff] }
 0x258   : > { %2056 = vmatpush2.msra.mxu1 %v1579_v16  ;;  %1986 = vmatprep.subr.mxu0 %v1349_v18  ;;  %v1490_v14 = vld [vmem:[%s4328_s3 + $0xa78] sm:$0xff]  ;;  %v1595_v16 = vld [vmem:[%s4328_s3 + $0xdc0] sm:$0xff] }
 0x259   : > { %2057 = vmatprep.subr.mxu1 %v1573_v19  ;;  %1987 = vmatpush2.msra.mxu0 %v1348_v21  ;;  %v1259_v18 = vld [vmem:[%s4328_s3 + $0x340] sm:$0xff]  ;;  %v1364_v21 = vld [vmem:[%s4328_s3 + $0x688] sm:$0xff] }
 0x25a   : > { %2058 = vmatpush2.msra.mxu1 %v1572_v22  ;;  %1988 = vmatprep.subr.mxu0 %v1342_v23  ;;  %v1483_v19 = vld [vmem:[%s4328_s3 + $0xa40] sm:$0xff]  ;;  %v1588_v22 = vld [vmem:[%s4328_s3 + $0xd88] sm:$0xff] }
 0x25b   : > { %2059 = vmatprep.subr.mxu1 %v1566_v25  ;;  %1989 = vmatpush2.msra.mxu0 %v1341_v30  ;;  %v1252_v23 = vld [vmem:[%s4328_s3 + $0x308] sm:$0xff]  ;;  %v1357_v30 = vld [vmem:[%s4328_s3 + $0x650] sm:$0xff] }
 0x25c   : > { %2060 = vmatpush2.msra.mxu1 %v1565_v32  ;;  %1990 = vmatprep.subr.mxu0 %v1335_v34  ;;  %v1476_v25 = vld [vmem:[%s4328_s3 + $0xa08] sm:$0xff]  ;;  %v1581_v32 = vld [vmem:[%s4328_s3 + $0xd50] sm:$0xff] }
 0x25d   : > { %2061 = vmatprep.subr.mxu1 %v1559_v35  ;;  %1991 = vmatpush2.msra.mxu0 %v1334_v36  ;;  %v1245_v34 = vld [vmem:[%s4328_s3 + $0x2d0] sm:$0xff]  ;;  %v1350_v36 = vld [vmem:[%s4328_s3 + $0x618] sm:$0xff] }
 0x25e   : > { %2062 = vmatpush2.msra.mxu1 %v1558_v9  ;;  %1992 = vmatprep.subr.mxu0 %v1328_v37  ;;  %v1469_v35 = vld [vmem:[%s4328_s3 + $0x9d0] sm:$0xff]  ;;  %v1574_v9 = vld [vmem:[%s4328_s3 + $0xd18] sm:$0xff] }
 0x25f   : > { %2063 = vmatprep.subr.mxu1 %v1552_v38  ;;  %1993 = vmatpush2.msra.mxu0 %v1327_v63  ;;  %v1238_v37 = vld [vmem:[%s4328_s3 + $0x298] sm:$0xff]  ;;  %v1343_v63 = vld [vmem:[%s4328_s3 + $0x5e0] sm:$0xff] }
 0x260   : > { %2064 = vmatpush2.msra.mxu1 %v1551_v39  ;;  %1994 = vmatprep.subr.mxu0 %v1321_v40  ;;  %v1462_v38 = vld [vmem:[%s4328_s3 + $0x998] sm:$0xff]  ;;  %v1567_v39 = vld [vmem:[%s4328_s3 + $0xce0] sm:$0xff] }
 0x261   : > { %2065 = vmatprep.subr.mxu1 %v1545_v41  ;;  %1995 = vmatpush2.msra.mxu0 %v1320_v42  ;;  %v1231_v40 = vld [vmem:[%s4328_s3 + $0x260] sm:$0xff]  ;;  %v1336_v42 = vld [vmem:[%s4328_s3 + $0x5a8] sm:$0xff] }
 0x262   : > { %2066 = vmatpush2.msra.mxu1 %v1544_v44  ;;  %1996 = vmatprep.subr.mxu0 %v1314_v45  ;;  %v1455_v41 = vld [vmem:[%s4328_s3 + $0x960] sm:$0xff]  ;;  %v1560_v44 = vld [vmem:[%s4328_s3 + $0xca8] sm:$0xff] }
 0x263   : > { %2067 = vmatprep.subr.mxu1 %v1538_v46  ;;  %1997 = vmatpush2.msra.mxu0 %v1313_v47  ;;  %v1224_v45 = vld [vmem:[%s4328_s3 + $0x228] sm:$0xff]  ;;  %v1329_v47 = vld [vmem:[%s4328_s3 + $0x570] sm:$0xff] }
 0x264   : > { %2068 = vmatpush2.msra.mxu1 %v1537_v48  ;;  %1998 = vmatprep.subr.mxu0 %v1307_v49  ;;  %v1448_v46 = vld [vmem:[%s4328_s3 + $0x928] sm:$0xff]  ;;  %v1553_v48 = vld [vmem:[%s4328_s3 + $0xc70] sm:$0xff] }
 0x265   : > { %2069 = vmatprep.subr.mxu1 %v1531_v11  ;;  %1999 = vmatpush2.msra.mxu0 %v1306_v50  ;;  %v1217_v49 = vld [vmem:[%s4328_s3 + $0x1f0] sm:$0xff]  ;;  %v1322_v50 = vld [vmem:[%s4328_s3 + $0x538] sm:$0xff] }
 0x266   : > { %2070 = vmatpush2.msra.mxu1 %v1530_v51  ;;  %2000 = vmatprep.subr.mxu0 %v1300_v24  ;;  %v1441_v11 = vld [vmem:[%s4328_s3 + $0x8f0] sm:$0xff]  ;;  %v1546_v51 = vld [vmem:[%s4328_s3 + $0xc38] sm:$0xff] }
 0x267   : > { %2071 = vmatprep.subr.mxu1 %v1524_v52  ;;  %2001 = vmatpush2.msra.mxu0 %v1299_v2  ;;  %v1210_v24 = vld [vmem:[%s4328_s3 + $0x1b8] sm:$0xff]  ;;  %v1315_v2 = vld [vmem:[%s4328_s3 + $0x500] sm:$0xff] }
 0x268   : > { %2072 = vmatpush2.msra.mxu1 %v1523_v54  ;;  %2002 = vmatprep.subr.mxu0 %v1293_v17  ;;  %v1434_v52 = vld [vmem:[%s4328_s3 + $0x8b8] sm:$0xff]  ;;  %v1539_v54 = vld [vmem:[%s4328_s3 + $0xc00] sm:$0xff] }
 0x269   : > { %2073 = vmatprep.subr.mxu1 %v1517_v55  ;;  %2003 = vmatpush2.msra.mxu0 %v1292_v56  ;;  %v1203_v17 = vld [vmem:[%s4328_s3 + $0x180] sm:$0xff]  ;;  %v1308_v56 = vld [vmem:[%s4328_s3 + $0x4c8] sm:$0xff] }
 0x26a   : > { %2074 = vmatpush2.msra.mxu1 %v1516_v57  ;;  %2004 = vmatprep.subr.mxu0 %v1286_v58  ;;  %v1427_v55 = vld [vmem:[%s4328_s3 + $0x880] sm:$0xff]  ;;  %v1532_v57 = vld [vmem:[%s4328_s3 + $0xbc8] sm:$0xff] }
 0x26b   : > { %2075 = vmatprep.subr.mxu1 %v1510_v59  ;;  %2005 = vmatpush2.msra.mxu0 %v1285_v60  ;;  %v1196_v58 = vld [vmem:[%s4328_s3 + $0x148] sm:$0xff]  ;;  %v1301_v60 = vld [vmem:[%s4328_s3 + $0x490] sm:$0xff] }
 0x26c   : > { %2076 = vmatpush2.msra.mxu1 %v1509_v61  ;;  %2006 = vmatprep.subr.mxu0 %v1279_v62  ;;  %v1420_v59 = vld [vmem:[%s4328_s3 + $0x848] sm:$0xff]  ;;  %v1525_v61 = vld [vmem:[%s4328_s3 + $0xb90] sm:$0xff] }
 0x26d   : > { %2077 = vmatprep.subr.mxu1 %v1503_v0  ;;  %2007 = vmatpush2.msra.mxu0 %v1278_v1  ;;  %v1189_v62 = vld [vmem:[%s4328_s3 + $0x110] sm:$0xff]  ;;  %v1294_v1 = vld [vmem:[%s4328_s3 + $0x458] sm:$0xff] }
 0x26e   : > { %2078 = vmatpush2.msra.mxu1 %v1502_v3  ;;  %2008 = vmatprep.subr.mxu0 %v1272_v4  ;;  %v1413_v0 = vld [vmem:[%s4328_s3 + $0x810] sm:$0xff]  ;;  %v1518_v3 = vld [vmem:[%s4328_s3 + $0xb58] sm:$0xff] }
 0x26f   : > { %2079 = vmatprep.subr.mxu1 %v1496_v5  ;;  %2009 = vmatpush2.msra.mxu0 %v1271_v6  ;;  %v1182_v4 = vld [vmem:[%s4328_s3 + $0xd8] sm:$0xff]  ;;  %v1287_v6 = vld [vmem:[%s4328_s3 + $0x420] sm:$0xff] }
 0x270   : > { %2010 = vmatprep.mubr.f32.mxu0 %v3310_v29  ;;  %2080 = vmatpush2.msra.mxu1 %v1495_v7  ;;  %v1406_v5 = vld [vmem:[%s4328_s3 + $0x7d8] sm:$0xff]  ;;  %v1511_v7 = vld [vmem:[%s4328_s3 + $0xb20] sm:$0xff] }
 0x271   : > { %2011 = vmatmul.mubr.f32.vlgmr.msra.gmra.mxu0 %v3279_v13  ;;  %2081 = vmatprep.mubr.f32.mxu1 %v3320_v33 }
 0x272   : > { %2337 = vmatprep.subr.mxu0 %v1378_v8  ;;  %2372 = vmatprep.subr.mxu1 %v1602_v10  ;;  %v1175_v8 = vld [vmem:[%s4328_s3 + $0xa0] sm:$0xff] }
 0x273   : > { %2082 = vmatmul.mubr.f32.vlgmr.msra.gmra.mxu1 %v3294_v20  ;;  %2338 = vmatpush3.msra.mxu0 %v1266_v12  ;;  %v1399_v10 = vld [vmem:[%s4328_s3 + $0x7a0] sm:$0xff]  ;;  %v1280_v12 = vld [vmem:[%s4328_s3 + $0x3e8] sm:$0xff] }
 0x274   : > { %2373 = vmatpush3.msra.mxu1 %v1490_v14  ;;  %2339 = vmatprep.subr.mxu0 %v1371_v15  ;;  %v1504_v14 = vld [vmem:[%s4328_s3 + $0xae8] sm:$0xff] }
 0x275   : > { %2374 = vmatprep.subr.mxu1 %v1595_v16  ;;  %2340 = vmatpush3.msra.mxu0 %v1259_v18  ;;  %v1168_v15 = vld [vmem:[%s4328_s3 + $0x68] sm:$0xff]  ;;  %v1273_v18 = vld [vmem:[%s4328_s3 + $0x3b0] sm:$0xff] }
 0x276   : > { %2375 = vmatpush3.msra.mxu1 %v1483_v19  ;;  %2341 = vmatprep.subr.mxu0 %v1364_v21  ;;  %v1392_v16 = vld [vmem:[%s4328_s3 + $0x768] sm:$0xff]  ;;  %v1497_v19 = vld [vmem:[%s4328_s3 + $0xab0] sm:$0xff] }
 0x277   : > { %2376 = vmatprep.subr.mxu1 %v1588_v22  ;;  %2342 = vmatpush3.msra.mxu0 %v1252_v23  ;;  %v1161_v21 = vld [vmem:[%s4328_s3 + $0x30] sm:$0xff]  ;;  %v1603_v23 = vld [vmem:[%s4329_s4] sm:$0x7f] }
 0x278   : > { %2377 = vmatpush3.msra.mxu1 %v1476_v25  ;;  %2343 = vmatprep.subr.mxu0 %v1357_v30  ;;  %v1385_v22 = vld [vmem:[%s4328_s3 + $0x730] sm:$0xff]  ;;  %v1608_v30 = vrot.slane %v1603_v23, %v1121_v26 }
 0x279   : > { %2378 = vmatprep.subr.mxu1 %v1581_v32  ;;  %2344 = vmatpush3.msra.mxu0 %v1245_v34  ;;  %v1612_v32 = vrot.slane %v1603_v23, %v1125_v27 }
 0x27a   : > { %2379 = vmatpush3.msra.mxu1 %v1469_v35  ;;  %2345 = vmatprep.subr.mxu0 %v1350_v36 }
 0x27b   : > { %2380 = vmatprep.subr.mxu1 %v1574_v9  ;;  %2346 = vmatpush3.msra.mxu0 %v1238_v37  ;;  %v1620_v37 = vrot.slane %v1603_v23, %v1133_v31  ;;  %v1623_v31 = vsub.s32 4, %v2583_v43 }
 0x27c   : > { %2381 = vmatpush3.msra.mxu1 %v1462_v38  ;;  %2347 = vmatprep.subr.mxu0 %v1343_v63 }
 0x27d   : > { %2382 = vmatprep.subr.mxu1 %v1567_v39  ;;  %2348 = vmatpush3.msra.mxu0 %v1231_v40 }
 0x27e   : > { %2383 = vmatpush3.msra.mxu1 %v1455_v41  ;;  %2349 = vmatprep.subr.mxu0 %v1336_v42 }
 0x27f   : > { %2384 = vmatprep.subr.mxu1 %v1560_v44  ;;  %2350 = vmatpush3.msra.mxu0 %v1224_v45 }
 0x280   : > { %2385 = vmatpush3.msra.mxu1 %v1448_v46  ;;  %2351 = vmatprep.subr.mxu0 %v1329_v47 }
 0x281   : > { %2386 = vmatprep.subr.mxu1 %v1553_v48  ;;  %2352 = vmatpush3.msra.mxu0 %v1217_v49 }
 0x282   : > { %2387 = vmatpush3.msra.mxu1 %v1441_v11  ;;  %2353 = vmatprep.subr.mxu0 %v1322_v50 }
 0x283   : > { %2388 = vmatprep.subr.mxu1 %v1546_v51  ;;  %2354 = vmatpush3.msra.mxu0 %v1210_v24  ;;  %v1627_v51 = vsub.s32 5, %v2583_v43 }
 0x284   : > { %2389 = vmatpush3.msra.mxu1 %v1434_v52  ;;  %2355 = vmatprep.subr.mxu0 %v1315_v2  ;;  %v1624_v52 = vrot.slane %v1603_v23, %v1623_v31 }
 0x285   : > { %2390 = vmatprep.subr.mxu1 %v1539_v54  ;;  %2356 = vmatpush3.msra.mxu0 %v1203_v17  ;;  %v1628_v2 = vrot.slane %v1603_v23, %v1627_v51 }
 0x286   : > { %2391 = vmatpush3.msra.mxu1 %v1427_v55  ;;  %2357 = vmatprep.subr.mxu0 %v1308_v56 }
 0x287   : > { %2392 = vmatprep.subr.mxu1 %v1532_v57  ;;  %2358 = vmatpush3.msra.mxu0 %v1196_v58  ;;  %v1631_v58 = vsub.s32 6, %v2583_v43 }
 0x288   : > { %2393 = vmatpush3.msra.mxu1 %v1420_v59  ;;  %2359 = vmatprep.subr.mxu0 %v1301_v60 }
 0x289   : > { %2394 = vmatprep.subr.mxu1 %v1525_v61  ;;  %2360 = vmatpush3.msra.mxu0 %v1189_v62 }
 0x28a   : > { %2395 = vmatpush3.msra.mxu1 %v1413_v0  ;;  %2361 = vmatprep.subr.mxu0 %v1294_v1  ;;  %v1632_v0 = vrot.slane %v1603_v23, %v1631_v58 }
 0x28b   : > { %2396 = vmatprep.subr.mxu1 %v1518_v3  ;;  %2362 = vmatpush3.msra.mxu0 %v1182_v4 }
 0x28c   : > { %2397 = vmatpush3.msra.mxu1 %v1406_v5  ;;  %2363 = vmatprep.subr.mxu0 %v1287_v6 }
 0x28d   : > { %2398 = vmatprep.subr.mxu1 %v1511_v7  ;;  %2364 = vmatpush3.msra.mxu0 %v1175_v8 }
 0x28e   : > { %2399 = vmatpush3.msra.mxu1 %v1399_v10  ;;  %2365 = vmatprep.subr.mxu0 %v1280_v12 }
 0x28f   : > { %2400 = vmatprep.subr.mxu1 %v1504_v14  ;;  %2366 = vmatpush3.msra.mxu0 %v1168_v15 }
 0x290   : > { %2401 = vmatpush3.msra.mxu1 %v1392_v16  ;;  %2367 = vmatprep.subr.mxu0 %v1273_v18 }
 0x291   : > { %2402 = vmatprep.subr.mxu1 %v1497_v19  ;;  %2368 = vmatpush3.msra.mxu0 %v1161_v21 }
 0x292   : > { %2152 = vmatprep.mubr.f32.mxu0 %v3310_v29  ;;  %2403 = vmatpush3.msra.mxu1 %v1385_v22 }
 0x293   : > { %2222 = vmatprep.mubr.f32.mxu1 %v3320_v33  ;;  %2153 = vmatmul.mubr.f32.vlgmr.msra.gmra.mxu0 %v3279_v13  ;;  %v1616_v13 = vrot.slane %v1603_v23, %v1129_v28 }
 0x294   : > { %2223 = vmatmul.mubr.f32.vlgmr.msra.gmra.mxu1 %v3294_v20 }
 0x2ad   : > { %v1728_v25 = vpop.f32.mrf.mxu0 }
 0x2ae   : > { %v1729_v35 = vadd.f32 %v1728_v25, %v1608_v30 }
 0x2af   : > { %v1799_v34 = vpop.f32.mrf.mxu1  ;;  %v1730_v29 = vpop.f32.mrf.mxu0 }
 0x2b0   : > { %v1731_v36 = vadd.f32 %v1730_v29, %v1612_v32  ;;  %v1800_v20 = vadd.f32 %v1799_v34, %v1729_v35 }
 0x2b1   : > { %v1801_v33 = vpop.f32.mrf.mxu1 }
 0x2b2   : > { %v1802_v9 = vadd.f32 %v1801_v33, %v1731_v36  ;;  %v2228_v40 = vmax.f32 %v1800_v20, 0.0 }
 0x2b4   : > { %v2229_v41 = vmax.f32 %v1802_v9, 0.0 }
 0x2b6   : > { %v2242_v47 = vcombine.low %v2228_v40, %v2229_v41 }
 0x2b8   : > { %v2250_v28 = vrot.slane %v2242_v47, %v2595_v53 }
 0x2ef   : > { %v1870_v38 = vpop.f32.mrf.mxu0 }
 0x2f0   : > { %v1871_v63 = vadd.f32 %v1870_v38, %v1616_v13 }
 0x2f1   : > { %v1941_v39 = vpop.f32.mrf.mxu1  ;;  %v1872_v26 = vpop.f32.mrf.mxu0 }
 0x2f2   : > { %v1942_v27 = vadd.f32 %v1941_v39, %v1871_v63  ;;  %v1873_v42 = vadd.f32 %v1872_v26, %v1620_v37 }
 0x2f3   : > { %v1943_v44 = vpop.f32.mrf.mxu1 }
 0x2f4   : > { %v2230_v45 = vmax.f32 %v1942_v27, 0.0  ;;  %v1944_v46 = vadd.f32 %v1943_v44, %v1873_v42 }
 0x2f6   : > { %v2231_v48 = vmax.f32 %v1944_v46, 0.0 }
 0x2f8   : > { %v2243_v49 = vcombine.low %v2230_v45, %v2231_v48 }
 0x2fa   : > { %v2257_v11 = vrot.slane %v2243_v49, %v2595_v53 }
 0x2fc   : > { %v2258_v50 = vcombine.low %v2250_v28, %v2257_v11 }
 0x2fe   : > { %2277 = vst [vmem:[%s4330_s5] sm:$0xff] %v2258_v50 }
 0x331   : > { %v2012_v24 = vpop.f32.mrf.mxu0 }
 0x332   : > { %v2013_v55 = vadd.f32 %v2012_v24, %v1624_v52 }
 0x333   : > { %v2083_v54 = vpop.f32.mrf.mxu1  ;;  %v2014_v17 = vpop.f32.mrf.mxu0 }
 0x334   : > { %v2015_v56 = vadd.f32 %v2014_v17, %v1628_v2  ;;  %v2084_v59 = vadd.f32 %v2083_v54, %v2013_v55 }
 0x335   : > { %v2085_v57 = vpop.f32.mrf.mxu1 }
 0x336   : > { %v2086_v60 = vadd.f32 %v2085_v57, %v2015_v56  ;;  %v2232_v4 = vmax.f32 %v2084_v59, 0.0 }
 0x338   : > { %v2233_v5 = vmax.f32 %v2086_v60, 0.0 }
 0x33a   : > { %v2259_v10 = vcombine.low %v2232_v4, %v2233_v5 }
 0x33c   : > { %v2266_v43 = vrot.slane %v2259_v10, %v2595_v53 }
 0x353   : > { %v2369_v61 = vpop.f32.mrf.mxu0 }
 0x354   : > { %v2404_v62 = vpop.f32.mrf.mxu1 }
 0x355   : > { %v2370_v1 = vpop.f32.mrf.mxu0 }
 0x356   : > { %v2405_v3 = vpop.f32.mrf.mxu1  ;;  %v2371_v6 = vadd.f32 %v2370_v1, %v2369_v61 }
 0x357   : > { %v2406_v8 = vadd.f32 %v2405_v3, %v2404_v62 }
 0x358   : > { %v2155_v7 = vadd.f32 %v2371_v6, %v1632_v0 }
 0x35a   : > { %v2225_v12 = vadd.f32 %v2406_v8, %v2155_v7 }
 0x35c   : > { %v2234_v14 = vmax.f32 %v2225_v12, 0.0 }
 0x35e   : > { %v2273_v15 = vrot.slane %v2234_v14, %v2595_v53 }
 0x360   : > { %v2274_v16 = vcombine.low %v2266_v43, %v2273_v15 }
 0x362   : > { %2283 = vst.msk [vmem:[%s4330_s5 + $0x8] sm:$0x3f] %vm2282_vm4, %v2274_v16 }
 0x363 PF: > { %s15_s18 = sadd.s32 1, %s2424_s18  }
 0x364   : > { %p12_p7 = scmp.ge.s32.totalorder %s15_s18, 5  }
 0x366   :  { %14 = sbr.rel (!%p12_p7) target bundleno = 1 (0x1), region = 77 }

</bundles_post_ra>
